<compile_context>
chip_gen: v7x
topology: tpu7x:2x2x1
jax: 0.10.0
libtpu: 0.0.40
codegen_flags: <defaults>
</compile_context>

<pallas_src>
import jax
import jax.numpy as jnp
from jax.experimental import pallas as pl
from jax.experimental.pallas import tpu as pltpu


def _round_up(x, m):
    return ((x + m - 1) // m) * m


def _default_block_rows():
    """256 fills the v6e/v7x 2x256x256 MXU M-dim; v5e-and-older keep 128."""
    try:
        kind = jax.devices()[0].device_kind.lower()
    except Exception:
        return 256
    if any(tag in kind for tag in ("v2", "v3", "v4", "v5")):
        return 128
    return 256


def _vmem_limit_bytes(tm, d_fm, d_rep, hidden):
    """Actual buffer need + headroom (never blindly request a full 64 MiB)."""
    bf16, f32 = 2, 4
    weights = (d_fm * hidden + d_rep * hidden + hidden * hidden) * bf16
    small = (3 * hidden + 1) * f32
    resident = 2 * (weights + small)                 # worst case: 2 buffers each
    acts = 2 * tm * (d_fm + d_rep) * bf16            # double-buffered input tiles
    outb = 2 * tm * f32
    inter = 3 * tm * hidden * f32                    # f32 intermediates in-body
    need = resident + acts + outb + inter
    limit = max(int(need * 1.5) + (4 << 20), 16 << 20)
    return min(limit, 112 << 20)


def _mlp_kernel(fm_ref, rep_ref, w1f_ref, w1r_ref, b1_ref,
                w2_ref, b2_ref, w3_ref, b3_ref, o_ref):
    # ---- dense1: split-concat -> two lane-aligned MXU dots, f32 accumulate.
    h = jnp.dot(fm_ref[...], w1f_ref[...], preferred_element_type=jnp.float32)
    h = h + jnp.dot(rep_ref[...], w1r_ref[...],
                    preferred_element_type=jnp.float32)
    h = jnp.maximum(h + b1_ref[...], 0.0)            # bias + ReLU in f32 (VPU)
    # ---- dense2 + ReLU (cast activations back to bf16 for the MXU).
    h = jnp.dot(h.astype(w2_ref.dtype), w2_ref[...],
                preferred_element_type=jnp.float32)
    h = jnp.maximum(h + b2_ref[...], 0.0)
    # ---- dense3 (512 -> 1): VPU broadcast-mul + lane reduction (no N=1 matmul)
    col = jnp.sum(h * w3_ref[...], axis=-1)          # (tm,) f32
    # Lane-dense store: batch rows on the lane axis (XLU relayout, free slot).
    o_ref[...] = (col[None, :] + b3_ref[...]).astype(o_ref.dtype)


def global_statistics_network(feature_map, representation, params,
                              *, block_rows=None):
    """feature_map: (B, C, H, W), representation: (B, latent) -> (B, 1) f32."""
    w1f, w1r, b1, w2, b2, w3_row, b3 = params
    B = feature_map.shape[0]
    d_fm = int(w1f.shape[0])
    d_rep = int(w1r.shape[0])
    hidden = int(w2.shape[0])

    # bf16 activations; kernel accumulates in f32.
    fm = feature_map.reshape(B, -1).astype(jnp.bfloat16)
    rep = representation.reshape(B, -1).astype(jnp.bfloat16)
    assert fm.shape[1] == d_fm and rep.shape[1] == d_rep

    # Lane-pad contraction dims to multiples of 128; zero-filled weight rows
    # keep the math exact and remove lane-sparse masked loads (rep is 32-wide).
    d_fm_p = _round_up(d_fm, 128)
    d_rep_p = _round_up(d_rep, 128)
    if d_fm_p != d_fm:
        fm = jnp.pad(fm, ((0, 0), (0, d_fm_p - d_fm)))
        w1f = jnp.pad(w1f, ((0, d_fm_p - d_fm), (0, 0)))
    if d_rep_p != d_rep:
        rep = jnp.pad(rep, ((0, 0), (0, d_rep_p - d_rep)))
        w1r = jnp.pad(w1r, ((0, d_rep_p - d_rep), (0, 0)))

    # Generation-aware batch tile (multiple of 16 for bf16 sublane packing).
    if block_rows is None:
        block_rows = _default_block_rows()
    tm = block_rows if B >= block_rows else max(16, _round_up(B, 16))
    b_pad = _round_up(B, tm)
    if b_pad != B:
        fm = jnp.pad(fm, ((0, b_pad - B), (0, 0)))
        rep = jnp.pad(rep, ((0, b_pad - B), (0, 0)))
    grid = (b_pad // tm,)

    vmem_limit = _vmem_limit_bytes(tm, d_fm_p, d_rep_p, hidden)
    # Megacore batch sharding only pays off with >= 2 batch tiles.
    dim_sem = ("parallel",) if grid[0] > 1 else ("arbitrary",)

    def run(use_single_buffer):
        def resident(shape):
            kw = {"pipeline_mode": pl.Buffered(1)} if use_single_buffer else {}
            return pl.BlockSpec(shape, lambda i: (0,) * len(shape), **kw)

        return pl.pallas_call(
            _mlp_kernel,
            out_shape=jax.ShapeDtypeStruct((1, b_pad), jnp.float32),
            grid_spec=pltpu.PrefetchScalarGridSpec(
                num_scalar_prefetch=0,
                grid=grid,
                in_specs=[
                    pl.BlockSpec((tm, d_fm_p), lambda i: (i, 0)),    # fm tile
                    pl.BlockSpec((tm, d_rep_p), lambda i: (i, 0)),   # rep tile
                    resident((d_fm_p, hidden)),                      # w1_fm bf16
                    resident((d_rep_p, hidden)),                     # w1_rep bf16
                    resident((1, hidden)),                           # b1  f32
                    resident((hidden, hidden)),                      # w2  bf16
                    resident((1, hidden)),                           # b2  f32
                    resident((1, hidden)),                           # w3 row f32
                    resident((1, 1)),                                # b3  f32
                ],
                # Lane-dense output: batch on the lane axis, one row per call.
                out_specs=pl.BlockSpec((1, tm), lambda i: (0, i)),
            ),
            compiler_params=pltpu.CompilerParams(
                dimension_semantics=dim_sem,
                vmem_limit_bytes=vmem_limit,
            ),
        )(fm, rep, w1f, w1r, b1, w2, b2, w3_row, b3)

    try:
        out_row = run(use_single_buffer=True)
    except Exception:
        # Fallback if this JAX build rejects Buffered(1) on pallas_call specs.
        out_row = run(use_single_buffer=False)

    return out_row[0, :B].reshape(B, 1)


def init_params(key, d_fm, d_rep, hidden=512):
    """Mirror nn.Linear init. dense1 weight is pre-split into the feature-map
    slice (d_fm, hidden) and the representation slice (d_rep, hidden); all
    weights are stored (in_features, out_features). Big weights are bf16."""
    k1, k2, k3, k4, k5, k6, k7 = jax.random.split(key, 7)
    d_in = d_fm + d_rep

    def uniform(k, shape, fan_in):
        bound = 1.0 / jnp.sqrt(fan_in)
        return jax.random.uniform(k, shape, jnp.float32, -bound, bound)

    w1f = uniform(k1, (d_fm, hidden), d_in).astype(jnp.bfloat16)
    w1r = uniform(k2, (d_rep, hidden), d_in).astype(jnp.bfloat16)
    b1 = uniform(k3, (1, hidden), d_in)                       # f32
    w2 = uniform(k4, (hidden, hidden), hidden).astype(jnp.bfloat16)
    b2 = uniform(k5, (1, hidden), hidden)                     # f32
    w3_row = uniform(k6, (1, hidden), hidden)                 # f32 row vector
    b3 = uniform(k7, (1, 1), hidden)                          # f32
    return (w1f, w1r, b1, w2, b2, w3_row, b3)


if __name__ == "__main__":
    # Small shapes consistent with the module's forward.
    B, C, H, W = 2, 4, 16, 16
    latent_dim = 32
    d_fm = C * H * W            # 1024
    d_rep = latent_dim          # 32

    key = jax.random.PRNGKey(0)
    k_fm, k_rep, k_par = jax.random.split(key, 3)

    feature_map = jax.random.normal(k_fm, (B, C, H, W), jnp.float32)   # NCHW
    representation = jax.random.normal(k_rep, (B, latent_dim), jnp.float32)
    params = init_params(k_par, d_fm, d_rep)

    out = global_statistics_network(feature_map, representation, params)
    out = jax.block_until_ready(out)
    assert out.shape == (B, 1), out.shape

    # Plain-JAX reference with the same bf16 operands and f32 accumulation
    # (bf16 weights/activations differ from a pure-f32 PyTorch run at ~1e-2).
    w1f, w1r, b1, w2, b2, w3_row, b3 = params
    fm = feature_map.reshape(B, -1).astype(jnp.bfloat16)
    rep = representation.reshape(B, -1).astype(jnp.bfloat16)
    h = (jnp.dot(fm, w1f, preferred_element_type=jnp.float32)
         + jnp.dot(rep, w1r, preferred_element_type=jnp.float32))
    h = jnp.maximum(h + b1, 0.0)
    h = jnp.dot(h.astype(jnp.bfloat16), w2, preferred_element_type=jnp.float32)
    h = jnp.maximum(h + b2, 0.0)
    ref = jnp.sum(h * w3_row, axis=-1, keepdims=True) + b3
    assert jnp.allclose(out, ref, atol=2e-2, rtol=2e-2), (out, ref)

    print("KERNEL_OK")
</pallas_src>

<mosaic_0001>
module attributes {stable_mosaic.version = 11 : i64} {
  func.func @_mlp_kernel(%arg0: i32, %arg1: memref<16x1024xbf16, #tpu.memory_space<vmem>>, %arg2: memref<16x128xbf16, #tpu.memory_space<vmem>>, %arg3: memref<1024x512xbf16, #tpu.memory_space<vmem>>, %arg4: memref<128x512xbf16, #tpu.memory_space<vmem>>, %arg5: memref<1x512xf32, #tpu.memory_space<vmem>>, %arg6: memref<512x512xbf16, #tpu.memory_space<vmem>>, %arg7: memref<1x512xf32, #tpu.memory_space<vmem>>, %arg8: memref<1x512xf32, #tpu.memory_space<vmem>>, %arg9: memref<1x1xf32, #tpu.memory_space<vmem>>, %arg10: memref<1x16xf32, #tpu.memory_space<vmem>>) attributes {dimension_semantics = [#tpu.dimension_semantics<arbitrary>], iteration_bounds = array<i64: 1>, scalar_prefetch = 0 : i64, scratch_operands = 0 : i64, tpu.core_type = #tpu.core_type<tc>, window_params = [{transform_indices = @transform_0, window_bounds = array<i64: 16, 1024>}, {transform_indices = @transform_1, window_bounds = array<i64: 16, 128>}, {pipeline_mode = #tpu.pipeline_mode<synchronous>, transform_indices = @transform_2, window_bounds = array<i64: 1024, 512>}, {pipeline_mode = #tpu.pipeline_mode<synchronous>, transform_indices = @transform_3, window_bounds = array<i64: 128, 512>}, {pipeline_mode = #tpu.pipeline_mode<synchronous>, transform_indices = @transform_4, window_bounds = array<i64: 1, 512>}, {pipeline_mode = #tpu.pipeline_mode<synchronous>, transform_indices = @transform_5, window_bounds = array<i64: 512, 512>}, {pipeline_mode = #tpu.pipeline_mode<synchronous>, transform_indices = @transform_6, window_bounds = array<i64: 1, 512>}, {pipeline_mode = #tpu.pipeline_mode<synchronous>, transform_indices = @transform_7, window_bounds = array<i64: 1, 512>}, {pipeline_mode = #tpu.pipeline_mode<synchronous>, transform_indices = @transform_8, window_bounds = array<i64: 1, 1>}, {transform_indices = @transform_9, window_bounds = array<i64: 1, 16>}]} {
    %c0 = arith.constant 0 : index
    %c0_0 = arith.constant 0 : index
    %0 = vector.load %arg1[%c0, %c0_0] : memref<16x1024xbf16, #tpu.memory_space<vmem>>, vector<16x1024xbf16>
    %c0_1 = arith.constant 0 : index
    %c0_2 = arith.constant 0 : index
    %1 = vector.load %arg3[%c0_1, %c0_2] : memref<1024x512xbf16, #tpu.memory_space<vmem>>, vector<1024x512xbf16>
    %cst = arith.constant dense<0.000000e+00> : vector<16x512xf32>
    %2 = tpu.matmul %0, %1, %cst {dimension_numbers = #tpu.dot_dimension_numbers<[1], [0], [0], [1], [0, 0, 1, 1], [], []>} : vector<16x1024xbf16>, vector<1024x512xbf16>, vector<16x512xf32> -> vector<16x512xf32>
    %c0_3 = arith.constant 0 : index
    %c0_4 = arith.constant 0 : index
    %3 = vector.load %arg2[%c0_3, %c0_4] : memref<16x128xbf16, #tpu.memory_space<vmem>>, vector<16x128xbf16>
    %c0_5 = arith.constant 0 : index
    %c0_6 = arith.constant 0 : index
    %4 = vector.load %arg4[%c0_5, %c0_6] : memref<128x512xbf16, #tpu.memory_space<vmem>>, vector<128x512xbf16>
    %cst_7 = arith.constant dense<0.000000e+00> : vector<16x512xf32>
    %5 = tpu.matmul %3, %4, %cst_7 {dimension_numbers = #tpu.dot_dimension_numbers<[1], [0], [0], [1], [0, 0, 1, 1], [], []>} : vector<16x128xbf16>, vector<128x512xbf16>, vector<16x512xf32> -> vector<16x512xf32>
    %6 = arith.addf %2, %5 : vector<16x512xf32>
    %c0_8 = arith.constant 0 : index
    %c0_9 = arith.constant 0 : index
    %7 = vector.load %arg5[%c0_8, %c0_9] : memref<1x512xf32, #tpu.memory_space<vmem>>, vector<1x512xf32>
    %8 = vector.broadcast %7 : vector<1x512xf32> to vector<16x512xf32>
    %9 = arith.addf %6, %8 : vector<16x512xf32>
    %cst_10 = arith.constant 0.000000e+00 : f32
    %10 = vector.broadcast %cst_10 : f32 to vector<16x512xf32>
    %11 = arith.maximumf %9, %10 : vector<16x512xf32>
    %12 = arith.truncf %11 : vector<16x512xf32> to vector<16x512xbf16>
    %c0_11 = arith.constant 0 : index
    %c0_12 = arith.constant 0 : index
    %13 = vector.load %arg6[%c0_11, %c0_12] : memref<512x512xbf16, #tpu.memory_space<vmem>>, vector<512x512xbf16>
    %cst_13 = arith.constant dense<0.000000e+00> : vector<16x512xf32>
    %14 = tpu.matmul %12, %13, %cst_13 {dimension_numbers = #tpu.dot_dimension_numbers<[1], [0], [0], [1], [0, 0, 1, 1], [], []>} : vector<16x512xbf16>, vector<512x512xbf16>, vector<16x512xf32> -> vector<16x512xf32>
    %c0_14 = arith.constant 0 : index
    %c0_15 = arith.constant 0 : index
    %15 = vector.load %arg7[%c0_14, %c0_15] : memref<1x512xf32, #tpu.memory_space<vmem>>, vector<1x512xf32>
    %16 = vector.broadcast %15 : vector<1x512xf32> to vector<16x512xf32>
    %17 = arith.addf %14, %16 : vector<16x512xf32>
    %cst_16 = arith.constant 0.000000e+00 : f32
    %18 = vector.broadcast %cst_16 : f32 to vector<16x512xf32>
    %19 = arith.maximumf %17, %18 : vector<16x512xf32>
    %c0_17 = arith.constant 0 : index
    %c0_18 = arith.constant 0 : index
    %20 = vector.load %arg8[%c0_17, %c0_18] : memref<1x512xf32, #tpu.memory_space<vmem>>, vector<1x512xf32>
    %21 = vector.broadcast %20 : vector<1x512xf32> to vector<16x512xf32>
    %22 = arith.mulf %19, %21 : vector<16x512xf32>
    %cst_19 = arith.constant dense<0.000000e+00> : vector<16xf32>
    %23 = vector.multi_reduction <add>, %22, %cst_19 [1] : vector<16x512xf32> to vector<16xf32>
    %24 = vector.shape_cast %23 : vector<16xf32> to vector<1x16xf32>
    %c0_20 = arith.constant 0 : index
    %c0_21 = arith.constant 0 : index
    %25 = vector.load %arg9[%c0_20, %c0_21] : memref<1x1xf32, #tpu.memory_space<vmem>>, vector<1x1xf32>
    %26 = vector.broadcast %25 : vector<1x1xf32> to vector<1x16xf32>
    %27 = arith.addf %24, %26 : vector<1x16xf32>
    %c0_22 = arith.constant 0 : index
    %c0_23 = arith.constant 0 : index
    %28 = vector.load %arg10[%c0_22, %c0_23] : memref<1x16xf32, #tpu.memory_space<vmem>>, vector<1x16xf32>
    tpu.vector_store %arg10[%c0_22, %c0_23], %27 {strides = array<i32>} : memref<1x16xf32, #tpu.memory_space<vmem>>, vector<1x16xf32>,
    return
  }
  func.func @transform_0(%arg0: i32) -> (i32, i32) {
    %c0_i32 = arith.constant 0 : i32
    %c0_i32_0 = arith.constant 0 : i32
    return %arg0, %c0_i32 : i32, i32
  }
  func.func @transform_1(%arg0: i32) -> (i32, i32) {
    %c0_i32 = arith.constant 0 : i32
    %c0_i32_0 = arith.constant 0 : i32
    return %arg0, %c0_i32 : i32, i32
  }
  func.func @transform_2(%arg0: i32) -> (i32, i32) {
    %c0_i32 = arith.constant 0 : i32
    %c0_i32_0 = arith.constant 0 : i32
    %c0_i32_1 = arith.constant 0 : i32
    return %c0_i32, %c0_i32_0 : i32, i32
  }
  func.func @transform_3(%arg0: i32) -> (i32, i32) {
    %c0_i32 = arith.constant 0 : i32
    %c0_i32_0 = arith.constant 0 : i32
    %c0_i32_1 = arith.constant 0 : i32
    return %c0_i32, %c0_i32_0 : i32, i32
  }
  func.func @transform_4(%arg0: i32) -> (i32, i32) {
    %c0_i32 = arith.constant 0 : i32
    %c0_i32_0 = arith.constant 0 : i32
    %c0_i32_1 = arith.constant 0 : i32
    return %c0_i32, %c0_i32_0 : i32, i32
  }
  func.func @transform_5(%arg0: i32) -> (i32, i32) {
    %c0_i32 = arith.constant 0 : i32
    %c0_i32_0 = arith.constant 0 : i32
    %c0_i32_1 = arith.constant 0 : i32
    return %c0_i32, %c0_i32_0 : i32, i32
  }
  func.func @transform_6(%arg0: i32) -> (i32, i32) {
    %c0_i32 = arith.constant 0 : i32
    %c0_i32_0 = arith.constant 0 : i32
    %c0_i32_1 = arith.constant 0 : i32
    return %c0_i32, %c0_i32_0 : i32, i32
  }
  func.func @transform_7(%arg0: i32) -> (i32, i32) {
    %c0_i32 = arith.constant 0 : i32
    %c0_i32_0 = arith.constant 0 : i32
    %c0_i32_1 = arith.constant 0 : i32
    return %c0_i32, %c0_i32_0 : i32, i32
  }
  func.func @transform_8(%arg0: i32) -> (i32, i32) {
    %c0_i32 = arith.constant 0 : i32
    %c0_i32_0 = arith.constant 0 : i32
    %c0_i32_1 = arith.constant 0 : i32
    return %c0_i32, %c0_i32_0 : i32, i32
  }
  func.func @transform_9(%arg0: i32) -> (i32, i32) {
    %c0_i32 = arith.constant 0 : i32
    %c0_i32_0 = arith.constant 0 : i32
    return %c0_i32, %arg0 : i32, i32
  }
}

module attributes {stable_mosaic.version = 11 : i64} {
  func.func @_mlp_kernel(%arg0: i32, %arg1: memref<16x1024xbf16, #tpu.memory_space<vmem>>, %arg2: memref<16x128xbf16, #tpu.memory_space<vmem>>, %arg3: memref<1024x512xbf16, #tpu.memory_space<vmem>>, %arg4: memref<128x512xbf16, #tpu.memory_space<vmem>>, %arg5: memref<1x512xf32, #tpu.memory_space<vmem>>, %arg6: memref<512x512xbf16, #tpu.memory_space<vmem>>, %arg7: memref<1x512xf32, #tpu.memory_space<vmem>>, %arg8: memref<1x512xf32, #tpu.memory_space<vmem>>, %arg9: memref<1x1xf32, #tpu.memory_space<vmem>>, %arg10: memref<1x16xf32, #tpu.memory_space<vmem>>) attributes {dimension_semantics = [#tpu.dimension_semantics<arbitrary>], iteration_bounds = array<i64: 1>, scalar_prefetch = 0 : i64, scratch_operands = 0 : i64, tpu.core_type = #tpu.core_type<tc>, window_params = [{transform_indices = @transform_0, window_bounds = array<i64: 16, 1024>}, {transform_indices = @transform_1, window_bounds = array<i64: 16, 128>}, {pipeline_mode = #tpu.pipeline_mode<synchronous>, transform_indices = @transform_2, window_bounds = array<i64: 1024, 512>}, {pipeline_mode = #tpu.pipeline_mode<synchronous>, transform_indices = @transform_3, window_bounds = array<i64: 128, 512>}, {pipeline_mode = #tpu.pipeline_mode<synchronous>, transform_indices = @transform_4, window_bounds = array<i64: 1, 512>}, {pipeline_mode = #tpu.pipeline_mode<synchronous>, transform_indices = @transform_5, window_bounds = array<i64: 512, 512>}, {pipeline_mode = #tpu.pipeline_mode<synchronous>, transform_indices = @transform_6, window_bounds = array<i64: 1, 512>}, {pipeline_mode = #tpu.pipeline_mode<synchronous>, transform_indices = @transform_7, window_bounds = array<i64: 1, 512>}, {pipeline_mode = #tpu.pipeline_mode<synchronous>, transform_indices = @transform_8, window_bounds = array<i64: 1, 1>}, {transform_indices = @transform_9, window_bounds = array<i64: 1, 16>}]} {
    %c0 = arith.constant 0 : index
    %c0_0 = arith.constant 0 : index
    %0 = vector.load %arg1[%c0, %c0_0] : memref<16x1024xbf16, #tpu.memory_space<vmem>>, vector<16x1024xbf16>
    %c0_1 = arith.constant 0 : index
    %c0_2 = arith.constant 0 : index
    %1 = vector.load %arg3[%c0_1, %c0_2] : memref<1024x512xbf16, #tpu.memory_space<vmem>>, vector<1024x512xbf16>
    %cst = arith.constant dense<0.000000e+00> : vector<16x512xf32>
    %2 = tpu.matmul %0, %1, %cst {dimension_numbers = #tpu.dot_dimension_numbers<[1], [0], [0], [1], [0, 0, 1, 1], [], []>} : vector<16x1024xbf16>, vector<1024x512xbf16>, vector<16x512xf32> -> vector<16x512xf32>
    %c0_3 = arith.constant 0 : index
    %c0_4 = arith.constant 0 : index
    %3 = vector.load %arg2[%c0_3, %c0_4] : memref<16x128xbf16, #tpu.memory_space<vmem>>, vector<16x128xbf16>
    %c0_5 = arith.constant 0 : index
    %c0_6 = arith.constant 0 : index
    %4 = vector.load %arg4[%c0_5, %c0_6] : memref<128x512xbf16, #tpu.memory_space<vmem>>, vector<128x512xbf16>
    %cst_7 = arith.constant dense<0.000000e+00> : vector<16x512xf32>
    %5 = tpu.matmul %3, %4, %cst_7 {dimension_numbers = #tpu.dot_dimension_numbers<[1], [0], [0], [1], [0, 0, 1, 1], [], []>} : vector<16x128xbf16>, vector<128x512xbf16>, vector<16x512xf32> -> vector<16x512xf32>
    %6 = arith.addf %2, %5 : vector<16x512xf32>
    %c0_8 = arith.constant 0 : index
    %c0_9 = arith.constant 0 : index
    %7 = vector.load %arg5[%c0_8, %c0_9] : memref<1x512xf32, #tpu.memory_space<vmem>>, vector<1x512xf32>
    %8 = vector.broadcast %7 : vector<1x512xf32> to vector<16x512xf32>
    %9 = arith.addf %6, %8 : vector<16x512xf32>
    %cst_10 = arith.constant 0.000000e+00 : f32
    %10 = vector.broadcast %cst_10 : f32 to vector<16x512xf32>
    %11 = arith.maximumf %9, %10 : vector<16x512xf32>
    %12 = arith.truncf %11 : vector<16x512xf32> to vector<16x512xbf16>
    %c0_11 = arith.constant 0 : index
    %c0_12 = arith.constant 0 : index
    %13 = vector.load %arg6[%c0_11, %c0_12] : memref<512x512xbf16, #tpu.memory_space<vmem>>, vector<512x512xbf16>
    %cst_13 = arith.constant dense<0.000000e+00> : vector<16x512xf32>
    %14 = tpu.matmul %12, %13, %cst_13 {dimension_numbers = #tpu.dot_dimension_numbers<[1], [0], [0], [1], [0, 0, 1, 1], [], []>} : vector<16x512xbf16>, vector<512x512xbf16>, vector<16x512xf32> -> vector<16x512xf32>
    %c0_14 = arith.constant 0 : index
    %c0_15 = arith.constant 0 : index
    %15 = vector.load %arg7[%c0_14, %c0_15] : memref<1x512xf32, #tpu.memory_space<vmem>>, vector<1x512xf32>
    %16 = vector.broadcast %15 : vector<1x512xf32> to vector<16x512xf32>
    %17 = arith.addf %14, %16 : vector<16x512xf32>
    %cst_16 = arith.constant 0.000000e+00 : f32
    %18 = vector.broadcast %cst_16 : f32 to vector<16x512xf32>
    %19 = arith.maximumf %17, %18 : vector<16x512xf32>
    %c0_17 = arith.constant 0 : index
    %c0_18 = arith.constant 0 : index
    %20 = vector.load %arg8[%c0_17, %c0_18] : memref<1x512xf32, #tpu.memory_space<vmem>>, vector<1x512xf32>
    %21 = vector.broadcast %20 : vector<1x512xf32> to vector<16x512xf32>
    %22 = arith.mulf %19, %21 : vector<16x512xf32>
    %cst_19 = arith.constant dense<0.000000e+00> : vector<16xf32>
    %23 = vector.multi_reduction <add>, %22, %cst_19 [1] : vector<16x512xf32> to vector<16xf32>
    %24 = vector.shape_cast %23 : vector<16xf32> to vector<1x16xf32>
    %c0_20 = arith.constant 0 : index
    %c0_21 = arith.constant 0 : index
    %25 = vector.load %arg9[%c0_20, %c0_21] : memref<1x1xf32, #tpu.memory_space<vmem>>, vector<1x1xf32>
    %26 = vector.broadcast %25 : vector<1x1xf32> to vector<1x16xf32>
    %27 = arith.addf %24, %26 : vector<1x16xf32>
    %c0_22 = arith.constant 0 : index
    %c0_23 = arith.constant 0 : index
    %28 = vector.load %arg10[%c0_22, %c0_23] : memref<1x16xf32, #tpu.memory_space<vmem>>, vector<1x16xf32>
    tpu.vector_store %arg10[%c0_22, %c0_23], %27 {strides = array<i32>} : memref<1x16xf32, #tpu.memory_space<vmem>>, vector<1x16xf32>,
    return
  }
  func.func @transform_0(%arg0: i32) -> (i32, i32) {
    %c0_i32 = arith.constant 0 : i32
    %c0_i32_0 = arith.constant 0 : i32
    return %arg0, %c0_i32 : i32, i32
  }
  func.func @transform_1(%arg0: i32) -> (i32, i32) {
    %c0_i32 = arith.constant 0 : i32
    %c0_i32_0 = arith.constant 0 : i32
    return %arg0, %c0_i32 : i32, i32
  }
  func.func @transform_2(%arg0: i32) -> (i32, i32) {
    %c0_i32 = arith.constant 0 : i32
    %c0_i32_0 = arith.constant 0 : i32
    %c0_i32_1 = arith.constant 0 : i32
    return %c0_i32, %c0_i32_0 : i32, i32
  }
  func.func @transform_3(%arg0: i32) -> (i32, i32) {
    %c0_i32 = arith.constant 0 : i32
    %c0_i32_0 = arith.constant 0 : i32
    %c0_i32_1 = arith.constant 0 : i32
    return %c0_i32, %c0_i32_0 : i32, i32
  }
  func.func @transform_4(%arg0: i32) -> (i32, i32) {
    %c0_i32 = arith.constant 0 : i32
    %c0_i32_0 = arith.constant 0 : i32
    %c0_i32_1 = arith.constant 0 : i32
    return %c0_i32, %c0_i32_0 : i32, i32
  }
  func.func @transform_5(%arg0: i32) -> (i32, i32) {
    %c0_i32 = arith.constant 0 : i32
    %c0_i32_0 = arith.constant 0 : i32
    %c0_i32_1 = arith.constant 0 : i32
    return %c0_i32, %c0_i32_0 : i32, i32
  }
  func.func @transform_6(%arg0: i32) -> (i32, i32) {
    %c0_i32 = arith.constant 0 : i32
    %c0_i32_0 = arith.constant 0 : i32
    %c0_i32_1 = arith.constant 0 : i32
    return %c0_i32, %c0_i32_0 : i32, i32
  }
  func.func @transform_7(%arg0: i32) -> (i32, i32) {
    %c0_i32 = arith.constant 0 : i32
    %c0_i32_0 = arith.constant 0 : i32
    %c0_i32_1 = arith.constant 0 : i32
    return %c0_i32, %c0_i32_0 : i32, i32
  }
  func.func @transform_8(%arg0: i32) -> (i32, i32) {
    %c0_i32 = arith.constant 0 : i32
    %c0_i32_0 = arith.constant 0 : i32
    %c0_i32_1 = arith.constant 0 : i32
    return %c0_i32, %c0_i32_0 : i32, i32
  }
  func.func @transform_9(%arg0: i32) -> (i32, i32) {
    %c0_i32 = arith.constant 0 : i32
    %c0_i32_0 = arith.constant 0 : i32
    return %c0_i32, %arg0 : i32, i32
  }
}

</mosaic_0001>

<bundles_post_ra>
// kernel: tpu_custom_call.1
= control target key start
LH: loop header
LB: loop body
LE: loop exit
PB: predicated region body
PF: predicated region fallthrough
CT: control target
= control target key end

     0   :  { %s4885_s0 = inlined_call_operand.hbm [shape: bf16[16,1024], index: 0, kind: input, shape index: {}]   ;;  %s4886_s1 = inlined_call_operand.hbm [shape: bf16[16,128], index: 1, kind: input, shape index: {}]   ;;  %s4887_s2 = inlined_call_operand.hbm [shape: bf16[1024,512], index: 2, kind: input, shape index: {}]   ;;  %s4888_s3 = inlined_call_operand.hbm [shape: bf16[128,512], index: 3, kind: input, shape index: {}]   ;;  %s4889_s4 = inlined_call_operand.vmem [shape: f32[1,512], index: 4, kind: input, shape index: {}]   ;;  %s4890_s5 = inlined_call_operand.hbm [shape: bf16[512,512], index: 5, kind: input, shape index: {}]   ;;  %s4891_s6 = inlined_call_operand.vmem [shape: f32[1,512], index: 6, kind: input, shape index: {}]   ;;  %s4892_s7 = inlined_call_operand.vmem [shape: f32[1,512], index: 7, kind: input, shape index: {}]   ;;  %s4893_s8 = inlined_call_operand.<no memory space> [shape: f32[1,1], index: 8, kind: input, shape index: {}]   ;;  %s4894_s9 = inlined_call_operand.hbm [shape: f32[1,16], index: 9, kind: output, shape index: {}]  }
   0x1   :  { %v14_v0 = vstv %s4893_s8 }
   0x2   :  { %15 = vst [vmem:[#allocation2] sm:$0x1] %v14_v0 }
   0x3   :  { %16 = vsyncpa [#allocation4], 0 }
   0x4   :  { %17 = vsyncpa [#allocation7], 0 }
   0x5   :  { %18 = vsyncpa [#allocation10], 0 }
   0x6   :  { %19 = vsyncpa [#allocation5], 0  ;;  %s4670_s11 = smov [#allocation6]   ;;  %s4530_s15 = scalar_lea.hbm %s4886_s1, 128 }
   0x7   :  { %s37_s12 = sshll.u32 %s4670_s11, 4  ;;  %p4531_p0 = scmp.ne.s32.totalorder %s4886_s1, %s4530_s15  ;;  %s38_s12 = int_to_ptr.vmem [resolvable:$true] %s37_s12 }
   0x8   :  { %p4534_p1 = scmp.lt.u32.totalorder %s4530_s15, %s4886_s1 }
   0xa   :  { %p4536_p2 = pnand %p4534_p1, %p4531_p0 }
   0xc   :  { %4539 = shalt.err (!%p4536_p2)
}
   0xd   :  { %s4540_s8 = scalar_lea.vmem %s38_s12, 128  ;;  %p4545_p4 = scmp.lt.s32.totalorder %s38_s12, %s38_s12 }
   0xe   :  { %p4541_p3 = scmp.ne.s32.totalorder %s38_s12, %s4540_s8  ;;  %p4546_p5 = scmp.lt.s32.totalorder %s4540_s8, %s4540_s8 }
  0x10   :  { %p4547_p6 = por %p4546_p5, %p4545_p4 }
  0x12   :  { %p4548_p7 = pnand %p4547_p6, %p4541_p3 }
  0x14   :  { %4551 = shalt.err (!%p4548_p7)
}
  0x15   :  { %s4671_s20 = smov 64   ;;  %s4672_s21 = smov 4  }
  0x16   :  { %43 = dma.hbm_to_vmem [thread:$0]  %s4886_s1, 128, %s38_s12, [#allocation7], %s4671_s20, %s4671_s20, %s4672_s21  }
  0x17   :  { %s4673_s24 = smov [#allocation9]   ;;  %s4674_s26 = smov [#allocation3]  }
  0x18   :  { %s61_s25 = sshll.u32 %s4673_s24, 4  ;;  %s25_s27 = sshll.u32 %s4674_s26, 4  ;;  %s62_s25 = int_to_ptr.vmem [resolvable:$true] %s61_s25  ;;  %s26_s27 = int_to_ptr.vmem [resolvable:$true] %s25_s27 }
  0x19   :  { %s4552_s30 = scalar_lea.hbm %s4888_s3, 4096 }
  0x1a   :  { %p4553_p8 = scmp.ne.s32.totalorder %s4888_s3, %s4552_s30  ;;  %p4556_p9 = scmp.lt.u32.totalorder %s4552_s30, %s4888_s3 }
  0x1c   :  { %p4558_p10 = pnand %p4556_p9, %p4553_p8 }
  0x1e   :  { %4561 = shalt.err (!%p4558_p10)
}
  0x1f   :  { %s4562_s1 = scalar_lea.vmem %s62_s25, 4096  ;;  %p4567_p12 = scmp.lt.s32.totalorder %s62_s25, %s62_s25 }
  0x20   :  { %p4563_p11 = scmp.ne.s32.totalorder %s62_s25, %s4562_s1  ;;  %p4568_p13 = scmp.lt.s32.totalorder %s4562_s1, %s4562_s1 }
  0x22   :  { %p4569_p0 = por %p4568_p13, %p4567_p12 }
  0x24   :  { %p4570_p1 = pnand %p4569_p0, %p4563_p11 }
  0x26   :  { %4573 = shalt.err (!%p4570_p1)
}
  0x27   :  { %s4675_s12 = smov 256   ;;  %s4676_s15 = smov 16  }
  0x28   :  { %67 = dma.hbm_to_vmem [thread:$0]  %s4888_s3, 4096, %s62_s25, [#allocation10], %s4675_s12, %s4675_s12, %s4676_s15  }
  0x29   :  { %s4574_s8 = scalar_lea.hbm %s4885_s0, 1024 }
  0x2a   :  { %p4575_p2 = scmp.ne.s32.totalorder %s4885_s0, %s4574_s8  ;;  %p4578_p3 = scmp.lt.u32.totalorder %s4574_s8, %s4885_s0 }
  0x2c   :  { %p4580_p4 = pnand %p4578_p3, %p4575_p2 }
  0x2e   :  { %4583 = shalt.err (!%p4580_p4)
}
  0x2f   :  { %s4584_s24 = scalar_lea.vmem %s26_s27, 1024  ;;  %p4589_p6 = scmp.lt.s32.totalorder %s26_s27, %s26_s27 }
  0x30   :  { %p4585_p5 = scmp.ne.s32.totalorder %s26_s27, %s4584_s24  ;;  %p4590_p7 = scmp.lt.s32.totalorder %s4584_s24, %s4584_s24 }
  0x32   :  { %p4591_p8 = por %p4590_p7, %p4589_p6 }
  0x34   :  { %p4592_p9 = pnand %p4591_p8, %p4585_p5 }
  0x36   :  { %4595 = shalt.err (!%p4592_p9)
}
  0x37   :  { %s4677_s3 = smov 512   ;;  %s4678_s25 = smov 32  }
  0x38   :  { %31 = dma.hbm_to_vmem [thread:$0]  %s4885_s0, 1024, %s26_s27, [#allocation4], %s4677_s3, %s4677_s3, %s4678_s25  }
  0x39   :  { %s4679_s29 = smov [#allocation8]   ;;  %s4680_s10 = smov [#allocation11]  }
  0x3a   :  { %s49_s30 = sshll.u32 %s4679_s29, 4  ;;  %s75_s11 = sshll.u32 %s4680_s10, 4  ;;  %s50_s30 = int_to_ptr.vmem [resolvable:$true] %s49_s30  ;;  %s76_s11 = int_to_ptr.vmem [resolvable:$true] %s75_s11 }
  0x3b   :  { %s4596_s1 = scalar_lea.hbm %s4887_s2, 32768 }
  0x3c   :  { %p4597_p10 = scmp.ne.s32.totalorder %s4887_s2, %s4596_s1  ;;  %p4600_p11 = scmp.lt.u32.totalorder %s4596_s1, %s4887_s2 }
  0x3e   :  { %p4602_p12 = pnand %p4600_p11, %p4597_p10 }
  0x40   :  { %4605 = shalt.err (!%p4602_p12)
}
  0x41   :  { %s4606_s0 = scalar_lea.vmem %s50_s30, 32768  ;;  %p4611_p0 = scmp.lt.s32.totalorder %s50_s30, %s50_s30 }
  0x42   :  { %p4607_p13 = scmp.ne.s32.totalorder %s50_s30, %s4606_s0  ;;  %p4612_p1 = scmp.lt.s32.totalorder %s4606_s0, %s4606_s0 }
  0x44   :  { %p4613_p2 = por %p4612_p1, %p4611_p0 }
  0x46   :  { %p4614_p3 = pnand %p4613_p2, %p4607_p13 }
  0x48   :  { %4617 = shalt.err (!%p4614_p3)
}
  0x49   :  { %55 = dma.hbm_to_vmem [thread:$0]  %s4887_s2, 32768, %s50_s30, [#allocation7], %s4675_s12, %s4675_s12, %s4676_s15  }
  0x4a   :  { %s4618_s22 = scalar_lea.hbm %s4890_s5, 16384 }
  0x4b   :  { %p4619_p4 = scmp.ne.s32.totalorder %s4890_s5, %s4618_s22  ;;  %p4622_p5 = scmp.lt.u32.totalorder %s4618_s22, %s4890_s5 }
  0x4d   :  { %p4624_p6 = pnand %p4622_p5, %p4619_p4 }
  0x4f   :  { %4627 = shalt.err (!%p4624_p6)
}
  0x50   :  { %s4628_s26 = scalar_lea.vmem %s76_s11, 16384  ;;  %p4633_p8 = scmp.lt.s32.totalorder %s76_s11, %s76_s11 }
  0x51   :  { %p4629_p7 = scmp.ne.s32.totalorder %s76_s11, %s4628_s26  ;;  %p4634_p9 = scmp.lt.s32.totalorder %s4628_s26, %s4628_s26 }
  0x53   :  { %p4635_p10 = por %p4634_p9, %p4633_p8 }
  0x55   :  { %p4636_p11 = pnand %p4635_p10, %p4629_p7 }
  0x57   :  { %4639 = shalt.err (!%p4636_p11)
}
  0x58   :  { %81 = dma.hbm_to_vmem [thread:$0]  %s4890_s5, 16384, %s76_s11, [#allocation10], %s4675_s12, %s4675_s12, %s4676_s15  }
  0x59   :  { %4662 = dma.done.wait [#allocation4], 1024  }
  0x5a   :  { %4663 = vsyncadd [#allocation4], 4294966272 }
  0x5b   :  { %4664 = dma.done.wait [#allocation7], 32896  }
  0x5c   :  { %4665 = vsyncadd [#allocation7], 4294934400 }
  0x5d   :  { %4666 = dma.done.wait [#allocation10], 20480  }
  0x5e   :  { %4667 = vsyncadd [#allocation10], 4294946816  ;;  %v4681_v1 = vmov 0   ;;  %v3905_v2 = vld [vmem:[#allocation9 + $0x4] ss:$16 sps:$4 sm:$0xff]   ;;  %v3959_v37 = vld [vmem:[#allocation6] sm:$0xff]  }
  0x5f   :  { %600 = vmatprep.mubr.bf16.mxu0 %v4681_v1  ;;  %643 = vmatprep.mubr.bf16.mxu1 %v4681_v1  ;;  %v3907_v3 = vld [vmem:[#allocation9 + $0xc] ss:$16 sps:$4 sm:$0xff]   ;;  %v3909_v4 = vld [vmem:[#allocation9] ss:$16 sps:$4 sm:$0xff]   ;;  %v3910_v5 = vld [vmem:[#allocation9 + $0x8] ss:$16 sps:$4 sm:$0xff]  }
  0x60   :  { %3903 = vset.pattern.permute.xlu1 %v4681_v1  ;;  %3904 = vset.pattern.permute.xlu0 %v4681_v1  ;;  %v3911_v6 = vld [vmem:[#allocation9 + $0x24] ss:$16 sps:$4 sm:$0xff]   ;;  %v3913_v7 = vld [vmem:[#allocation9 + $0x2c] ss:$16 sps:$4 sm:$0xff]   ;;  %v3915_v8 = vld [vmem:[#allocation9 + $0x20] ss:$16 sps:$4 sm:$0xff]  }
  0x61   :  { %568 = vmatprep.subr.bf16.mxu0 %v3905_v2  ;;  %611 = vmatprep.subr.bf16.mxu1 %v3907_v3  ;;  %v3916_v9 = vld [vmem:[#allocation9 + $0x28] ss:$16 sps:$4 sm:$0xff]   ;;  %v3917_v10 = vld [vmem:[#allocation9 + $0x44] ss:$16 sps:$4 sm:$0xff]   ;;  %v3919_v11 = vld [vmem:[#allocation9 + $0x4c] ss:$16 sps:$4 sm:$0xff]  }
  0x62   :  { %569 = vmatpush1.bf16.msra.mxu0 %v3909_v4  ;;  %612 = vmatpush1.bf16.msra.mxu1 %v3910_v5  ;;  %v3921_v12 = vld [vmem:[#allocation9 + $0x40] ss:$16 sps:$4 sm:$0xff]   ;;  %v3922_v13 = vld [vmem:[#allocation9 + $0x48] ss:$16 sps:$4 sm:$0xff]   ;;  %v3923_v14 = vld [vmem:[#allocation9 + $0x64] ss:$16 sps:$4 sm:$0xff]  }
  0x63   :  { %570 = vmatprep.subr.bf16.mxu0 %v3911_v6  ;;  %613 = vmatprep.subr.bf16.mxu1 %v3913_v7  ;;  %v3925_v15 = vld [vmem:[#allocation9 + $0x6c] ss:$16 sps:$4 sm:$0xff]   ;;  %v3927_v16 = vld [vmem:[#allocation9 + $0x60] ss:$16 sps:$4 sm:$0xff]   ;;  %v3928_v17 = vld [vmem:[#allocation9 + $0x68] ss:$16 sps:$4 sm:$0xff]  }
  0x64   :  { %v3929_v18 = vld [vmem:[#allocation9 + $0x84] ss:$16 sps:$4 sm:$0xff]   ;;  %v3931_v19 = vld [vmem:[#allocation9 + $0x8c] ss:$16 sps:$4 sm:$0xff]   ;;  %v3933_v20 = vld [vmem:[#allocation9 + $0x80] ss:$16 sps:$4 sm:$0xff]  }
  0x65   :  { %v3934_v21 = vld [vmem:[#allocation9 + $0x88] ss:$16 sps:$4 sm:$0xff]   ;;  %v3935_v22 = vld [vmem:[#allocation9 + $0xa4] ss:$16 sps:$4 sm:$0xff]   ;;  %v3937_v23 = vld [vmem:[#allocation9 + $0xac] ss:$16 sps:$4 sm:$0xff]  }
  0x66   :  { %571 = vmatpush1.bf16.msra.mxu0 %v3915_v8  ;;  %614 = vmatpush1.bf16.msra.mxu1 %v3916_v9  ;;  %v3939_v24 = vld [vmem:[#allocation9 + $0xa0] ss:$16 sps:$4 sm:$0xff]   ;;  %v3940_v25 = vld [vmem:[#allocation9 + $0xa8] ss:$16 sps:$4 sm:$0xff]   ;;  %v3941_v26 = vld [vmem:[#allocation9 + $0xc4] ss:$16 sps:$4 sm:$0xff]  }
  0x67   :  { %572 = vmatprep.subr.bf16.mxu0 %v3917_v10  ;;  %615 = vmatprep.subr.bf16.mxu1 %v3919_v11  ;;  %v3943_v27 = vld [vmem:[#allocation9 + $0xcc] ss:$16 sps:$4 sm:$0xff]   ;;  %v3945_v28 = vld [vmem:[#allocation9 + $0xc0] ss:$16 sps:$4 sm:$0xff]   ;;  %v3946_v29 = vld [vmem:[#allocation9 + $0xc8] ss:$16 sps:$4 sm:$0xff]  }
  0x68   :  { %v3947_v30 = vld [vmem:[#allocation9 + $0xe4] ss:$16 sps:$4 sm:$0xff]   ;;  %v3949_v31 = vld [vmem:[#allocation9 + $0xec] ss:$16 sps:$4 sm:$0xff]   ;;  %v3951_v32 = vld [vmem:[#allocation9 + $0xe0] ss:$16 sps:$4 sm:$0xff]  }
  0x69   :  { %v3952_v33 = vld [vmem:[#allocation9 + $0xe8] ss:$16 sps:$4 sm:$0xff]   ;;  %v3955_v34 = vld [vmem:[#allocation8 + $0x4] ss:$16 sps:$4 sm:$0xff]   ;;  %v3958_v35 = vld [vmem:[#allocation8 + $0xc] ss:$16 sps:$4 sm:$0xff]  }
  0x6a   :  { %573 = vmatpush1.bf16.msra.mxu0 %v3921_v12  ;;  %616 = vmatpush1.bf16.msra.mxu1 %v3922_v13  ;;  %v3953_v36 = vld [vmem:[#allocation8] ss:$16 sps:$4 sm:$0xff]   ;;  %v3956_v38 = vld [vmem:[#allocation8 + $0x8] ss:$16 sps:$4 sm:$0xff]   ;;  %v3962_v39 = vld [vmem:[#allocation8 + $0x24] ss:$16 sps:$4 sm:$0xff]  }
  0x6b   :  { %574 = vmatprep.subr.bf16.mxu0 %v3923_v14  ;;  %617 = vmatprep.subr.bf16.mxu1 %v3925_v15  ;;  %v3965_v40 = vld [vmem:[#allocation8 + $0x2c] ss:$16 sps:$4 sm:$0xff]   ;;  %v3960_v41 = vld [vmem:[#allocation8 + $0x20] ss:$16 sps:$4 sm:$0xff]   ;;  %v3963_v42 = vld [vmem:[#allocation8 + $0x28] ss:$16 sps:$4 sm:$0xff]  }
  0x6c   :  { %v3968_v43 = vld [vmem:[#allocation8 + $0x44] ss:$16 sps:$4 sm:$0xff]   ;;  %v3971_v44 = vld [vmem:[#allocation8 + $0x4c] ss:$16 sps:$4 sm:$0xff]   ;;  %v3966_v45 = vld [vmem:[#allocation8 + $0x40] ss:$16 sps:$4 sm:$0xff]  }
  0x6d   :  { %v3969_v46 = vld [vmem:[#allocation8 + $0x48] ss:$16 sps:$4 sm:$0xff]   ;;  %v3974_v47 = vld [vmem:[#allocation8 + $0x64] ss:$16 sps:$4 sm:$0xff]   ;;  %v3977_v48 = vld [vmem:[#allocation8 + $0x6c] ss:$16 sps:$4 sm:$0xff]  }
  0x6e   :  { %575 = vmatpush1.bf16.msra.mxu0 %v3927_v16  ;;  %618 = vmatpush1.bf16.msra.mxu1 %v3928_v17  ;;  %v3972_v49 = vld [vmem:[#allocation8 + $0x60] ss:$16 sps:$4 sm:$0xff]   ;;  %v3975_v50 = vld [vmem:[#allocation8 + $0x68] ss:$16 sps:$4 sm:$0xff]   ;;  %v3980_v51 = vld [vmem:[#allocation8 + $0x84] ss:$16 sps:$4 sm:$0xff]  }
  0x6f   :  { %576 = vmatprep.subr.bf16.mxu0 %v3929_v18  ;;  %619 = vmatprep.subr.bf16.mxu1 %v3931_v19  ;;  %v3983_v52 = vld [vmem:[#allocation8 + $0x8c] ss:$16 sps:$4 sm:$0xff]   ;;  %v3978_v53 = vld [vmem:[#allocation8 + $0x80] ss:$16 sps:$4 sm:$0xff]   ;;  %v3981_v54 = vld [vmem:[#allocation8 + $0x88] ss:$16 sps:$4 sm:$0xff]  }
  0x70   :  { %v3986_v55 = vld [vmem:[#allocation8 + $0xa4] ss:$16 sps:$4 sm:$0xff]   ;;  %v3989_v56 = vld [vmem:[#allocation8 + $0xac] ss:$16 sps:$4 sm:$0xff]   ;;  %v3984_v57 = vld [vmem:[#allocation8 + $0xa0] ss:$16 sps:$4 sm:$0xff]  }
  0x71   :  { %v3987_v58 = vld [vmem:[#allocation8 + $0xa8] ss:$16 sps:$4 sm:$0xff]   ;;  %v3992_v59 = vld [vmem:[#allocation8 + $0xc4] ss:$16 sps:$4 sm:$0xff]   ;;  %v3995_v60 = vld [vmem:[#allocation8 + $0xcc] ss:$16 sps:$4 sm:$0xff]  }
  0x72   :  { %577 = vmatpush1.bf16.msra.mxu0 %v3933_v20  ;;  %620 = vmatpush1.bf16.msra.mxu1 %v3934_v21  ;;  %v3990_v61 = vld [vmem:[#allocation8 + $0xc0] ss:$16 sps:$4 sm:$0xff]   ;;  %v3993_v62 = vld [vmem:[#allocation8 + $0xc8] ss:$16 sps:$4 sm:$0xff]   ;;  %v3998_v63 = vld [vmem:[#allocation8 + $0xe4] ss:$16 sps:$4 sm:$0xff]  }
  0x73   :  { %578 = vmatprep.subr.bf16.mxu0 %v3935_v22  ;;  %621 = vmatprep.subr.bf16.mxu1 %v3937_v23  ;;  %v4001_v0 = vld [vmem:[#allocation8 + $0xec] ss:$16 sps:$4 sm:$0xff]   ;;  %v3996_v1 = vld [vmem:[#allocation8 + $0xe0] ss:$16 sps:$4 sm:$0xff]   ;;  %v3999_v2 = vld [vmem:[#allocation8 + $0xe8] ss:$16 sps:$4 sm:$0xff]  }
  0x74   :  { %v4004_v3 = vld [vmem:[#allocation8 + $0x104] ss:$16 sps:$4 sm:$0xff]   ;;  %v4007_v4 = vld [vmem:[#allocation8 + $0x10c] ss:$16 sps:$4 sm:$0xff]   ;;  %v4002_v5 = vld [vmem:[#allocation8 + $0x100] ss:$16 sps:$4 sm:$0xff]  }
  0x75   :  { %v4005_v6 = vld [vmem:[#allocation8 + $0x108] ss:$16 sps:$4 sm:$0xff]   ;;  %v4010_v7 = vld [vmem:[#allocation8 + $0x124] ss:$16 sps:$4 sm:$0xff]   ;;  %v4013_v8 = vld [vmem:[#allocation8 + $0x12c] ss:$16 sps:$4 sm:$0xff]  }
  0x76   :  { %579 = vmatpush1.bf16.msra.mxu0 %v3939_v24  ;;  %622 = vmatpush1.bf16.msra.mxu1 %v3940_v25  ;;  %v104_v9 = vld [vmem:[#allocation3] sm:$0xff]  ;;  %v4008_v12 = vld [vmem:[#allocation8 + $0x120] ss:$16 sps:$4 sm:$0xff]   ;;  %v4016_v14 = vld [vmem:[#allocation8 + $0x144] ss:$16 sps:$4 sm:$0xff]   ;;  %vm3395_vm0 = vcmask 130112  }
  0x77   :  { %580 = vmatprep.subr.bf16.mxu0 %v3941_v26  ;;  %623 = vmatprep.subr.bf16.mxu1 %v3943_v27  ;;  %v108_v10 = vld [vmem:[#allocation3 + $0x20] sm:$0xff]  ;;  %v4014_v16 = vld [vmem:[#allocation8 + $0x140] ss:$16 sps:$4 sm:$0xff]   ;;  %v4022_v18 = vld [vmem:[#allocation8 + $0x164] ss:$16 sps:$4 sm:$0xff]   ;;  %vm3398_vm1 = vcmask 122880  }
  0x78   :  { %v3451_v11 = vcombine.high %v104_v9, %v108_v10  ;;  %v4011_v13 = vld [vmem:[#allocation8 + $0x128] ss:$16 sps:$4 sm:$0xff]   ;;  %v4019_v15 = vld [vmem:[#allocation8 + $0x14c] ss:$16 sps:$4 sm:$0xff]   ;;  %v4020_v20 = vld [vmem:[#allocation8 + $0x160] ss:$16 sps:$4 sm:$0xff]  }
  0x79   :  { %v4017_v17 = vld [vmem:[#allocation8 + $0x148] ss:$16 sps:$4 sm:$0xff]   ;;  %v4025_v19 = vld [vmem:[#allocation8 + $0x16c] ss:$16 sps:$4 sm:$0xff]   ;;  %v4028_v22 = vld [vmem:[#allocation8 + $0x184] ss:$16 sps:$4 sm:$0xff]  }
  0x7a   :  { %581 = vmatpush1.bf16.msra.mxu0 %v3945_v28  ;;  %624 = vmatpush1.bf16.msra.mxu1 %v3946_v29  ;;  %v4023_v21 = vld [vmem:[#allocation8 + $0x168] ss:$16 sps:$4 sm:$0xff]   ;;  %v4031_v23 = vld [vmem:[#allocation8 + $0x18c] ss:$16 sps:$4 sm:$0xff]   ;;  %v4026_v24 = vld [vmem:[#allocation8 + $0x180] ss:$16 sps:$4 sm:$0xff]  }
  0x7b   :  { %582 = vmatprep.subr.bf16.mxu0 %v3947_v30  ;;  %625 = vmatprep.subr.bf16.mxu1 %v3949_v31  ;;  %v4029_v25 = vld [vmem:[#allocation8 + $0x188] ss:$16 sps:$4 sm:$0xff]   ;;  %v4034_v26 = vld [vmem:[#allocation8 + $0x1a4] ss:$16 sps:$4 sm:$0xff]   ;;  %v4037_v27 = vld [vmem:[#allocation8 + $0x1ac] ss:$16 sps:$4 sm:$0xff]  }
  0x7c   :  { %v4032_v28 = vld [vmem:[#allocation8 + $0x1a0] ss:$16 sps:$4 sm:$0xff]   ;;  %v4035_v29 = vld [vmem:[#allocation8 + $0x1a8] ss:$16 sps:$4 sm:$0xff]   ;;  %v4040_v30 = vld [vmem:[#allocation8 + $0x1c4] ss:$16 sps:$4 sm:$0xff]  }
  0x7d   :  { %v4043_v31 = vld [vmem:[#allocation8 + $0x1cc] ss:$16 sps:$4 sm:$0xff]  }
  0x7e   :  { %583 = vmatpush1.bf16.msra.mxu0 %v3951_v32  ;;  %626 = vmatpush1.bf16.msra.mxu1 %v3952_v33  ;;  %v4038_v32 = vld [vmem:[#allocation8 + $0x1c0] ss:$16 sps:$4 sm:$0xff]   ;;  %v4041_v33 = vld [vmem:[#allocation8 + $0x1c8] ss:$16 sps:$4 sm:$0xff]  }
  0x7f   :  { %1974 = vmatprep.subr.bf16.mxu0 %v3955_v34  ;;  %2146 = vmatprep.subr.bf16.mxu1 %v3958_v35  ;;  %v4046_v34 = vld [vmem:[#allocation8 + $0x1e4] ss:$16 sps:$4 sm:$0xff]   ;;  %v4049_v35 = vld [vmem:[#allocation8 + $0x1ec] ss:$16 sps:$4 sm:$0xff]  }
  0x81   :  { %601 = vmatmul.mubr.bf16.vlgmr.msra.gmra.mrb[0].mxu0 %v3959_v37  ;;  %644 = vmatmul.mubr.bf16.vlgmr.msra.gmra.mrb[0].mxu1 %v3959_v37  ;;  %v4047_v37 = vld [vmem:[#allocation8 + $0x1e8] ss:$16 sps:$4 sm:$0xff]  }
  0x82   :  { %1975 = vmatpush1.bf16.msra.mxu0 %v3953_v36  ;;  %2147 = vmatpush1.bf16.msra.mxu1 %v3956_v38  ;;  %v4044_v36 = vld [vmem:[#allocation8 + $0x1e0] ss:$16 sps:$4 sm:$0xff]   ;;  %v4052_v38 = vld [vmem:[#allocation8 + $0x204] ss:$16 sps:$4 sm:$0xff]  }
  0x83   :  { %1976 = vmatprep.subr.bf16.mxu0 %v3962_v39  ;;  %2148 = vmatprep.subr.bf16.mxu1 %v3965_v40  ;;  %v4055_v39 = vld [vmem:[#allocation8 + $0x20c] ss:$16 sps:$4 sm:$0xff]   ;;  %v3450_v40 = vcombine.low %v104_v9, %v108_v10  ;;  %v4095_v9 = vld [vmem:[#allocation8 + $0x2e8] ss:$16 sps:$4 sm:$0xff]   ;;  %v4100_v10 = vld [vmem:[#allocation8 + $0x304] ss:$16 sps:$4 sm:$0xff]  }
  0x84   :  { %2006 = vmatprep.mubr.bf16.mxu0 %v3451_v11  ;;  %2178 = vmatprep.mubr.bf16.mxu1 %v3451_v11  ;;  %v4103_v11 = vld [vmem:[#allocation8 + $0x30c] ss:$16 sps:$4 sm:$0xff]  }
  0x86   :  { %1977 = vmatpush1.bf16.msra.mxu0 %v3960_v41  ;;  %2149 = vmatpush1.bf16.msra.mxu1 %v3963_v42  ;;  %v4050_v41 = vld [vmem:[#allocation8 + $0x200] ss:$16 sps:$4 sm:$0xff]   ;;  %v4053_v42 = vld [vmem:[#allocation8 + $0x208] ss:$16 sps:$4 sm:$0xff]  }
  0x87   :  { %1978 = vmatprep.subr.bf16.mxu0 %v3968_v43  ;;  %2150 = vmatprep.subr.bf16.mxu1 %v3971_v44  ;;  %v4058_v43 = vld [vmem:[#allocation8 + $0x224] ss:$16 sps:$4 sm:$0xff]   ;;  %v4061_v44 = vld [vmem:[#allocation8 + $0x22c] ss:$16 sps:$4 sm:$0xff]  }
  0x8a   :  { %1979 = vmatpush1.bf16.msra.mxu0 %v3966_v45  ;;  %2151 = vmatpush1.bf16.msra.mxu1 %v3969_v46  ;;  %v4056_v45 = vld [vmem:[#allocation8 + $0x220] ss:$16 sps:$4 sm:$0xff]   ;;  %v4059_v46 = vld [vmem:[#allocation8 + $0x228] ss:$16 sps:$4 sm:$0xff]  }
  0x8b   :  { %1980 = vmatprep.subr.bf16.mxu0 %v3974_v47  ;;  %2152 = vmatprep.subr.bf16.mxu1 %v3977_v48  ;;  %v4064_v47 = vld [vmem:[#allocation8 + $0x244] ss:$16 sps:$4 sm:$0xff]   ;;  %v4067_v48 = vld [vmem:[#allocation8 + $0x24c] ss:$16 sps:$4 sm:$0xff]  }
  0x8e   :  { %1981 = vmatpush1.bf16.msra.mxu0 %v3972_v49  ;;  %2153 = vmatpush1.bf16.msra.mxu1 %v3975_v50  ;;  %v4062_v49 = vld [vmem:[#allocation8 + $0x240] ss:$16 sps:$4 sm:$0xff]   ;;  %v4065_v50 = vld [vmem:[#allocation8 + $0x248] ss:$16 sps:$4 sm:$0xff]  }
  0x8f   :  { %1982 = vmatprep.subr.bf16.mxu0 %v3980_v51  ;;  %2154 = vmatprep.subr.bf16.mxu1 %v3983_v52  ;;  %v4070_v51 = vld [vmem:[#allocation8 + $0x264] ss:$16 sps:$4 sm:$0xff]   ;;  %v4073_v52 = vld [vmem:[#allocation8 + $0x26c] ss:$16 sps:$4 sm:$0xff]  }
  0x92   :  { %1983 = vmatpush1.bf16.msra.mxu0 %v3978_v53  ;;  %2155 = vmatpush1.bf16.msra.mxu1 %v3981_v54  ;;  %v4068_v53 = vld [vmem:[#allocation8 + $0x260] ss:$16 sps:$4 sm:$0xff]   ;;  %v4071_v54 = vld [vmem:[#allocation8 + $0x268] ss:$16 sps:$4 sm:$0xff]  }
  0x93   :  { %1984 = vmatprep.subr.bf16.mxu0 %v3986_v55  ;;  %2156 = vmatprep.subr.bf16.mxu1 %v3989_v56  ;;  %v4076_v55 = vld [vmem:[#allocation8 + $0x284] ss:$16 sps:$4 sm:$0xff]  }
  0x94   :  { %v4805_v56 = vld [vmem:[#allocation3 + $0x8] sm:$0xff] }
  0x96   :  { %1985 = vmatpush1.bf16.msra.mxu0 %v3984_v57  ;;  %2157 = vmatpush1.bf16.msra.mxu1 %v3987_v58  ;;  %v4807_v57 = vld [vmem:[#allocation3 + $0x28] sm:$0xff]  ;;  %v4079_v58 = vld [vmem:[#allocation8 + $0x28c] ss:$16 sps:$4 sm:$0xff]  }
  0x97   :  { %1986 = vmatprep.subr.bf16.mxu0 %v3992_v59  ;;  %2158 = vmatprep.subr.bf16.mxu1 %v3995_v60  ;;  %v3453_v59 = vcombine.high %v4805_v56, %v4807_v57  ;;  %v4074_v60 = vld [vmem:[#allocation8 + $0x280] ss:$16 sps:$4 sm:$0xff]  }
  0x9a   :  { %1987 = vmatpush1.bf16.msra.mxu0 %v3990_v61  ;;  %2159 = vmatpush1.bf16.msra.mxu1 %v3993_v62  ;;  %v4077_v61 = vld [vmem:[#allocation8 + $0x288] ss:$16 sps:$4 sm:$0xff]   ;;  %v4082_v62 = vld [vmem:[#allocation8 + $0x2a4] ss:$16 sps:$4 sm:$0xff]  }
  0x9b   :  { %1988 = vmatprep.subr.bf16.mxu0 %v3998_v63  ;;  %2160 = vmatprep.subr.bf16.mxu1 %v4001_v0  ;;  %v4085_v63 = vld [vmem:[#allocation8 + $0x2ac] ss:$16 sps:$4 sm:$0xff]   ;;  %v4080_v0 = vld [vmem:[#allocation8 + $0x2a0] ss:$16 sps:$4 sm:$0xff]  }
  0x9e   :  { %1989 = vmatpush1.bf16.msra.mxu0 %v3996_v1  ;;  %2161 = vmatpush1.bf16.msra.mxu1 %v3999_v2  ;;  %v4083_v1 = vld [vmem:[#allocation8 + $0x2a8] ss:$16 sps:$4 sm:$0xff]   ;;  %v4088_v2 = vld [vmem:[#allocation8 + $0x2c4] ss:$16 sps:$4 sm:$0xff]  }
  0x9f   :  { %1990 = vmatprep.subr.bf16.mxu0 %v4004_v3  ;;  %2162 = vmatprep.subr.bf16.mxu1 %v4007_v4  ;;  %v4091_v3 = vld [vmem:[#allocation8 + $0x2cc] ss:$16 sps:$4 sm:$0xff]   ;;  %v4086_v4 = vld [vmem:[#allocation8 + $0x2c0] ss:$16 sps:$4 sm:$0xff]  }
  0xa2   :  { %1991 = vmatpush1.bf16.msra.mxu0 %v4002_v5  ;;  %2163 = vmatpush1.bf16.msra.mxu1 %v4005_v6  ;;  %v4089_v5 = vld [vmem:[#allocation8 + $0x2c8] ss:$16 sps:$4 sm:$0xff]   ;;  %v4094_v6 = vld [vmem:[#allocation8 + $0x2e4] ss:$16 sps:$4 sm:$0xff]  }
  0xa3   :  { %1992 = vmatprep.subr.bf16.mxu0 %v4010_v7  ;;  %2164 = vmatprep.subr.bf16.mxu1 %v4013_v8  ;;  %v4097_v7 = vld [vmem:[#allocation8 + $0x2ec] ss:$16 sps:$4 sm:$0xff]   ;;  %v4092_v8 = vld [vmem:[#allocation8 + $0x2e0] ss:$16 sps:$4 sm:$0xff]  }
  0xa6   :  { %1993 = vmatpush1.bf16.msra.mxu0 %v4008_v12  ;;  %2165 = vmatpush1.bf16.msra.mxu1 %v4011_v13  ;;  %v4098_v12 = vld [vmem:[#allocation8 + $0x300] ss:$16 sps:$4 sm:$0xff]   ;;  %v4101_v13 = vld [vmem:[#allocation8 + $0x308] ss:$16 sps:$4 sm:$0xff]  }
  0xa7   :  { %1994 = vmatprep.subr.bf16.mxu0 %v4016_v14  ;;  %2166 = vmatprep.subr.bf16.mxu1 %v4019_v15  ;;  %v4106_v14 = vld [vmem:[#allocation8 + $0x324] ss:$16 sps:$4 sm:$0xff]   ;;  %v4109_v15 = vld [vmem:[#allocation8 + $0x32c] ss:$16 sps:$4 sm:$0xff]  }
  0xaa   :  { %1995 = vmatpush1.bf16.msra.mxu0 %v4014_v16  ;;  %2167 = vmatpush1.bf16.msra.mxu1 %v4017_v17  ;;  %v4104_v16 = vld [vmem:[#allocation8 + $0x320] ss:$16 sps:$4 sm:$0xff]   ;;  %v4107_v17 = vld [vmem:[#allocation8 + $0x328] ss:$16 sps:$4 sm:$0xff]  }
  0xab   :  { %1996 = vmatprep.subr.bf16.mxu0 %v4022_v18  ;;  %2168 = vmatprep.subr.bf16.mxu1 %v4025_v19  ;;  %v4112_v18 = vld [vmem:[#allocation8 + $0x344] ss:$16 sps:$4 sm:$0xff]   ;;  %v4115_v19 = vld [vmem:[#allocation8 + $0x34c] ss:$16 sps:$4 sm:$0xff]  }
  0xae   :  { %1997 = vmatpush1.bf16.msra.mxu0 %v4020_v20  ;;  %2169 = vmatpush1.bf16.msra.mxu1 %v4023_v21  ;;  %v4110_v20 = vld [vmem:[#allocation8 + $0x340] ss:$16 sps:$4 sm:$0xff]   ;;  %v4113_v21 = vld [vmem:[#allocation8 + $0x348] ss:$16 sps:$4 sm:$0xff]  }
  0xaf   :  { %1998 = vmatprep.subr.bf16.mxu0 %v4028_v22  ;;  %2170 = vmatprep.subr.bf16.mxu1 %v4031_v23  ;;  %v4118_v22 = vld [vmem:[#allocation8 + $0x364] ss:$16 sps:$4 sm:$0xff]   ;;  %v4121_v23 = vld [vmem:[#allocation8 + $0x36c] ss:$16 sps:$4 sm:$0xff]  }
  0xb2   :  { %1999 = vmatpush1.bf16.msra.mxu0 %v4026_v24  ;;  %2171 = vmatpush1.bf16.msra.mxu1 %v4029_v25  ;;  %v4116_v24 = vld [vmem:[#allocation8 + $0x360] ss:$16 sps:$4 sm:$0xff]   ;;  %v4119_v25 = vld [vmem:[#allocation8 + $0x368] ss:$16 sps:$4 sm:$0xff]  }
  0xb3   :  { %2000 = vmatprep.subr.bf16.mxu0 %v4034_v26  ;;  %2172 = vmatprep.subr.bf16.mxu1 %v4037_v27  ;;  %v4124_v26 = vld [vmem:[#allocation8 + $0x384] ss:$16 sps:$4 sm:$0xff]   ;;  %v4127_v27 = vld [vmem:[#allocation8 + $0x38c] ss:$16 sps:$4 sm:$0xff]  }
  0xb6   :  { %2001 = vmatpush1.bf16.msra.mxu0 %v4032_v28  ;;  %2173 = vmatpush1.bf16.msra.mxu1 %v4035_v29  ;;  %v4122_v28 = vld [vmem:[#allocation8 + $0x380] ss:$16 sps:$4 sm:$0xff]   ;;  %v4125_v29 = vld [vmem:[#allocation8 + $0x388] ss:$16 sps:$4 sm:$0xff]  }
  0xb7   :  { %2002 = vmatprep.subr.bf16.mxu0 %v4040_v30  ;;  %2174 = vmatprep.subr.bf16.mxu1 %v4043_v31  ;;  %v4130_v30 = vld [vmem:[#allocation8 + $0x3a4] ss:$16 sps:$4 sm:$0xff]   ;;  %v4133_v31 = vld [vmem:[#allocation8 + $0x3ac] ss:$16 sps:$4 sm:$0xff]  }
  0xba   :  { %2003 = vmatpush1.bf16.msra.mxu0 %v4038_v32  ;;  %2175 = vmatpush1.bf16.msra.mxu1 %v4041_v33  ;;  %v4128_v32 = vld [vmem:[#allocation8 + $0x3a0] ss:$16 sps:$4 sm:$0xff]   ;;  %v4131_v33 = vld [vmem:[#allocation8 + $0x3a8] ss:$16 sps:$4 sm:$0xff]  }
  0xbb   :  { %2004 = vmatprep.subr.bf16.mxu0 %v4046_v34  ;;  %2176 = vmatprep.subr.bf16.mxu1 %v4049_v35  ;;  %v4136_v34 = vld [vmem:[#allocation8 + $0x3c4] ss:$16 sps:$4 sm:$0xff]   ;;  %v4139_v35 = vld [vmem:[#allocation8 + $0x3cc] ss:$16 sps:$4 sm:$0xff]  }
  0xbe   :  { %2005 = vmatpush1.bf16.msra.mxu0 %v4044_v36  ;;  %2177 = vmatpush1.bf16.msra.mxu1 %v4047_v37  ;;  %v4134_v36 = vld [vmem:[#allocation8 + $0x3c0] ss:$16 sps:$4 sm:$0xff]   ;;  %v4137_v37 = vld [vmem:[#allocation8 + $0x3c8] ss:$16 sps:$4 sm:$0xff]  }
  0xbf   :  { %2017 = vmatprep.subr.bf16.mxu0 %v4052_v38  ;;  %2189 = vmatprep.subr.bf16.mxu1 %v4055_v39  ;;  %v4142_v38 = vld [vmem:[#allocation8 + $0x3e4] ss:$16 sps:$4 sm:$0xff]   ;;  %v4145_v39 = vld [vmem:[#allocation8 + $0x3ec] ss:$16 sps:$4 sm:$0xff]  }
  0xc1   :  { %2007 = vmatmul.mubr.bf16.vlgmr.msra.gmra.mrb[0].mxu0 %v3450_v40  ;;  %2179 = vmatmul.mubr.bf16.vlgmr.msra.gmra.mrb[0].mxu1 %v3450_v40  ;;  %v4140_v40 = vld [vmem:[#allocation8 + $0x3e0] ss:$16 sps:$4 sm:$0xff]  }
  0xc2   :  { %2018 = vmatpush1.bf16.msra.mxu0 %v4050_v41  ;;  %2190 = vmatpush1.bf16.msra.mxu1 %v4053_v42  ;;  %v4143_v41 = vld [vmem:[#allocation8 + $0x3e8] ss:$16 sps:$4 sm:$0xff]   ;;  %v4148_v42 = vld [vmem:[#allocation8 + $0x404] ss:$16 sps:$4 sm:$0xff]  }
  0xc3   :  { %2019 = vmatprep.subr.bf16.mxu0 %v4058_v43  ;;  %2191 = vmatprep.subr.bf16.mxu1 %v4061_v44  ;;  %v4151_v43 = vld [vmem:[#allocation8 + $0x40c] ss:$16 sps:$4 sm:$0xff]   ;;  %v4146_v44 = vld [vmem:[#allocation8 + $0x400] ss:$16 sps:$4 sm:$0xff]  }
  0xc4   :  { %2049 = vmatprep.mubr.bf16.mxu0 %v3453_v59  ;;  %2221 = vmatprep.mubr.bf16.mxu1 %v3453_v59  ;;  %v4169_v59 = vld [vmem:[#allocation8 + $0x46c] ss:$16 sps:$4 sm:$0xff]  }
  0xc6   :  { %2020 = vmatpush1.bf16.msra.mxu0 %v4056_v45  ;;  %2192 = vmatpush1.bf16.msra.mxu1 %v4059_v46  ;;  %v4811_v45 = vld [vmem:[#allocation3 + $0x10] sm:$0xff]  ;;  %v3452_v46 = vcombine.low %v4805_v56, %v4807_v57  ;;  %v4158_v56 = vld [vmem:[#allocation8 + $0x440] ss:$16 sps:$4 sm:$0xff]  }
  0xc7   :  { %2021 = vmatprep.subr.bf16.mxu0 %v4064_v47  ;;  %2193 = vmatprep.subr.bf16.mxu1 %v4067_v48  ;;  %v4815_v47 = vld [vmem:[#allocation3 + $0x30] sm:$0xff] }
  0xc8   :  { %v4149_v48 = vld [vmem:[#allocation8 + $0x408] ss:$16 sps:$4 sm:$0xff]  }
  0xc9   :  { %v4161_v57 = vld [vmem:[#allocation8 + $0x448] ss:$16 sps:$4 sm:$0xff]  }
  0xca   :  { %2022 = vmatpush1.bf16.msra.mxu0 %v4062_v49  ;;  %2194 = vmatpush1.bf16.msra.mxu1 %v4065_v50  ;;  %v4154_v49 = vld [vmem:[#allocation8 + $0x424] ss:$16 sps:$4 sm:$0xff]   ;;  %v4157_v50 = vld [vmem:[#allocation8 + $0x42c] ss:$16 sps:$4 sm:$0xff]  }
  0xcb   :  { %2023 = vmatprep.subr.bf16.mxu0 %v4070_v51  ;;  %2195 = vmatprep.subr.bf16.mxu1 %v4073_v52  ;;  %v3455_v51 = vcombine.high %v4811_v45, %v4815_v47  ;;  %v4152_v52 = vld [vmem:[#allocation8 + $0x420] ss:$16 sps:$4 sm:$0xff]  }
  0xce   :  { %2024 = vmatpush1.bf16.msra.mxu0 %v4068_v53  ;;  %2196 = vmatpush1.bf16.msra.mxu1 %v4071_v54  ;;  %v4155_v53 = vld [vmem:[#allocation8 + $0x428] ss:$16 sps:$4 sm:$0xff]   ;;  %v4160_v54 = vld [vmem:[#allocation8 + $0x444] ss:$16 sps:$4 sm:$0xff]  }
  0xcf   :  { %2025 = vmatprep.subr.bf16.mxu0 %v4076_v55  ;;  %2197 = vmatprep.subr.bf16.mxu1 %v4079_v58  ;;  %v4163_v55 = vld [vmem:[#allocation8 + $0x44c] ss:$16 sps:$4 sm:$0xff]   ;;  %v4166_v58 = vld [vmem:[#allocation8 + $0x464] ss:$16 sps:$4 sm:$0xff]  }
  0xd2   :  { %2026 = vmatpush1.bf16.msra.mxu0 %v4074_v60  ;;  %2198 = vmatpush1.bf16.msra.mxu1 %v4077_v61  ;;  %v4164_v60 = vld [vmem:[#allocation8 + $0x460] ss:$16 sps:$4 sm:$0xff]   ;;  %v4167_v61 = vld [vmem:[#allocation8 + $0x468] ss:$16 sps:$4 sm:$0xff]  }
  0xd3   :  { %2027 = vmatprep.subr.bf16.mxu0 %v4082_v62  ;;  %2199 = vmatprep.subr.bf16.mxu1 %v4085_v63  ;;  %v4172_v62 = vld [vmem:[#allocation8 + $0x484] ss:$16 sps:$4 sm:$0xff]   ;;  %v4175_v63 = vld [vmem:[#allocation8 + $0x48c] ss:$16 sps:$4 sm:$0xff]  }
  0xd6   :  { %2028 = vmatpush1.bf16.msra.mxu0 %v4080_v0  ;;  %2200 = vmatpush1.bf16.msra.mxu1 %v4083_v1  ;;  %v4170_v0 = vld [vmem:[#allocation8 + $0x480] ss:$16 sps:$4 sm:$0xff]   ;;  %v4173_v1 = vld [vmem:[#allocation8 + $0x488] ss:$16 sps:$4 sm:$0xff]  }
  0xd7   :  { %2029 = vmatprep.subr.bf16.mxu0 %v4088_v2  ;;  %2201 = vmatprep.subr.bf16.mxu1 %v4091_v3  ;;  %v4178_v2 = vld [vmem:[#allocation8 + $0x4a4] ss:$16 sps:$4 sm:$0xff]   ;;  %v4181_v3 = vld [vmem:[#allocation8 + $0x4ac] ss:$16 sps:$4 sm:$0xff]  }
  0xda   :  { %2030 = vmatpush1.bf16.msra.mxu0 %v4086_v4  ;;  %2202 = vmatpush1.bf16.msra.mxu1 %v4089_v5  ;;  %v4176_v4 = vld [vmem:[#allocation8 + $0x4a0] ss:$16 sps:$4 sm:$0xff]   ;;  %v4179_v5 = vld [vmem:[#allocation8 + $0x4a8] ss:$16 sps:$4 sm:$0xff]  }
  0xdb   :  { %2031 = vmatprep.subr.bf16.mxu0 %v4094_v6  ;;  %2203 = vmatprep.subr.bf16.mxu1 %v4097_v7  ;;  %v4184_v6 = vld [vmem:[#allocation8 + $0x4c4] ss:$16 sps:$4 sm:$0xff]   ;;  %v4187_v7 = vld [vmem:[#allocation8 + $0x4cc] ss:$16 sps:$4 sm:$0xff]  }
  0xde   :  { %2032 = vmatpush1.bf16.msra.mxu0 %v4092_v8  ;;  %2204 = vmatpush1.bf16.msra.mxu1 %v4095_v9  ;;  %v4182_v8 = vld [vmem:[#allocation8 + $0x4c0] ss:$16 sps:$4 sm:$0xff]   ;;  %v4185_v9 = vld [vmem:[#allocation8 + $0x4c8] ss:$16 sps:$4 sm:$0xff]  }
  0xdf   :  { %2033 = vmatprep.subr.bf16.mxu0 %v4100_v10  ;;  %2205 = vmatprep.subr.bf16.mxu1 %v4103_v11  ;;  %v4190_v10 = vld [vmem:[#allocation8 + $0x4e4] ss:$16 sps:$4 sm:$0xff]   ;;  %v4193_v11 = vld [vmem:[#allocation8 + $0x4ec] ss:$16 sps:$4 sm:$0xff]  }
  0xe2   :  { %2034 = vmatpush1.bf16.msra.mxu0 %v4098_v12  ;;  %2206 = vmatpush1.bf16.msra.mxu1 %v4101_v13  ;;  %v4188_v12 = vld [vmem:[#allocation8 + $0x4e0] ss:$16 sps:$4 sm:$0xff]   ;;  %v4191_v13 = vld [vmem:[#allocation8 + $0x4e8] ss:$16 sps:$4 sm:$0xff]  }
  0xe3   :  { %2035 = vmatprep.subr.bf16.mxu0 %v4106_v14  ;;  %2207 = vmatprep.subr.bf16.mxu1 %v4109_v15  ;;  %v4196_v14 = vld [vmem:[#allocation8 + $0x504] ss:$16 sps:$4 sm:$0xff]   ;;  %v4199_v15 = vld [vmem:[#allocation8 + $0x50c] ss:$16 sps:$4 sm:$0xff]  }
  0xe6   :  { %2036 = vmatpush1.bf16.msra.mxu0 %v4104_v16  ;;  %2208 = vmatpush1.bf16.msra.mxu1 %v4107_v17  ;;  %v4194_v16 = vld [vmem:[#allocation8 + $0x500] ss:$16 sps:$4 sm:$0xff]   ;;  %v4197_v17 = vld [vmem:[#allocation8 + $0x508] ss:$16 sps:$4 sm:$0xff]  }
  0xe7   :  { %2037 = vmatprep.subr.bf16.mxu0 %v4112_v18  ;;  %2209 = vmatprep.subr.bf16.mxu1 %v4115_v19  ;;  %v4202_v18 = vld [vmem:[#allocation8 + $0x524] ss:$16 sps:$4 sm:$0xff]   ;;  %v4205_v19 = vld [vmem:[#allocation8 + $0x52c] ss:$16 sps:$4 sm:$0xff]  }
  0xea   :  { %2038 = vmatpush1.bf16.msra.mxu0 %v4110_v20  ;;  %2210 = vmatpush1.bf16.msra.mxu1 %v4113_v21  ;;  %v4200_v20 = vld [vmem:[#allocation8 + $0x520] ss:$16 sps:$4 sm:$0xff]   ;;  %v4203_v21 = vld [vmem:[#allocation8 + $0x528] ss:$16 sps:$4 sm:$0xff]  }
  0xeb   :  { %2039 = vmatprep.subr.bf16.mxu0 %v4118_v22  ;;  %2211 = vmatprep.subr.bf16.mxu1 %v4121_v23  ;;  %v4208_v22 = vld [vmem:[#allocation8 + $0x544] ss:$16 sps:$4 sm:$0xff]   ;;  %v4211_v23 = vld [vmem:[#allocation8 + $0x54c] ss:$16 sps:$4 sm:$0xff]  }
  0xee   :  { %2040 = vmatpush1.bf16.msra.mxu0 %v4116_v24  ;;  %2212 = vmatpush1.bf16.msra.mxu1 %v4119_v25  ;;  %v4206_v24 = vld [vmem:[#allocation8 + $0x540] ss:$16 sps:$4 sm:$0xff]   ;;  %v4209_v25 = vld [vmem:[#allocation8 + $0x548] ss:$16 sps:$4 sm:$0xff]  }
  0xef   :  { %2041 = vmatprep.subr.bf16.mxu0 %v4124_v26  ;;  %2213 = vmatprep.subr.bf16.mxu1 %v4127_v27  ;;  %v4214_v26 = vld [vmem:[#allocation8 + $0x564] ss:$16 sps:$4 sm:$0xff]   ;;  %v4217_v27 = vld [vmem:[#allocation8 + $0x56c] ss:$16 sps:$4 sm:$0xff]  }
  0xf2   :  { %2042 = vmatpush1.bf16.msra.mxu0 %v4122_v28  ;;  %2214 = vmatpush1.bf16.msra.mxu1 %v4125_v29  ;;  %v4212_v28 = vld [vmem:[#allocation8 + $0x560] ss:$16 sps:$4 sm:$0xff]   ;;  %v4215_v29 = vld [vmem:[#allocation8 + $0x568] ss:$16 sps:$4 sm:$0xff]  }
  0xf3   :  { %2043 = vmatprep.subr.bf16.mxu0 %v4130_v30  ;;  %2215 = vmatprep.subr.bf16.mxu1 %v4133_v31  ;;  %v4220_v30 = vld [vmem:[#allocation8 + $0x584] ss:$16 sps:$4 sm:$0xff]   ;;  %v4223_v31 = vld [vmem:[#allocation8 + $0x58c] ss:$16 sps:$4 sm:$0xff]  }
  0xf6   :  { %2044 = vmatpush1.bf16.msra.mxu0 %v4128_v32  ;;  %2216 = vmatpush1.bf16.msra.mxu1 %v4131_v33  ;;  %v4218_v32 = vld [vmem:[#allocation8 + $0x580] ss:$16 sps:$4 sm:$0xff]   ;;  %v4221_v33 = vld [vmem:[#allocation8 + $0x588] ss:$16 sps:$4 sm:$0xff]  }
  0xf7   :  { %2045 = vmatprep.subr.bf16.mxu0 %v4136_v34  ;;  %2217 = vmatprep.subr.bf16.mxu1 %v4139_v35  ;;  %v4226_v34 = vld [vmem:[#allocation8 + $0x5a4] ss:$16 sps:$4 sm:$0xff]   ;;  %v4229_v35 = vld [vmem:[#allocation8 + $0x5ac] ss:$16 sps:$4 sm:$0xff]  }
  0xfa   :  { %2046 = vmatpush1.bf16.msra.mxu0 %v4134_v36  ;;  %2218 = vmatpush1.bf16.msra.mxu1 %v4137_v37  ;;  %v4224_v36 = vld [vmem:[#allocation8 + $0x5a0] ss:$16 sps:$4 sm:$0xff]   ;;  %v4227_v37 = vld [vmem:[#allocation8 + $0x5a8] ss:$16 sps:$4 sm:$0xff]  }
  0xfb   :  { %2047 = vmatprep.subr.bf16.mxu0 %v4142_v38  ;;  %2219 = vmatprep.subr.bf16.mxu1 %v4145_v39  ;;  %v4232_v38 = vld [vmem:[#allocation8 + $0x5c4] ss:$16 sps:$4 sm:$0xff]   ;;  %v4235_v39 = vld [vmem:[#allocation8 + $0x5cc] ss:$16 sps:$4 sm:$0xff]  }
  0xfe   :  { %2048 = vmatpush1.bf16.msra.mxu0 %v4140_v40  ;;  %2220 = vmatpush1.bf16.msra.mxu1 %v4143_v41  ;;  %v4230_v40 = vld [vmem:[#allocation8 + $0x5c0] ss:$16 sps:$4 sm:$0xff]   ;;  %v4233_v41 = vld [vmem:[#allocation8 + $0x5c8] ss:$16 sps:$4 sm:$0xff]  }
  0xff   :  { %2060 = vmatprep.subr.bf16.mxu0 %v4148_v42  ;;  %2232 = vmatprep.subr.bf16.mxu1 %v4151_v43  ;;  %v4238_v42 = vld [vmem:[#allocation8 + $0x5e4] ss:$16 sps:$4 sm:$0xff]   ;;  %v4241_v43 = vld [vmem:[#allocation8 + $0x5ec] ss:$16 sps:$4 sm:$0xff]  }
 0x101   :  { %2050 = vmatmul.mubr.bf16.vlgmr.msra.gmra.mrb[0].mxu0 %v3452_v46  ;;  %2222 = vmatmul.mubr.bf16.vlgmr.msra.gmra.mrb[0].mxu1 %v3452_v46  ;;  %v4239_v46 = vld [vmem:[#allocation8 + $0x5e8] ss:$16 sps:$4 sm:$0xff]  }
 0x102   :  { %2061 = vmatpush1.bf16.msra.mxu0 %v4146_v44  ;;  %2233 = vmatpush1.bf16.msra.mxu1 %v4149_v48  ;;  %v4236_v44 = vld [vmem:[#allocation8 + $0x5e0] ss:$16 sps:$4 sm:$0xff]   ;;  %v4244_v48 = vld [vmem:[#allocation8 + $0x604] ss:$16 sps:$4 sm:$0xff]  }
 0x103   :  { %2062 = vmatprep.subr.bf16.mxu0 %v4154_v49  ;;  %2234 = vmatprep.subr.bf16.mxu1 %v4157_v50  ;;  %v4247_v49 = vld [vmem:[#allocation8 + $0x60c] ss:$16 sps:$4 sm:$0xff]   ;;  %v4242_v50 = vld [vmem:[#allocation8 + $0x600] ss:$16 sps:$4 sm:$0xff]  }
 0x104   :  { %2092 = vmatprep.mubr.bf16.mxu0 %v3455_v51  ;;  %2264 = vmatprep.mubr.bf16.mxu1 %v3455_v51  ;;  %v3454_v51 = vcombine.low %v4811_v45, %v4815_v47  ;;  %v4251_v45 = vld [vmem:[#allocation8 + $0x628] ss:$16 sps:$4 sm:$0xff]   ;;  %v4256_v47 = vld [vmem:[#allocation8 + $0x644] ss:$16 sps:$4 sm:$0xff]  }
 0x106   :  { %2063 = vmatpush1.bf16.msra.mxu0 %v4152_v52  ;;  %2235 = vmatpush1.bf16.msra.mxu1 %v4155_v53  ;;  %v4821_v52 = vld [vmem:[#allocation3 + $0x18] sm:$0xff] }
 0x107   :  { %2064 = vmatprep.subr.bf16.mxu0 %v4160_v54  ;;  %2236 = vmatprep.subr.bf16.mxu1 %v4163_v55  ;;  %v4823_v53 = vld [vmem:[#allocation3 + $0x38] sm:$0xff]  ;;  %v4245_v54 = vld [vmem:[#allocation8 + $0x608] ss:$16 sps:$4 sm:$0xff]  }
 0x108   :  { %v4250_v55 = vld [vmem:[#allocation8 + $0x624] ss:$16 sps:$4 sm:$0xff]  }
 0x10a   :  { %2065 = vmatpush1.bf16.msra.mxu0 %v4158_v56  ;;  %2237 = vmatpush1.bf16.msra.mxu1 %v4161_v57  ;;  %v4253_v56 = vld [vmem:[#allocation8 + $0x62c] ss:$16 sps:$4 sm:$0xff]   ;;  %v3457_v57 = vcombine.high %v4821_v52, %v4823_v53 }
 0x10b   :  { %2066 = vmatprep.subr.bf16.mxu0 %v4166_v58  ;;  %2238 = vmatprep.subr.bf16.mxu1 %v4169_v59  ;;  %v4248_v58 = vld [vmem:[#allocation8 + $0x620] ss:$16 sps:$4 sm:$0xff]   ;;  %v4259_v59 = vld [vmem:[#allocation8 + $0x64c] ss:$16 sps:$4 sm:$0xff]  }
 0x10e   :  { %2067 = vmatpush1.bf16.msra.mxu0 %v4164_v60  ;;  %2239 = vmatpush1.bf16.msra.mxu1 %v4167_v61  ;;  %v4254_v60 = vld [vmem:[#allocation8 + $0x640] ss:$16 sps:$4 sm:$0xff]   ;;  %v4257_v61 = vld [vmem:[#allocation8 + $0x648] ss:$16 sps:$4 sm:$0xff]  }
 0x10f   :  { %2068 = vmatprep.subr.bf16.mxu0 %v4172_v62  ;;  %2240 = vmatprep.subr.bf16.mxu1 %v4175_v63  ;;  %v4262_v62 = vld [vmem:[#allocation8 + $0x664] ss:$16 sps:$4 sm:$0xff]   ;;  %v4265_v63 = vld [vmem:[#allocation8 + $0x66c] ss:$16 sps:$4 sm:$0xff]  }
 0x112   :  { %2069 = vmatpush1.bf16.msra.mxu0 %v4170_v0  ;;  %2241 = vmatpush1.bf16.msra.mxu1 %v4173_v1  ;;  %v4260_v0 = vld [vmem:[#allocation8 + $0x660] ss:$16 sps:$4 sm:$0xff]   ;;  %v4263_v1 = vld [vmem:[#allocation8 + $0x668] ss:$16 sps:$4 sm:$0xff]  }
 0x113   :  { %2070 = vmatprep.subr.bf16.mxu0 %v4178_v2  ;;  %2242 = vmatprep.subr.bf16.mxu1 %v4181_v3  ;;  %v4268_v2 = vld [vmem:[#allocation8 + $0x684] ss:$16 sps:$4 sm:$0xff]   ;;  %v4271_v3 = vld [vmem:[#allocation8 + $0x68c] ss:$16 sps:$4 sm:$0xff]  }
 0x116   :  { %2071 = vmatpush1.bf16.msra.mxu0 %v4176_v4  ;;  %2243 = vmatpush1.bf16.msra.mxu1 %v4179_v5  ;;  %v4266_v4 = vld [vmem:[#allocation8 + $0x680] ss:$16 sps:$4 sm:$0xff]   ;;  %v4269_v5 = vld [vmem:[#allocation8 + $0x688] ss:$16 sps:$4 sm:$0xff]  }
 0x117   :  { %2072 = vmatprep.subr.bf16.mxu0 %v4184_v6  ;;  %2244 = vmatprep.subr.bf16.mxu1 %v4187_v7  ;;  %v4274_v6 = vld [vmem:[#allocation8 + $0x6a4] ss:$16 sps:$4 sm:$0xff]   ;;  %v4277_v7 = vld [vmem:[#allocation8 + $0x6ac] ss:$16 sps:$4 sm:$0xff]  }
 0x11a   :  { %2073 = vmatpush1.bf16.msra.mxu0 %v4182_v8  ;;  %2245 = vmatpush1.bf16.msra.mxu1 %v4185_v9  ;;  %v4272_v8 = vld [vmem:[#allocation8 + $0x6a0] ss:$16 sps:$4 sm:$0xff]   ;;  %v4275_v9 = vld [vmem:[#allocation8 + $0x6a8] ss:$16 sps:$4 sm:$0xff]  }
 0x11b   :  { %2074 = vmatprep.subr.bf16.mxu0 %v4190_v10  ;;  %2246 = vmatprep.subr.bf16.mxu1 %v4193_v11  ;;  %v4280_v10 = vld [vmem:[#allocation8 + $0x6c4] ss:$16 sps:$4 sm:$0xff]   ;;  %v4283_v11 = vld [vmem:[#allocation8 + $0x6cc] ss:$16 sps:$4 sm:$0xff]  }
 0x11e   :  { %2075 = vmatpush1.bf16.msra.mxu0 %v4188_v12  ;;  %2247 = vmatpush1.bf16.msra.mxu1 %v4191_v13  ;;  %v4278_v12 = vld [vmem:[#allocation8 + $0x6c0] ss:$16 sps:$4 sm:$0xff]   ;;  %v4281_v13 = vld [vmem:[#allocation8 + $0x6c8] ss:$16 sps:$4 sm:$0xff]  }
 0x11f   :  { %2076 = vmatprep.subr.bf16.mxu0 %v4196_v14  ;;  %2248 = vmatprep.subr.bf16.mxu1 %v4199_v15  ;;  %v4286_v14 = vld [vmem:[#allocation8 + $0x6e4] ss:$16 sps:$4 sm:$0xff]   ;;  %v4289_v15 = vld [vmem:[#allocation8 + $0x6ec] ss:$16 sps:$4 sm:$0xff]  }
 0x122   :  { %2077 = vmatpush1.bf16.msra.mxu0 %v4194_v16  ;;  %2249 = vmatpush1.bf16.msra.mxu1 %v4197_v17  ;;  %v4284_v16 = vld [vmem:[#allocation8 + $0x6e0] ss:$16 sps:$4 sm:$0xff]   ;;  %v4287_v17 = vld [vmem:[#allocation8 + $0x6e8] ss:$16 sps:$4 sm:$0xff]  }
 0x123   :  { %2078 = vmatprep.subr.bf16.mxu0 %v4202_v18  ;;  %2250 = vmatprep.subr.bf16.mxu1 %v4205_v19  ;;  %v4292_v18 = vld [vmem:[#allocation8 + $0x704] ss:$16 sps:$4 sm:$0xff]   ;;  %v4295_v19 = vld [vmem:[#allocation8 + $0x70c] ss:$16 sps:$4 sm:$0xff]  }
 0x126   :  { %2079 = vmatpush1.bf16.msra.mxu0 %v4200_v20  ;;  %2251 = vmatpush1.bf16.msra.mxu1 %v4203_v21  ;;  %v4290_v20 = vld [vmem:[#allocation8 + $0x700] ss:$16 sps:$4 sm:$0xff]   ;;  %v4293_v21 = vld [vmem:[#allocation8 + $0x708] ss:$16 sps:$4 sm:$0xff]  }
 0x127   :  { %2080 = vmatprep.subr.bf16.mxu0 %v4208_v22  ;;  %2252 = vmatprep.subr.bf16.mxu1 %v4211_v23  ;;  %v4298_v22 = vld [vmem:[#allocation8 + $0x724] ss:$16 sps:$4 sm:$0xff]   ;;  %v4301_v23 = vld [vmem:[#allocation8 + $0x72c] ss:$16 sps:$4 sm:$0xff]  }
 0x12a   :  { %2081 = vmatpush1.bf16.msra.mxu0 %v4206_v24  ;;  %2253 = vmatpush1.bf16.msra.mxu1 %v4209_v25  ;;  %v4296_v24 = vld [vmem:[#allocation8 + $0x720] ss:$16 sps:$4 sm:$0xff]   ;;  %v4299_v25 = vld [vmem:[#allocation8 + $0x728] ss:$16 sps:$4 sm:$0xff]  }
 0x12b   :  { %2082 = vmatprep.subr.bf16.mxu0 %v4214_v26  ;;  %2254 = vmatprep.subr.bf16.mxu1 %v4217_v27  ;;  %v4304_v26 = vld [vmem:[#allocation8 + $0x744] ss:$16 sps:$4 sm:$0xff]   ;;  %v4307_v27 = vld [vmem:[#allocation8 + $0x74c] ss:$16 sps:$4 sm:$0xff]  }
 0x12e   :  { %2083 = vmatpush1.bf16.msra.mxu0 %v4212_v28  ;;  %2255 = vmatpush1.bf16.msra.mxu1 %v4215_v29  ;;  %v4302_v28 = vld [vmem:[#allocation8 + $0x740] ss:$16 sps:$4 sm:$0xff]   ;;  %v4305_v29 = vld [vmem:[#allocation8 + $0x748] ss:$16 sps:$4 sm:$0xff]  }
 0x12f   :  { %2084 = vmatprep.subr.bf16.mxu0 %v4220_v30  ;;  %2256 = vmatprep.subr.bf16.mxu1 %v4223_v31  ;;  %v4310_v30 = vld [vmem:[#allocation8 + $0x764] ss:$16 sps:$4 sm:$0xff]   ;;  %v4313_v31 = vld [vmem:[#allocation8 + $0x76c] ss:$16 sps:$4 sm:$0xff]  }
 0x132   :  { %2085 = vmatpush1.bf16.msra.mxu0 %v4218_v32  ;;  %2257 = vmatpush1.bf16.msra.mxu1 %v4221_v33  ;;  %v4308_v32 = vld [vmem:[#allocation8 + $0x760] ss:$16 sps:$4 sm:$0xff]   ;;  %v4311_v33 = vld [vmem:[#allocation8 + $0x768] ss:$16 sps:$4 sm:$0xff]  }
 0x133   :  { %2086 = vmatprep.subr.bf16.mxu0 %v4226_v34  ;;  %2258 = vmatprep.subr.bf16.mxu1 %v4229_v35  ;;  %v4316_v34 = vld [vmem:[#allocation8 + $0x784] ss:$16 sps:$4 sm:$0xff]   ;;  %v4319_v35 = vld [vmem:[#allocation8 + $0x78c] ss:$16 sps:$4 sm:$0xff]  }
 0x136   :  { %2087 = vmatpush1.bf16.msra.mxu0 %v4224_v36  ;;  %2259 = vmatpush1.bf16.msra.mxu1 %v4227_v37  ;;  %v4314_v36 = vld [vmem:[#allocation8 + $0x780] ss:$16 sps:$4 sm:$0xff]   ;;  %v4317_v37 = vld [vmem:[#allocation8 + $0x788] ss:$16 sps:$4 sm:$0xff]  }
 0x137   :  { %2088 = vmatprep.subr.bf16.mxu0 %v4232_v38  ;;  %2260 = vmatprep.subr.bf16.mxu1 %v4235_v39  ;;  %v4322_v38 = vld [vmem:[#allocation8 + $0x7a4] ss:$16 sps:$4 sm:$0xff]   ;;  %v4325_v39 = vld [vmem:[#allocation8 + $0x7ac] ss:$16 sps:$4 sm:$0xff]  }
 0x13a   :  { %2089 = vmatpush1.bf16.msra.mxu0 %v4230_v40  ;;  %2261 = vmatpush1.bf16.msra.mxu1 %v4233_v41  ;;  %v4320_v40 = vld [vmem:[#allocation8 + $0x7a0] ss:$16 sps:$4 sm:$0xff]   ;;  %v4323_v41 = vld [vmem:[#allocation8 + $0x7a8] ss:$16 sps:$4 sm:$0xff]  }
 0x13b   :  { %2090 = vmatprep.subr.bf16.mxu0 %v4238_v42  ;;  %2262 = vmatprep.subr.bf16.mxu1 %v4241_v43  ;;  %v4328_v42 = vld [vmem:[#allocation8 + $0x7c4] ss:$16 sps:$4 sm:$0xff]   ;;  %v4331_v43 = vld [vmem:[#allocation8 + $0x7cc] ss:$16 sps:$4 sm:$0xff]  }
 0x13e   :  { %2091 = vmatpush1.bf16.msra.mxu0 %v4236_v44  ;;  %2263 = vmatpush1.bf16.msra.mxu1 %v4239_v46  ;;  %v4326_v44 = vld [vmem:[#allocation8 + $0x7c0] ss:$16 sps:$4 sm:$0xff]   ;;  %v4329_v46 = vld [vmem:[#allocation8 + $0x7c8] ss:$16 sps:$4 sm:$0xff]  }
 0x13f   :  { %2103 = vmatprep.subr.bf16.mxu0 %v4244_v48  ;;  %2275 = vmatprep.subr.bf16.mxu1 %v4247_v49  ;;  %v4334_v48 = vld [vmem:[#allocation8 + $0x7e4] ss:$16 sps:$4 sm:$0xff]   ;;  %v4337_v49 = vld [vmem:[#allocation8 + $0x7ec] ss:$16 sps:$4 sm:$0xff]  }
 0x141   :  { %2093 = vmatmul.mubr.bf16.vlgmr.msra.gmra.mrb[0].mxu0 %v3454_v51  ;;  %2265 = vmatmul.mubr.bf16.vlgmr.msra.gmra.mrb[0].mxu1 %v3454_v51  ;;  %v4335_v51 = vld [vmem:[#allocation8 + $0x7e8] ss:$16 sps:$4 sm:$0xff]  }
 0x142   :  { %2104 = vmatpush1.bf16.msra.mxu0 %v4242_v50  ;;  %2276 = vmatpush1.bf16.msra.mxu1 %v4245_v54  ;;  %v4332_v50 = vld [vmem:[#allocation8 + $0x7e0] ss:$16 sps:$4 sm:$0xff]   ;;  %v4340_v54 = vld [vmem:[#allocation11 + $0x4] ss:$16 sps:$4 sm:$0xff]  }
 0x143   :  { %2105 = vmatprep.subr.bf16.mxu0 %v4250_v55  ;;  %2277 = vmatprep.subr.bf16.mxu1 %v4253_v56  ;;  %v4343_v55 = vld [vmem:[#allocation11 + $0xc] ss:$16 sps:$4 sm:$0xff]   ;;  %v3456_v56 = vcombine.low %v4821_v52, %v4823_v53  ;;  %v4350_v52 = vld [vmem:[#allocation11 + $0x40] ss:$16 sps:$4 sm:$0xff]   ;;  %v4353_v53 = vld [vmem:[#allocation11 + $0x48] ss:$16 sps:$4 sm:$0xff]  }
 0x144   :  { %2135 = vmatprep.mubr.bf16.mxu0 %v3457_v57  ;;  %2307 = vmatprep.mubr.bf16.mxu1 %v3457_v57  ;;  %v4338_v57 = vld [vmem:[#allocation11] ss:$16 sps:$4 sm:$0xff]  }
 0x146   :  { %2106 = vmatpush1.bf16.msra.mxu0 %v4248_v58  ;;  %2278 = vmatpush1.bf16.msra.mxu1 %v4251_v45  ;;  %v4341_v58 = vld [vmem:[#allocation11 + $0x8] ss:$16 sps:$4 sm:$0xff]   ;;  %v4346_v45 = vld [vmem:[#allocation11 + $0x24] ss:$16 sps:$4 sm:$0xff]  }
 0x147   :  { %2107 = vmatprep.subr.bf16.mxu0 %v4256_v47  ;;  %2279 = vmatprep.subr.bf16.mxu1 %v4259_v59  ;;  %v4349_v47 = vld [vmem:[#allocation11 + $0x2c] ss:$16 sps:$4 sm:$0xff]   ;;  %v4344_v59 = vld [vmem:[#allocation11 + $0x20] ss:$16 sps:$4 sm:$0xff]  }
 0x14a   :  { %2108 = vmatpush1.bf16.msra.mxu0 %v4254_v60  ;;  %2280 = vmatpush1.bf16.msra.mxu1 %v4257_v61  ;;  %v4347_v60 = vld [vmem:[#allocation11 + $0x28] ss:$16 sps:$4 sm:$0xff]   ;;  %v4352_v61 = vld [vmem:[#allocation11 + $0x44] ss:$16 sps:$4 sm:$0xff]  }
 0x14b   :  { %2109 = vmatprep.subr.bf16.mxu0 %v4262_v62  ;;  %2281 = vmatprep.subr.bf16.mxu1 %v4265_v63  ;;  %v4355_v62 = vld [vmem:[#allocation11 + $0x4c] ss:$16 sps:$4 sm:$0xff]   ;;  %v4358_v63 = vld [vmem:[#allocation11 + $0x64] ss:$16 sps:$4 sm:$0xff]  }
 0x14e   :  { %2110 = vmatpush1.bf16.msra.mxu0 %v4260_v0  ;;  %2282 = vmatpush1.bf16.msra.mxu1 %v4263_v1  ;;  %v4361_v0 = vld [vmem:[#allocation11 + $0x6c] ss:$16 sps:$4 sm:$0xff]   ;;  %v4356_v1 = vld [vmem:[#allocation11 + $0x60] ss:$16 sps:$4 sm:$0xff]  }
 0x14f   :  { %2111 = vmatprep.subr.bf16.mxu0 %v4268_v2  ;;  %2283 = vmatprep.subr.bf16.mxu1 %v4271_v3  ;;  %v4359_v2 = vld [vmem:[#allocation11 + $0x68] ss:$16 sps:$4 sm:$0xff]   ;;  %v4364_v3 = vld [vmem:[#allocation11 + $0x84] ss:$16 sps:$4 sm:$0xff]  }
 0x152   :  { %2112 = vmatpush1.bf16.msra.mxu0 %v4266_v4  ;;  %2284 = vmatpush1.bf16.msra.mxu1 %v4269_v5  ;;  %v4367_v4 = vld [vmem:[#allocation11 + $0x8c] ss:$16 sps:$4 sm:$0xff]   ;;  %v4362_v5 = vld [vmem:[#allocation11 + $0x80] ss:$16 sps:$4 sm:$0xff]  }
 0x153   :  { %2113 = vmatprep.subr.bf16.mxu0 %v4274_v6  ;;  %2285 = vmatprep.subr.bf16.mxu1 %v4277_v7  ;;  %v4365_v6 = vld [vmem:[#allocation11 + $0x88] ss:$16 sps:$4 sm:$0xff]   ;;  %v4370_v7 = vld [vmem:[#allocation11 + $0xa4] ss:$16 sps:$4 sm:$0xff]  }
 0x156   :  { %2114 = vmatpush1.bf16.msra.mxu0 %v4272_v8  ;;  %2286 = vmatpush1.bf16.msra.mxu1 %v4275_v9  ;;  %v4373_v8 = vld [vmem:[#allocation11 + $0xac] ss:$16 sps:$4 sm:$0xff]   ;;  %v4368_v9 = vld [vmem:[#allocation11 + $0xa0] ss:$16 sps:$4 sm:$0xff]  }
 0x157   :  { %2115 = vmatprep.subr.bf16.mxu0 %v4280_v10  ;;  %2287 = vmatprep.subr.bf16.mxu1 %v4283_v11  ;;  %v4371_v10 = vld [vmem:[#allocation11 + $0xa8] ss:$16 sps:$4 sm:$0xff]   ;;  %v4376_v11 = vld [vmem:[#allocation11 + $0xc4] ss:$16 sps:$4 sm:$0xff]  }
 0x15a   :  { %2116 = vmatpush1.bf16.msra.mxu0 %v4278_v12  ;;  %2288 = vmatpush1.bf16.msra.mxu1 %v4281_v13  ;;  %v4379_v12 = vld [vmem:[#allocation11 + $0xcc] ss:$16 sps:$4 sm:$0xff]   ;;  %v4374_v13 = vld [vmem:[#allocation11 + $0xc0] ss:$16 sps:$4 sm:$0xff]  }
 0x15b   :  { %2117 = vmatprep.subr.bf16.mxu0 %v4286_v14  ;;  %2289 = vmatprep.subr.bf16.mxu1 %v4289_v15  ;;  %v4377_v14 = vld [vmem:[#allocation11 + $0xc8] ss:$16 sps:$4 sm:$0xff]   ;;  %v4382_v15 = vld [vmem:[#allocation11 + $0xe4] ss:$16 sps:$4 sm:$0xff]  }
 0x15e   :  { %2118 = vmatpush1.bf16.msra.mxu0 %v4284_v16  ;;  %2290 = vmatpush1.bf16.msra.mxu1 %v4287_v17  ;;  %v4385_v16 = vld [vmem:[#allocation11 + $0xec] ss:$16 sps:$4 sm:$0xff]   ;;  %v4380_v17 = vld [vmem:[#allocation11 + $0xe0] ss:$16 sps:$4 sm:$0xff]  }
 0x15f   :  { %2119 = vmatprep.subr.bf16.mxu0 %v4292_v18  ;;  %2291 = vmatprep.subr.bf16.mxu1 %v4295_v19  ;;  %v4383_v18 = vld [vmem:[#allocation11 + $0xe8] ss:$16 sps:$4 sm:$0xff]   ;;  %v4388_v19 = vld [vmem:[#allocation11 + $0x104] ss:$16 sps:$4 sm:$0xff]  }
 0x162   :  { %2120 = vmatpush1.bf16.msra.mxu0 %v4290_v20  ;;  %2292 = vmatpush1.bf16.msra.mxu1 %v4293_v21  ;;  %v4391_v20 = vld [vmem:[#allocation11 + $0x10c] ss:$16 sps:$4 sm:$0xff]   ;;  %v4386_v21 = vld [vmem:[#allocation11 + $0x100] ss:$16 sps:$4 sm:$0xff]  }
 0x163   :  { %2121 = vmatprep.subr.bf16.mxu0 %v4298_v22  ;;  %2293 = vmatprep.subr.bf16.mxu1 %v4301_v23  ;;  %v4389_v22 = vld [vmem:[#allocation11 + $0x108] ss:$16 sps:$4 sm:$0xff]   ;;  %v4394_v23 = vld [vmem:[#allocation11 + $0x124] ss:$16 sps:$4 sm:$0xff]  }
 0x166   :  { %2122 = vmatpush1.bf16.msra.mxu0 %v4296_v24  ;;  %2294 = vmatpush1.bf16.msra.mxu1 %v4299_v25  ;;  %v4397_v24 = vld [vmem:[#allocation11 + $0x12c] ss:$16 sps:$4 sm:$0xff]   ;;  %v4392_v25 = vld [vmem:[#allocation11 + $0x120] ss:$16 sps:$4 sm:$0xff]  }
 0x167   :  { %2123 = vmatprep.subr.bf16.mxu0 %v4304_v26  ;;  %2295 = vmatprep.subr.bf16.mxu1 %v4307_v27  ;;  %v4395_v26 = vld [vmem:[#allocation11 + $0x128] ss:$16 sps:$4 sm:$0xff]   ;;  %v4400_v27 = vld [vmem:[#allocation11 + $0x144] ss:$16 sps:$4 sm:$0xff]  }
 0x16a   :  { %2124 = vmatpush1.bf16.msra.mxu0 %v4302_v28  ;;  %2296 = vmatpush1.bf16.msra.mxu1 %v4305_v29  ;;  %v4403_v28 = vld [vmem:[#allocation11 + $0x14c] ss:$16 sps:$4 sm:$0xff]   ;;  %v4398_v29 = vld [vmem:[#allocation11 + $0x140] ss:$16 sps:$4 sm:$0xff]  }
 0x16b   :  { %2125 = vmatprep.subr.bf16.mxu0 %v4310_v30  ;;  %2297 = vmatprep.subr.bf16.mxu1 %v4313_v31  ;;  %v4401_v30 = vld [vmem:[#allocation11 + $0x148] ss:$16 sps:$4 sm:$0xff]   ;;  %v4406_v31 = vld [vmem:[#allocation11 + $0x164] ss:$16 sps:$4 sm:$0xff]  }
 0x16e   :  { %2126 = vmatpush1.bf16.msra.mxu0 %v4308_v32  ;;  %2298 = vmatpush1.bf16.msra.mxu1 %v4311_v33  ;;  %v4409_v32 = vld [vmem:[#allocation11 + $0x16c] ss:$16 sps:$4 sm:$0xff]   ;;  %v4404_v33 = vld [vmem:[#allocation11 + $0x160] ss:$16 sps:$4 sm:$0xff]  }
 0x16f   :  { %2127 = vmatprep.subr.bf16.mxu0 %v4316_v34  ;;  %2299 = vmatprep.subr.bf16.mxu1 %v4319_v35  ;;  %v4407_v34 = vld [vmem:[#allocation11 + $0x168] ss:$16 sps:$4 sm:$0xff]   ;;  %v4412_v35 = vld [vmem:[#allocation11 + $0x184] ss:$16 sps:$4 sm:$0xff]  }
 0x172   :  { %2128 = vmatpush1.bf16.msra.mxu0 %v4314_v36  ;;  %2300 = vmatpush1.bf16.msra.mxu1 %v4317_v37  ;;  %v4415_v36 = vld [vmem:[#allocation11 + $0x18c] ss:$16 sps:$4 sm:$0xff]   ;;  %v4410_v37 = vld [vmem:[#allocation11 + $0x180] ss:$16 sps:$4 sm:$0xff]  }
 0x173   :  { %2129 = vmatprep.subr.bf16.mxu0 %v4322_v38  ;;  %2301 = vmatprep.subr.bf16.mxu1 %v4325_v39  ;;  %v4413_v38 = vld [vmem:[#allocation11 + $0x188] ss:$16 sps:$4 sm:$0xff]   ;;  %v4418_v39 = vld [vmem:[#allocation11 + $0x1a4] ss:$16 sps:$4 sm:$0xff]  }
 0x176   :  { %2130 = vmatpush1.bf16.msra.mxu0 %v4320_v40  ;;  %2302 = vmatpush1.bf16.msra.mxu1 %v4323_v41  ;;  %v4421_v40 = vld [vmem:[#allocation11 + $0x1ac] ss:$16 sps:$4 sm:$0xff]   ;;  %v4416_v41 = vld [vmem:[#allocation11 + $0x1a0] ss:$16 sps:$4 sm:$0xff]  }
 0x177   :  { %2131 = vmatprep.subr.bf16.mxu0 %v4328_v42  ;;  %2303 = vmatprep.subr.bf16.mxu1 %v4331_v43  ;;  %v4419_v42 = vld [vmem:[#allocation11 + $0x1a8] ss:$16 sps:$4 sm:$0xff]   ;;  %v4424_v43 = vld [vmem:[#allocation11 + $0x1c4] ss:$16 sps:$4 sm:$0xff]  }
 0x17a   :  { %2132 = vmatpush1.bf16.msra.mxu0 %v4326_v44  ;;  %2304 = vmatpush1.bf16.msra.mxu1 %v4329_v46  ;;  %v4427_v44 = vld [vmem:[#allocation11 + $0x1cc] ss:$16 sps:$4 sm:$0xff]   ;;  %v4422_v46 = vld [vmem:[#allocation11 + $0x1c0] ss:$16 sps:$4 sm:$0xff]  }
 0x17b   :  { %2133 = vmatprep.subr.bf16.mxu0 %v4334_v48  ;;  %2305 = vmatprep.subr.bf16.mxu1 %v4337_v49  ;;  %v4425_v48 = vld [vmem:[#allocation11 + $0x1c8] ss:$16 sps:$4 sm:$0xff]   ;;  %v4430_v49 = vld [vmem:[#allocation11 + $0x1e4] ss:$16 sps:$4 sm:$0xff]  }
 0x17e   :  { %2134 = vmatpush1.bf16.msra.mxu0 %v4332_v50  ;;  %2306 = vmatpush1.bf16.msra.mxu1 %v4335_v51  ;;  %v4433_v50 = vld [vmem:[#allocation11 + $0x1ec] ss:$16 sps:$4 sm:$0xff]   ;;  %v4428_v51 = vld [vmem:[#allocation11 + $0x1e0] ss:$16 sps:$4 sm:$0xff]  }
 0x17f   :  { %3150 = vmatprep.subr.bf16.mxu0 %v4340_v54  ;;  %3236 = vmatprep.subr.bf16.mxu1 %v4343_v55  ;;  %v4431_v54 = vld [vmem:[#allocation11 + $0x1e8] ss:$16 sps:$4 sm:$0xff]   ;;  %v4436_v55 = vld [vmem:[#allocation11 + $0x204] ss:$16 sps:$4 sm:$0xff]  }
 0x181   :  { %2136 = vmatmul.mubr.bf16.vlgmr.msra.gmra.mrb[0].mxu0 %v3456_v56  ;;  %2308 = vmatmul.mubr.bf16.vlgmr.msra.gmra.mrb[0].mxu1 %v3456_v56  ;;  %v4439_v56 = vld [vmem:[#allocation11 + $0x20c] ss:$16 sps:$4 sm:$0xff]  }
 0x182   :  { %3151 = vmatpush1.bf16.msra.mxu0 %v4338_v57  ;;  %3237 = vmatpush1.bf16.msra.mxu1 %v4341_v58  ;;  %v2320_v57 = vlaneseq }
 0x183   :  { %3152 = vmatprep.subr.bf16.mxu0 %v4346_v45  ;;  %3238 = vmatprep.subr.bf16.mxu1 %v4349_v47 }
 0x184   :  { %v4830_v58 = vshrl.u32 %v2320_v57, 7 }
 0x186   :  { %3153 = vmatpush1.bf16.msra.mxu0 %v4344_v59  ;;  %3239 = vmatpush1.bf16.msra.mxu1 %v4347_v60  ;;  %v4833_v45 = vsub.s32 0, %v4830_v58  ;;  %v4836_v47 = vsub.s32 2, %v4830_v58  ;;  %v2318_v59 = vld [vmem:[%s4889_s4] sm:$0xf]  ;;  %v4842_v60 = vsub.s32 1, %v4830_v58 }
 0x187   :  { %3154 = vmatprep.subr.bf16.mxu0 %v4352_v61  ;;  %3240 = vmatprep.subr.bf16.mxu1 %v4355_v62  ;;  %v4845_v61 = vsub.s32 3, %v4830_v58 }
 0x188   :  { %v2323_v62 = vrot.slane %v2318_v59, %v4833_v45 }
 0x18a   :  { %3155 = vmatpush1.bf16.msra.mxu0 %v4350_v52  ;;  %3241 = vmatpush1.bf16.msra.mxu1 %v4353_v53  ;;  %v2331_v52 = vrot.slane %v2318_v59, %v4836_v47  ;;  %v2327_v53 = vrot.slane %v2318_v59, %v4842_v60 }
 0x18b   :  { %3156 = vmatprep.subr.bf16.mxu0 %v4358_v63  ;;  %3242 = vmatprep.subr.bf16.mxu1 %v4361_v0  ;;  %v2335_v63 = vrot.slane %v2318_v59, %v4845_v61  ;;  %v4473_v59 = vld [vmem:[#allocation11 + $0x2c8] ss:$16 sps:$4 sm:$0xff]  }
 0x18e   :  { %3157 = vmatpush1.bf16.msra.mxu0 %v4356_v1  ;;  %3243 = vmatpush1.bf16.msra.mxu1 %v4359_v2 }
 0x18f   :  { %3158 = vmatprep.subr.bf16.mxu0 %v4364_v3  ;;  %3244 = vmatprep.subr.bf16.mxu1 %v4367_v4 }
 0x192   :  { %3159 = vmatpush1.bf16.msra.mxu0 %v4362_v5  ;;  %3245 = vmatpush1.bf16.msra.mxu1 %v4365_v6 }
 0x193   :  { %3160 = vmatprep.subr.bf16.mxu0 %v4370_v7  ;;  %3246 = vmatprep.subr.bf16.mxu1 %v4373_v8 }
 0x196   :  { %3161 = vmatpush1.bf16.msra.mxu0 %v4368_v9  ;;  %3247 = vmatpush1.bf16.msra.mxu1 %v4371_v10 }
 0x197   :  { %3162 = vmatprep.subr.bf16.mxu0 %v4376_v11  ;;  %3248 = vmatprep.subr.bf16.mxu1 %v4379_v12 }
 0x19a   :  { %3163 = vmatpush1.bf16.msra.mxu0 %v4374_v13  ;;  %3249 = vmatpush1.bf16.msra.mxu1 %v4377_v14 }
 0x19b   :  { %3164 = vmatprep.subr.bf16.mxu0 %v4382_v15  ;;  %3250 = vmatprep.subr.bf16.mxu1 %v4385_v16 }
 0x19e   :  { %3165 = vmatpush1.bf16.msra.mxu0 %v4380_v17  ;;  %3251 = vmatpush1.bf16.msra.mxu1 %v4383_v18 }
 0x19f   :  { %3166 = vmatprep.subr.bf16.mxu0 %v4388_v19  ;;  %3252 = vmatprep.subr.bf16.mxu1 %v4391_v20 }
 0x1a2   :  { %3167 = vmatpush1.bf16.msra.mxu0 %v4386_v21  ;;  %3253 = vmatpush1.bf16.msra.mxu1 %v4389_v22 }
 0x1a3   :  { %3168 = vmatprep.subr.bf16.mxu0 %v4394_v23  ;;  %3254 = vmatprep.subr.bf16.mxu1 %v4397_v24 }
 0x1a6   :  { %3169 = vmatpush1.bf16.msra.mxu0 %v4392_v25  ;;  %3255 = vmatpush1.bf16.msra.mxu1 %v4395_v26 }
 0x1a7   :  { %3170 = vmatprep.subr.bf16.mxu0 %v4400_v27  ;;  %3256 = vmatprep.subr.bf16.mxu1 %v4403_v28  ;;  %v4434_v28 = vld [vmem:[#allocation11 + $0x200] ss:$16 sps:$4 sm:$0xff]  }
 0x1aa   :  { %3171 = vmatpush1.bf16.msra.mxu0 %v4398_v29  ;;  %3257 = vmatpush1.bf16.msra.mxu1 %v4401_v30  ;;  %v4437_v29 = vld [vmem:[#allocation11 + $0x208] ss:$16 sps:$4 sm:$0xff]   ;;  %v4442_v30 = vld [vmem:[#allocation11 + $0x224] ss:$16 sps:$4 sm:$0xff]  }
 0x1ab   :  { %3172 = vmatprep.subr.bf16.mxu0 %v4406_v31  ;;  %3258 = vmatprep.subr.bf16.mxu1 %v4409_v32  ;;  %v4445_v31 = vld [vmem:[#allocation11 + $0x22c] ss:$16 sps:$4 sm:$0xff]   ;;  %v4440_v32 = vld [vmem:[#allocation11 + $0x220] ss:$16 sps:$4 sm:$0xff]  }
 0x1ae   :  { %3173 = vmatpush1.bf16.msra.mxu0 %v4404_v33  ;;  %3259 = vmatpush1.bf16.msra.mxu1 %v4407_v34  ;;  %v4443_v33 = vld [vmem:[#allocation11 + $0x228] ss:$16 sps:$4 sm:$0xff]   ;;  %v4448_v34 = vld [vmem:[#allocation11 + $0x244] ss:$16 sps:$4 sm:$0xff]  }
 0x1af   :  { %3174 = vmatprep.subr.bf16.mxu0 %v4412_v35  ;;  %3260 = vmatprep.subr.bf16.mxu1 %v4415_v36  ;;  %v4451_v35 = vld [vmem:[#allocation11 + $0x24c] ss:$16 sps:$4 sm:$0xff]   ;;  %v4446_v36 = vld [vmem:[#allocation11 + $0x240] ss:$16 sps:$4 sm:$0xff]  }
 0x1b2   :  { %3175 = vmatpush1.bf16.msra.mxu0 %v4410_v37  ;;  %3261 = vmatpush1.bf16.msra.mxu1 %v4413_v38  ;;  %v4449_v37 = vld [vmem:[#allocation11 + $0x248] ss:$16 sps:$4 sm:$0xff]   ;;  %v4454_v38 = vld [vmem:[#allocation11 + $0x264] ss:$16 sps:$4 sm:$0xff]  }
 0x1b3   :  { %3176 = vmatprep.subr.bf16.mxu0 %v4418_v39  ;;  %3262 = vmatprep.subr.bf16.mxu1 %v4421_v40  ;;  %v4457_v39 = vld [vmem:[#allocation11 + $0x26c] ss:$16 sps:$4 sm:$0xff]   ;;  %v4452_v40 = vld [vmem:[#allocation11 + $0x260] ss:$16 sps:$4 sm:$0xff]  }
 0x1b6   :  { %3177 = vmatpush1.bf16.msra.mxu0 %v4416_v41  ;;  %3263 = vmatpush1.bf16.msra.mxu1 %v4419_v42  ;;  %v4455_v41 = vld [vmem:[#allocation11 + $0x268] ss:$16 sps:$4 sm:$0xff]   ;;  %v4460_v42 = vld [vmem:[#allocation11 + $0x284] ss:$16 sps:$4 sm:$0xff]  }
 0x1b7   :  { %3178 = vmatprep.subr.bf16.mxu0 %v4424_v43  ;;  %3264 = vmatprep.subr.bf16.mxu1 %v4427_v44  ;;  %v4463_v43 = vld [vmem:[#allocation11 + $0x28c] ss:$16 sps:$4 sm:$0xff]   ;;  %v4458_v44 = vld [vmem:[#allocation11 + $0x280] ss:$16 sps:$4 sm:$0xff]  }
 0x1ba   :  { %3179 = vmatpush1.bf16.msra.mxu0 %v4422_v46  ;;  %3265 = vmatpush1.bf16.msra.mxu1 %v4425_v48  ;;  %v4461_v46 = vld [vmem:[#allocation11 + $0x288] ss:$16 sps:$4 sm:$0xff]   ;;  %v4466_v48 = vld [vmem:[#allocation11 + $0x2a4] ss:$16 sps:$4 sm:$0xff]  }
 0x1bb   :  { %3180 = vmatprep.subr.bf16.mxu0 %v4430_v49  ;;  %3266 = vmatprep.subr.bf16.mxu1 %v4433_v50  ;;  %v4469_v49 = vld [vmem:[#allocation11 + $0x2ac] ss:$16 sps:$4 sm:$0xff]   ;;  %v4464_v50 = vld [vmem:[#allocation11 + $0x2a0] ss:$16 sps:$4 sm:$0xff]  }
 0x1be   :  { %3181 = vmatpush1.bf16.msra.mxu0 %v4428_v51  ;;  %3267 = vmatpush1.bf16.msra.mxu1 %v4431_v54  ;;  %v4467_v51 = vld [vmem:[#allocation11 + $0x2a8] ss:$16 sps:$4 sm:$0xff]   ;;  %v4472_v54 = vld [vmem:[#allocation11 + $0x2c4] ss:$16 sps:$4 sm:$0xff]  }
 0x1bf   :  { %3193 = vmatprep.subr.bf16.mxu0 %v4436_v55  ;;  %3279 = vmatprep.subr.bf16.mxu1 %v4439_v56  ;;  %v4475_v55 = vld [vmem:[#allocation11 + $0x2cc] ss:$16 sps:$4 sm:$0xff]   ;;  %v4470_v56 = vld [vmem:[#allocation11 + $0x2c0] ss:$16 sps:$4 sm:$0xff]  }
 0x254   :  { %v2137_v0 = vpop.f32.mrb[0].mxu0  ;;  %v2309_v1 = vpop.f32.mrb[0].mxu1 }
 0x255   :  { %v2340_v2 = vadd.f32 %v2323_v62, %v2137_v0  ;;  %v2342_v3 = vadd.f32 %v2331_v52, %v2309_v1  ;;  %v2139_v4 = vpop.f32.mrb[1].mxu0  ;;  %v2311_v5 = vpop.f32.mrb[1].mxu1  ;;  %v4484_v0 = vld [vmem:[#allocation11 + $0x304] ss:$16 sps:$4 sm:$0xff]   ;;  %v4487_v1 = vld [vmem:[#allocation11 + $0x30c] ss:$16 sps:$4 sm:$0xff]  }
 0x256   :  { %v2341_v6 = vadd.f32 %v2327_v53, %v2139_v4  ;;  %v2343_v7 = vadd.f32 %v2335_v63, %v2311_v5  ;;  %v2141_v8 = vpop.f32.mrb[2].mxu0  ;;  %v2313_v9 = vpop.f32.mrb[2].mxu1  ;;  %v4490_v4 = vld [vmem:[#allocation11 + $0x324] ss:$16 sps:$4 sm:$0xff]   ;;  %v4493_v5 = vld [vmem:[#allocation11 + $0x32c] ss:$16 sps:$4 sm:$0xff]  }
 0x257   :  { %v2344_v10 = vadd.f32 %v2323_v62, %v2141_v8  ;;  %v2346_v11 = vadd.f32 %v2331_v52, %v2313_v9  ;;  %v2143_v12 = vpop.f32.mrb[3].mxu0  ;;  %v2315_v13 = vpop.f32.mrb[3].mxu1  ;;  %v2348_v16 = vmax.f32 %v2340_v2, 0.0  ;;  %v2350_v17 = vmax.f32 %v2342_v3, 0.0  ;;  %v4478_v62 = vld [vmem:[#allocation11 + $0x2e4] ss:$16 sps:$4 sm:$0xff]  }
 0x258   :  { %v2345_v14 = vadd.f32 %v2327_v53, %v2143_v12  ;;  %v2347_v15 = vadd.f32 %v2335_v63, %v2315_v13  ;;  %v2349_v20 = vmax.f32 %v2341_v6, 0.0  ;;  %v2351_v21 = vmax.f32 %v2343_v7, 0.0  ;;  %v4481_v52 = vld [vmem:[#allocation11 + $0x2ec] ss:$16 sps:$4 sm:$0xff]   ;;  %v4476_v53 = vld [vmem:[#allocation11 + $0x2e0] ss:$16 sps:$4 sm:$0xff]  }
 0x259   :  { %v2352_v18 = vmax.f32 %v2344_v10, 0.0  ;;  %v2354_v19 = vmax.f32 %v2346_v11, 0.0  ;;  %v4479_v63 = vld [vmem:[#allocation11 + $0x2e8] ss:$16 sps:$4 sm:$0xff]   ;;  %v4482_v2 = vld [vmem:[#allocation11 + $0x300] ss:$16 sps:$4 sm:$0xff]  }
 0x25a   :  { %v2353_v22 = vmax.f32 %v2345_v14, 0.0  ;;  %v2355_v23 = vmax.f32 %v2347_v15, 0.0  ;;  %v4485_v3 = vld [vmem:[#allocation11 + $0x308] ss:$16 sps:$4 sm:$0xff]   ;;  %v4488_v6 = vld [vmem:[#allocation11 + $0x320] ss:$16 sps:$4 sm:$0xff]  }
 0x25b   :  { %v2356_v24 = vpack.c.bf16 %v2352_v18, %v2348_v16  ;;  %v4851_v25 = vpack.c.bf16 %v2354_v19, %v2350_v17  ;;  %v4491_v7 = vld [vmem:[#allocation11 + $0x328] ss:$16 sps:$4 sm:$0xff]   ;;  %v4496_v8 = vld [vmem:[#allocation11 + $0x344] ss:$16 sps:$4 sm:$0xff]   ;;  %v4499_v9 = vld [vmem:[#allocation11 + $0x34c] ss:$16 sps:$4 sm:$0xff]  }
 0x25c   :  { %v2357_v26 = vpack.c.bf16 %v2353_v22, %v2349_v20  ;;  %v2359_v27 = vpack.c.bf16 %v2355_v23, %v2351_v21  ;;  %v4494_v10 = vld [vmem:[#allocation11 + $0x340] ss:$16 sps:$4 sm:$0xff]   ;;  %v4497_v11 = vld [vmem:[#allocation11 + $0x348] ss:$16 sps:$4 sm:$0xff]   ;;  %v4502_v12 = vld [vmem:[#allocation11 + $0x364] ss:$16 sps:$4 sm:$0xff]  }
 0x25d   :  { %v4505_v13 = vld [vmem:[#allocation11 + $0x36c] ss:$16 sps:$4 sm:$0xff]   ;;  %v4500_v14 = vld [vmem:[#allocation11 + $0x360] ss:$16 sps:$4 sm:$0xff]   ;;  %v4503_v15 = vld [vmem:[#allocation11 + $0x368] ss:$16 sps:$4 sm:$0xff]  }
 0x25e   :  { %3182 = vmatprep.mubr.bf16.mxu0 %v2357_v26  ;;  %3268 = vmatprep.mubr.bf16.mxu1 %v2357_v26  ;;  %v4508_v16 = vld [vmem:[#allocation11 + $0x384] ss:$16 sps:$4 sm:$0xff]   ;;  %v4511_v17 = vld [vmem:[#allocation11 + $0x38c] ss:$16 sps:$4 sm:$0xff]   ;;  %v4506_v18 = vld [vmem:[#allocation11 + $0x380] ss:$16 sps:$4 sm:$0xff]  }
 0x25f   :  { %3183 = vmatmul.mubr.bf16.vlgmr.msra.gmra.mrb[4].mxu0 %v2356_v24  ;;  %3269 = vmatmul.mubr.bf16.vlgmr.msra.gmra.mrb[4].mxu1 %v2356_v24  ;;  %v4509_v19 = vld [vmem:[#allocation11 + $0x388] ss:$16 sps:$4 sm:$0xff]   ;;  %v4514_v20 = vld [vmem:[#allocation11 + $0x3a4] ss:$16 sps:$4 sm:$0xff]   ;;  %v4517_v21 = vld [vmem:[#allocation11 + $0x3ac] ss:$16 sps:$4 sm:$0xff]  }
 0x260   :  { %3194 = vmatpush1.bf16.msra.mxu0 %v4434_v28  ;;  %3280 = vmatpush1.bf16.msra.mxu1 %v4437_v29  ;;  %v4512_v22 = vld [vmem:[#allocation11 + $0x3a0] ss:$16 sps:$4 sm:$0xff]   ;;  %v4515_v23 = vld [vmem:[#allocation11 + $0x3a8] ss:$16 sps:$4 sm:$0xff]   ;;  %v4520_v24 = vld [vmem:[#allocation11 + $0x3c4] ss:$16 sps:$4 sm:$0xff]  }
 0x261   :  { %3225 = vmatprep.mubr.bf16.mxu0 %v2359_v27  ;;  %3311 = vmatprep.mubr.bf16.mxu1 %v2359_v27  ;;  %v4523_v26 = vld [vmem:[#allocation11 + $0x3cc] ss:$16 sps:$4 sm:$0xff]   ;;  %v4518_v27 = vld [vmem:[#allocation11 + $0x3c0] ss:$16 sps:$4 sm:$0xff]   ;;  %v4521_v28 = vld [vmem:[#allocation11 + $0x3c8] ss:$16 sps:$4 sm:$0xff]  }
 0x262   :  { %3195 = vmatprep.subr.bf16.mxu0 %v4442_v30  ;;  %3281 = vmatprep.subr.bf16.mxu1 %v4445_v31  ;;  %v4526_v29 = vld [vmem:[#allocation11 + $0x3e4] ss:$16 sps:$4 sm:$0xff]   ;;  %v4529_v30 = vld [vmem:[#allocation11 + $0x3ec] ss:$16 sps:$4 sm:$0xff]   ;;  %v4524_v31 = vld [vmem:[#allocation11 + $0x3e0] ss:$16 sps:$4 sm:$0xff]  }
 0x264   :  { %3196 = vmatpush1.bf16.msra.mxu0 %v4440_v32  ;;  %3282 = vmatpush1.bf16.msra.mxu1 %v4443_v33  ;;  %v4527_v32 = vld [vmem:[#allocation11 + $0x3e8] ss:$16 sps:$4 sm:$0xff]   ;;  %v3370_v33 = vld [vmem:[#allocation2] sm:$0x1] }
 0x265   :  { %3197 = vmatprep.subr.bf16.mxu0 %v4448_v34  ;;  %3283 = vmatprep.subr.bf16.mxu1 %v4451_v35  ;;  %v2488_v34 = vld [vmem:[%s4891_s6] sm:$0xf]  ;;  %s4682_s6 = smov [#allocation12]  }
 0x266   :  { %3373 = vperm.xlu1 %3903, %v3370_v33   ;;  %v2493_v35 = vrot.slane %v2488_v34, %v4833_v45 }
 0x268   :  { %3198 = vmatpush1.bf16.msra.mxu0 %v4446_v36  ;;  %3284 = vmatpush1.bf16.msra.mxu1 %v4449_v37  ;;  %v2501_v36 = vrot.slane %v2488_v34, %v4836_v47  ;;  %v3330_v37 = vld [vmem:[%s4892_s7] sm:$0xf]  ;;  %s3406_s7 = sshll.u32 %s4682_s6, 4  ;;  %s3407_s7 = int_to_ptr.vmem [resolvable:$true] %s3406_s7 }
 0x269   :  { %3199 = vmatprep.subr.bf16.mxu0 %v4454_v38  ;;  %3285 = vmatprep.subr.bf16.mxu1 %v4457_v39  ;;  %v2497_v38 = vrot.slane %v2488_v34, %v4842_v60  ;;  %v2505_v39 = vrot.slane %v2488_v34, %v4845_v61  ;;  %s4640_s10 = scalar_lea.vmem %s3407_s7, 16  ;;  %s4644_s11 = scalar_lea.vmem %s3407_s7, 32 }
 0x26a   :  { %p4641_p12 = scmp.ne.s32.totalorder %s3407_s7, %s4640_s10  ;;  %p4645_p13 = scmp.lt.s32.totalorder %s3407_s7, %s3407_s7 }
 0x26b   :  { %p4646_p0 = scmp.lt.s32.totalorder %s4644_s11, %s4640_s10 }
 0x26c   :  { %3200 = vmatpush1.bf16.msra.mxu0 %v4452_v40  ;;  %3286 = vmatpush1.bf16.msra.mxu1 %v4455_v41 }
 0x26d   :  { %3201 = vmatprep.subr.bf16.mxu0 %v4460_v42  ;;  %3287 = vmatprep.subr.bf16.mxu1 %v4463_v43  ;;  %v3335_v42 = vrot.slane %v3330_v37, %v4833_v45  ;;  %p4647_p1 = por %p4646_p0, %p4645_p13 }
 0x26f   :  { %p4648_p2 = pnand %p4647_p1, %p4641_p12 }
 0x270   :  { %3202 = vmatpush1.bf16.msra.mxu0 %v4458_v44  ;;  %3288 = vmatpush1.bf16.msra.mxu1 %v4461_v46 }
 0x271   :  { %3203 = vmatprep.subr.bf16.mxu0 %v4466_v48  ;;  %3289 = vmatprep.subr.bf16.mxu1 %v4469_v49  ;;  %v3339_v49 = vrot.slane %v3330_v37, %v4842_v60 }
 0x274   :  { %3204 = vmatpush1.bf16.msra.mxu0 %v4464_v50  ;;  %3290 = vmatpush1.bf16.msra.mxu1 %v4467_v51 }
 0x275   :  { %3205 = vmatprep.subr.bf16.mxu0 %v4472_v54  ;;  %3291 = vmatprep.subr.bf16.mxu1 %v4475_v55 }
 0x278   :  { %3206 = vmatpush1.bf16.msra.mxu0 %v4470_v56  ;;  %3292 = vmatpush1.bf16.msra.mxu1 %v4473_v59  ;;  %v3343_v56 = vrot.slane %v3330_v37, %v4836_v47 }
 0x279   :  { %3207 = vmatprep.subr.bf16.mxu0 %v4478_v62  ;;  %3293 = vmatprep.subr.bf16.mxu1 %v4481_v52 }
 0x27c   :  { %3208 = vmatpush1.bf16.msra.mxu0 %v4476_v53  ;;  %3294 = vmatpush1.bf16.msra.mxu1 %v4479_v63 }
 0x27d   :  { %3209 = vmatprep.subr.bf16.mxu0 %v4484_v0  ;;  %3295 = vmatprep.subr.bf16.mxu1 %v4487_v1 }
 0x280   :  { %3210 = vmatpush1.bf16.msra.mxu0 %v4482_v2  ;;  %3296 = vmatpush1.bf16.msra.mxu1 %v4485_v3 }
 0x281   :  { %3211 = vmatprep.subr.bf16.mxu0 %v4490_v4  ;;  %3297 = vmatprep.subr.bf16.mxu1 %v4493_v5  ;;  %v3347_v5 = vrot.slane %v3330_v37, %v4845_v61 }
 0x284   :  { %3212 = vmatpush1.bf16.msra.mxu0 %v4488_v6  ;;  %3298 = vmatpush1.bf16.msra.mxu1 %v4491_v7 }
 0x285   :  { %3213 = vmatprep.subr.bf16.mxu0 %v4496_v8  ;;  %3299 = vmatprep.subr.bf16.mxu1 %v4499_v9 }
 0x288   :  { %3214 = vmatpush1.bf16.msra.mxu0 %v4494_v10  ;;  %3300 = vmatpush1.bf16.msra.mxu1 %v4497_v11 }
 0x289   :  { %3215 = vmatprep.subr.bf16.mxu0 %v4502_v12  ;;  %3301 = vmatprep.subr.bf16.mxu1 %v4505_v13 }
 0x28c   :  { %3216 = vmatpush1.bf16.msra.mxu0 %v4500_v14  ;;  %3302 = vmatpush1.bf16.msra.mxu1 %v4503_v15 }
 0x28d   :  { %3217 = vmatprep.subr.bf16.mxu0 %v4508_v16  ;;  %3303 = vmatprep.subr.bf16.mxu1 %v4511_v17 }
 0x290   :  { %3218 = vmatpush1.bf16.msra.mxu0 %v4506_v18  ;;  %3304 = vmatpush1.bf16.msra.mxu1 %v4509_v19 }
 0x291   :  { %3219 = vmatprep.subr.bf16.mxu0 %v4514_v20  ;;  %3305 = vmatprep.subr.bf16.mxu1 %v4517_v21  ;;  %v3385_v21 = vand.u32 127, %v2320_v57 }
 0x294   :  { %3220 = vmatpush1.bf16.msra.mxu0 %v4512_v22  ;;  %3306 = vmatpush1.bf16.msra.mxu1 %v4515_v23  ;;  %v3390_v23 = vadd.s32 4294967288, %v3385_v21 }
 0x295   :  { %3221 = vmatprep.subr.bf16.mxu0 %v4520_v24  ;;  %3307 = vmatprep.subr.bf16.mxu1 %v4523_v26  ;;  %v3388_v26 = vsub.s32 %v3385_v21, %v4830_v58 }
 0x298   :  { %3222 = vmatpush1.bf16.msra.mxu0 %v4518_v27  ;;  %3308 = vmatpush1.bf16.msra.mxu1 %v4521_v28  ;;  %v3393_v28 = vsub.s32 %v3390_v23, %v4830_v58 }
 0x299   :  { %3223 = vmatprep.subr.bf16.mxu0 %v4526_v29  ;;  %3309 = vmatprep.subr.bf16.mxu1 %v4529_v30 }
 0x29c   :  { %3224 = vmatpush1.bf16.msra.mxu0 %v4524_v31  ;;  %3310 = vmatpush1.bf16.msra.mxu1 %v4527_v32 }
 0x29f   :  { %3226 = vmatmul.mubr.bf16.vlgmr.msra.gmra.mrb[4].mxu0 %v4851_v25  ;;  %3312 = vmatmul.mubr.bf16.vlgmr.msra.gmra.mrb[4].mxu1 %v4851_v25 }
 0x2e5   :  { %v3374_v61 = vpop.permute.xlu1 %3373 }
 0x2e6   :  { %v3379_v22 = vrot.slane %v3374_v61, %v4833_v45 }
 0x372   :  { %v3227_v40 = vpop.f32.mrb[4].mxu0  ;;  %v3313_v25 = vpop.f32.mrb[4].mxu1 }
 0x373   :  { %v3842_v41 = vadd.f32 %v3227_v40, %v2493_v35  ;;  %v3846_v43 = vadd.f32 %v3313_v25, %v2501_v36  ;;  %v3229_v44 = vpop.f32.mrb[5].mxu0  ;;  %v3315_v46 = vpop.f32.mrb[5].mxu1 }
 0x374   :  { %v3843_v48 = vadd.f32 %v3229_v44, %v2497_v38  ;;  %v3847_v50 = vadd.f32 %v3315_v46, %v2505_v39  ;;  %v3231_v51 = vpop.f32.mrb[6].mxu0  ;;  %v3317_v54 = vpop.f32.mrb[6].mxu1 }
 0x375   :  { %v3322_v55 = vmax.f32 %v3842_v41, 0.0  ;;  %v3844_v59 = vadd.f32 %v3231_v51, %v2493_v35  ;;  %v3848_v62 = vadd.f32 %v3317_v54, %v2501_v36  ;;  %v3233_v52 = vpop.f32.mrb[7].mxu0  ;;  %v3319_v53 = vpop.f32.mrb[7].mxu1  ;;  %v3324_v63 = vmax.f32 %v3846_v43, 0.0 }
 0x376   :  { %v3323_v0 = vmax.f32 %v3843_v48, 0.0  ;;  %v3845_v1 = vadd.f32 %v3233_v52, %v2497_v38  ;;  %v3849_v2 = vadd.f32 %v3319_v53, %v2505_v39  ;;  %v3325_v60 = vmax.f32 %v3847_v50, 0.0 }
 0x377   :  { %v3352_v3 = vmul.f32 %v3335_v42, %v3322_v55  ;;  %v3326_v4 = vmax.f32 %v3844_v59, 0.0  ;;  %v3328_v7 = vmax.f32 %v3848_v62, 0.0  ;;  %v3354_v10 = vmul.f32 %v3343_v56, %v3324_v63 }
 0x378   :  { %v3353_v6 = vmul.f32 %v3339_v49, %v3323_v0  ;;  %v3327_v8 = vmax.f32 %v3845_v1, 0.0  ;;  %v3329_v47 = vmax.f32 %v3849_v2, 0.0  ;;  %v3355_v15 = vmul.f32 %v3347_v5, %v3325_v60 }
 0x379   :  { %v3356_v9 = vmul.f32 %v3335_v42, %v3326_v4  ;;  %v3358_v13 = vmul.f32 %v3343_v56, %v3328_v7 }
 0x37a   :  { %v3357_v11 = vmul.f32 %v3339_v49, %v3327_v8  ;;  %v3360_v12 = vadd.f32 %v3353_v6, %v3352_v3  ;;  %v3359_v17 = vmul.f32 %v3347_v5, %v3329_v47 }
 0x37c   :  { %v3365_v14 = vadd.f32 %v3357_v11, %v3356_v9  ;;  %v3361_v16 = vadd.f32 %v3360_v12, %v3354_v10 }
 0x37e   :  { %v3362_v18 = vadd.f32 %v3361_v16, %v3355_v15  ;;  %v3366_v19 = vadd.f32 %v3365_v14, %v3358_v13 }
 0x380   :  { %3363 = vadd.xlane.f32.xlu0 %v3362_v18  ;;  %v3367_v20 = vadd.f32 %v3366_v19, %v3359_v17 }
 0x384   :  { %3368 = vadd.xlane.f32.xlu0 %v3367_v20 }
 0x40d   :  { %v3364_v24 = vpop.xlane.xlu0 %3363 }
 0x40e   :  { %v3380_v27 = vadd.f32 %v3379_v22, %v3364_v24 }
 0x410   :  { %v3389_v31 = vrot.slane %v3380_v27, %v3388_v26 }
 0x411   :  { %v3369_v29 = vpop.xlane.xlu0 %3368 }
 0x412   :  { %v3381_v30 = vadd.f32 %v3379_v22, %v3369_v29 }
 0x414   :  { %v3394_v32 = vrot.slane %v3381_v30, %v3393_v28 }
 0x416   :  { %v3396_v33 = vsel %vm3395_vm0, %v3394_v32, %v3389_v31 }
 0x417   :  { %3399 = vst.msk [vmem:[#allocation12] sm:$0x1] %vm3398_vm1, %v3396_v33 }
 0x418   :  { %4651 = shalt.err (!%p4648_p2)
}
 0x419   :  { %s4652_s1 = scalar_lea.hbm %s4894_s9, 16 }
 0x41a   :  { %p4653_p3 = scmp.ne.s32.totalorder %s4894_s9, %s4652_s1  ;;  %p4656_p4 = scmp.lt.u32.totalorder %s4652_s1, %s4894_s9 }
 0x41c   :  { %p4658_p5 = pnand %p4656_p4, %p4653_p3 }
 0x41e   :  { %4661 = shalt.err (!%p4658_p5)
}
 0x41f   :  { %3409 = dma.vmem_to_hbm [thread:$0]  %s3407_s7, 16, %s4894_s9, [#allocation5]  }
 0x420   :  { %4668 = dma.done.wait [#allocation5], 16  }
 0x421   :  { %4669 = vsyncadd [#allocation5], 4294967280 }
 0x422   :  { %3413 = vsyncpa [#allocation4], 1 }
 0x423   :  { %3414 = vsyncpa [#allocation7], 1 }
 0x424   :  { %3415 = vsyncpa [#allocation10], 1 }
 0x425   :  { %3416 = vsyncpa [#allocation5], 1 }

// kernel: tpu_custom_call.1
= control target key start
LH: loop header
LB: loop body
LE: loop exit
PB: predicated region body
PF: predicated region fallthrough
CT: control target
= control target key end

     0   :  { %s4885_s0 = inlined_call_operand.hbm [shape: bf16[16,1024], index: 0, kind: input, shape index: {}]   ;;  %s4886_s1 = inlined_call_operand.hbm [shape: bf16[16,128], index: 1, kind: input, shape index: {}]   ;;  %s4887_s2 = inlined_call_operand.hbm [shape: bf16[1024,512], index: 2, kind: input, shape index: {}]   ;;  %s4888_s3 = inlined_call_operand.hbm [shape: bf16[128,512], index: 3, kind: input, shape index: {}]   ;;  %s4889_s4 = inlined_call_operand.vmem [shape: f32[1,512], index: 4, kind: input, shape index: {}]   ;;  %s4890_s5 = inlined_call_operand.hbm [shape: bf16[512,512], index: 5, kind: input, shape index: {}]   ;;  %s4891_s6 = inlined_call_operand.vmem [shape: f32[1,512], index: 6, kind: input, shape index: {}]   ;;  %s4892_s7 = inlined_call_operand.vmem [shape: f32[1,512], index: 7, kind: input, shape index: {}]   ;;  %s4893_s8 = inlined_call_operand.<no memory space> [shape: f32[1,1], index: 8, kind: input, shape index: {}]   ;;  %s4894_s9 = inlined_call_operand.hbm [shape: f32[1,16], index: 9, kind: output, shape index: {}]  }
   0x1   :  { %v14_v0 = vstv %s4893_s8 }
   0x2   :  { %15 = vst [vmem:[#allocation2] sm:$0x1] %v14_v0 }
   0x3   :  { %16 = vsyncpa [#allocation4], 0 }
   0x4   :  { %17 = vsyncpa [#allocation7], 0 }
   0x5   :  { %18 = vsyncpa [#allocation10], 0 }
   0x6   :  { %19 = vsyncpa [#allocation5], 0  ;;  %s4670_s11 = smov [#allocation6]   ;;  %s4530_s15 = scalar_lea.hbm %s4886_s1, 128 }
   0x7   :  { %s37_s12 = sshll.u32 %s4670_s11, 4  ;;  %p4531_p0 = scmp.ne.s32.totalorder %s4886_s1, %s4530_s15  ;;  %s38_s12 = int_to_ptr.vmem [resolvable:$true] %s37_s12 }
   0x8   :  { %p4534_p1 = scmp.lt.u32.totalorder %s4530_s15, %s4886_s1 }
   0xa   :  { %p4536_p2 = pnand %p4534_p1, %p4531_p0 }
   0xc   :  { %4539 = shalt.err (!%p4536_p2)
}
   0xd   :  { %s4540_s8 = scalar_lea.vmem %s38_s12, 128  ;;  %p4545_p4 = scmp.lt.s32.totalorder %s38_s12, %s38_s12 }
   0xe   :  { %p4541_p3 = scmp.ne.s32.totalorder %s38_s12, %s4540_s8  ;;  %p4546_p5 = scmp.lt.s32.totalorder %s4540_s8, %s4540_s8 }
  0x10   :  { %p4547_p6 = por %p4546_p5, %p4545_p4 }
  0x12   :  { %p4548_p7 = pnand %p4547_p6, %p4541_p3 }
  0x14   :  { %4551 = shalt.err (!%p4548_p7)
}
  0x15   :  { %s4671_s20 = smov 64   ;;  %s4672_s21 = smov 4  }
  0x16   :  { %43 = dma.hbm_to_vmem [thread:$0]  %s4886_s1, 128, %s38_s12, [#allocation7], %s4671_s20, %s4671_s20, %s4672_s21  }
  0x17   :  { %s4673_s24 = smov [#allocation9]   ;;  %s4674_s26 = smov [#allocation3]  }
  0x18   :  { %s61_s25 = sshll.u32 %s4673_s24, 4  ;;  %s25_s27 = sshll.u32 %s4674_s26, 4  ;;  %s62_s25 = int_to_ptr.vmem [resolvable:$true] %s61_s25  ;;  %s26_s27 = int_to_ptr.vmem [resolvable:$true] %s25_s27 }
  0x19   :  { %s4552_s30 = scalar_lea.hbm %s4888_s3, 4096 }
  0x1a   :  { %p4553_p8 = scmp.ne.s32.totalorder %s4888_s3, %s4552_s30  ;;  %p4556_p9 = scmp.lt.u32.totalorder %s4552_s30, %s4888_s3 }
  0x1c   :  { %p4558_p10 = pnand %p4556_p9, %p4553_p8 }
  0x1e   :  { %4561 = shalt.err (!%p4558_p10)
}
  0x1f   :  { %s4562_s1 = scalar_lea.vmem %s62_s25, 4096  ;;  %p4567_p12 = scmp.lt.s32.totalorder %s62_s25, %s62_s25 }
  0x20   :  { %p4563_p11 = scmp.ne.s32.totalorder %s62_s25, %s4562_s1  ;;  %p4568_p13 = scmp.lt.s32.totalorder %s4562_s1, %s4562_s1 }
  0x22   :  { %p4569_p0 = por %p4568_p13, %p4567_p12 }
  0x24   :  { %p4570_p1 = pnand %p4569_p0, %p4563_p11 }
  0x26   :  { %4573 = shalt.err (!%p4570_p1)
}
  0x27   :  { %s4675_s12 = smov 256   ;;  %s4676_s15 = smov 16  }
  0x28   :  { %67 = dma.hbm_to_vmem [thread:$0]  %s4888_s3, 4096, %s62_s25, [#allocation10], %s4675_s12, %s4675_s12, %s4676_s15  }
  0x29   :  { %s4574_s8 = scalar_lea.hbm %s4885_s0, 1024 }
  0x2a   :  { %p4575_p2 = scmp.ne.s32.totalorder %s4885_s0, %s4574_s8  ;;  %p4578_p3 = scmp.lt.u32.totalorder %s4574_s8, %s4885_s0 }
  0x2c   :  { %p4580_p4 = pnand %p4578_p3, %p4575_p2 }
  0x2e   :  { %4583 = shalt.err (!%p4580_p4)
}
  0x2f   :  { %s4584_s24 = scalar_lea.vmem %s26_s27, 1024  ;;  %p4589_p6 = scmp.lt.s32.totalorder %s26_s27, %s26_s27 }
  0x30   :  { %p4585_p5 = scmp.ne.s32.totalorder %s26_s27, %s4584_s24  ;;  %p4590_p7 = scmp.lt.s32.totalorder %s4584_s24, %s4584_s24 }
  0x32   :  { %p4591_p8 = por %p4590_p7, %p4589_p6 }
  0x34   :  { %p4592_p9 = pnand %p4591_p8, %p4585_p5 }
  0x36   :  { %4595 = shalt.err (!%p4592_p9)
}
  0x37   :  { %s4677_s3 = smov 512   ;;  %s4678_s25 = smov 32  }
  0x38   :  { %31 = dma.hbm_to_vmem [thread:$0]  %s4885_s0, 1024, %s26_s27, [#allocation4], %s4677_s3, %s4677_s3, %s4678_s25  }
  0x39   :  { %s4679_s29 = smov [#allocation8]   ;;  %s4680_s10 = smov [#allocation11]  }
  0x3a   :  { %s49_s30 = sshll.u32 %s4679_s29, 4  ;;  %s75_s11 = sshll.u32 %s4680_s10, 4  ;;  %s50_s30 = int_to_ptr.vmem [resolvable:$true] %s49_s30  ;;  %s76_s11 = int_to_ptr.vmem [resolvable:$true] %s75_s11 }
  0x3b   :  { %s4596_s1 = scalar_lea.hbm %s4887_s2, 32768 }
  0x3c   :  { %p4597_p10 = scmp.ne.s32.totalorder %s4887_s2, %s4596_s1  ;;  %p4600_p11 = scmp.lt.u32.totalorder %s4596_s1, %s4887_s2 }
  0x3e   :  { %p4602_p12 = pnand %p4600_p11, %p4597_p10 }
  0x40   :  { %4605 = shalt.err (!%p4602_p12)
}
  0x41   :  { %s4606_s0 = scalar_lea.vmem %s50_s30, 32768  ;;  %p4611_p0 = scmp.lt.s32.totalorder %s50_s30, %s50_s30 }
  0x42   :  { %p4607_p13 = scmp.ne.s32.totalorder %s50_s30, %s4606_s0  ;;  %p4612_p1 = scmp.lt.s32.totalorder %s4606_s0, %s4606_s0 }
  0x44   :  { %p4613_p2 = por %p4612_p1, %p4611_p0 }
  0x46   :  { %p4614_p3 = pnand %p4613_p2, %p4607_p13 }
  0x48   :  { %4617 = shalt.err (!%p4614_p3)
}
  0x49   :  { %55 = dma.hbm_to_vmem [thread:$0]  %s4887_s2, 32768, %s50_s30, [#allocation7], %s4675_s12, %s4675_s12, %s4676_s15  }
  0x4a   :  { %s4618_s22 = scalar_lea.hbm %s4890_s5, 16384 }
  0x4b   :  { %p4619_p4 = scmp.ne.s32.totalorder %s4890_s5, %s4618_s22  ;;  %p4622_p5 = scmp.lt.u32.totalorder %s4618_s22, %s4890_s5 }
  0x4d   :  { %p4624_p6 = pnand %p4622_p5, %p4619_p4 }
  0x4f   :  { %4627 = shalt.err (!%p4624_p6)
}
  0x50   :  { %s4628_s26 = scalar_lea.vmem %s76_s11, 16384  ;;  %p4633_p8 = scmp.lt.s32.totalorder %s76_s11, %s76_s11 }
  0x51   :  { %p4629_p7 = scmp.ne.s32.totalorder %s76_s11, %s4628_s26  ;;  %p4634_p9 = scmp.lt.s32.totalorder %s4628_s26, %s4628_s26 }
  0x53   :  { %p4635_p10 = por %p4634_p9, %p4633_p8 }
  0x55   :  { %p4636_p11 = pnand %p4635_p10, %p4629_p7 }
  0x57   :  { %4639 = shalt.err (!%p4636_p11)
}
  0x58   :  { %81 = dma.hbm_to_vmem [thread:$0]  %s4890_s5, 16384, %s76_s11, [#allocation10], %s4675_s12, %s4675_s12, %s4676_s15  }
  0x59   :  { %4662 = dma.done.wait [#allocation4], 1024  }
  0x5a   :  { %4663 = vsyncadd [#allocation4], 4294966272 }
  0x5b   :  { %4664 = dma.done.wait [#allocation7], 32896  }
  0x5c   :  { %4665 = vsyncadd [#allocation7], 4294934400 }
  0x5d   :  { %4666 = dma.done.wait [#allocation10], 20480  }
  0x5e   :  { %4667 = vsyncadd [#allocation10], 4294946816  ;;  %v4681_v1 = vmov 0   ;;  %v3905_v2 = vld [vmem:[#allocation9 + $0x4] ss:$16 sps:$4 sm:$0xff]   ;;  %v3959_v37 = vld [vmem:[#allocation6] sm:$0xff]  }
  0x5f   :  { %600 = vmatprep.mubr.bf16.mxu0 %v4681_v1  ;;  %643 = vmatprep.mubr.bf16.mxu1 %v4681_v1  ;;  %v3907_v3 = vld [vmem:[#allocation9 + $0xc] ss:$16 sps:$4 sm:$0xff]   ;;  %v3909_v4 = vld [vmem:[#allocation9] ss:$16 sps:$4 sm:$0xff]   ;;  %v3910_v5 = vld [vmem:[#allocation9 + $0x8] ss:$16 sps:$4 sm:$0xff]  }
  0x60   :  { %3903 = vset.pattern.permute.xlu1 %v4681_v1  ;;  %3904 = vset.pattern.permute.xlu0 %v4681_v1  ;;  %v3911_v6 = vld [vmem:[#allocation9 + $0x24] ss:$16 sps:$4 sm:$0xff]   ;;  %v3913_v7 = vld [vmem:[#allocation9 + $0x2c] ss:$16 sps:$4 sm:$0xff]   ;;  %v3915_v8 = vld [vmem:[#allocation9 + $0x20] ss:$16 sps:$4 sm:$0xff]  }
  0x61   :  { %568 = vmatprep.subr.bf16.mxu0 %v3905_v2  ;;  %611 = vmatprep.subr.bf16.mxu1 %v3907_v3  ;;  %v3916_v9 = vld [vmem:[#allocation9 + $0x28] ss:$16 sps:$4 sm:$0xff]   ;;  %v3917_v10 = vld [vmem:[#allocation9 + $0x44] ss:$16 sps:$4 sm:$0xff]   ;;  %v3919_v11 = vld [vmem:[#allocation9 + $0x4c] ss:$16 sps:$4 sm:$0xff]  }
  0x62   :  { %569 = vmatpush1.bf16.msra.mxu0 %v3909_v4  ;;  %612 = vmatpush1.bf16.msra.mxu1 %v3910_v5  ;;  %v3921_v12 = vld [vmem:[#allocation9 + $0x40] ss:$16 sps:$4 sm:$0xff]   ;;  %v3922_v13 = vld [vmem:[#allocation9 + $0x48] ss:$16 sps:$4 sm:$0xff]   ;;  %v3923_v14 = vld [vmem:[#allocation9 + $0x64] ss:$16 sps:$4 sm:$0xff]  }
  0x63   :  { %570 = vmatprep.subr.bf16.mxu0 %v3911_v6  ;;  %613 = vmatprep.subr.bf16.mxu1 %v3913_v7  ;;  %v3925_v15 = vld [vmem:[#allocation9 + $0x6c] ss:$16 sps:$4 sm:$0xff]   ;;  %v3927_v16 = vld [vmem:[#allocation9 + $0x60] ss:$16 sps:$4 sm:$0xff]   ;;  %v3928_v17 = vld [vmem:[#allocation9 + $0x68] ss:$16 sps:$4 sm:$0xff]  }
  0x64   :  { %v3929_v18 = vld [vmem:[#allocation9 + $0x84] ss:$16 sps:$4 sm:$0xff]   ;;  %v3931_v19 = vld [vmem:[#allocation9 + $0x8c] ss:$16 sps:$4 sm:$0xff]   ;;  %v3933_v20 = vld [vmem:[#allocation9 + $0x80] ss:$16 sps:$4 sm:$0xff]  }
  0x65   :  { %v3934_v21 = vld [vmem:[#allocation9 + $0x88] ss:$16 sps:$4 sm:$0xff]   ;;  %v3935_v22 = vld [vmem:[#allocation9 + $0xa4] ss:$16 sps:$4 sm:$0xff]   ;;  %v3937_v23 = vld [vmem:[#allocation9 + $0xac] ss:$16 sps:$4 sm:$0xff]  }
  0x66   :  { %571 = vmatpush1.bf16.msra.mxu0 %v3915_v8  ;;  %614 = vmatpush1.bf16.msra.mxu1 %v3916_v9  ;;  %v3939_v24 = vld [vmem:[#allocation9 + $0xa0] ss:$16 sps:$4 sm:$0xff]   ;;  %v3940_v25 = vld [vmem:[#allocation9 + $0xa8] ss:$16 sps:$4 sm:$0xff]   ;;  %v3941_v26 = vld [vmem:[#allocation9 + $0xc4] ss:$16 sps:$4 sm:$0xff]  }
  0x67   :  { %572 = vmatprep.subr.bf16.mxu0 %v3917_v10  ;;  %615 = vmatprep.subr.bf16.mxu1 %v3919_v11  ;;  %v3943_v27 = vld [vmem:[#allocation9 + $0xcc] ss:$16 sps:$4 sm:$0xff]   ;;  %v3945_v28 = vld [vmem:[#allocation9 + $0xc0] ss:$16 sps:$4 sm:$0xff]   ;;  %v3946_v29 = vld [vmem:[#allocation9 + $0xc8] ss:$16 sps:$4 sm:$0xff]  }
  0x68   :  { %v3947_v30 = vld [vmem:[#allocation9 + $0xe4] ss:$16 sps:$4 sm:$0xff]   ;;  %v3949_v31 = vld [vmem:[#allocation9 + $0xec] ss:$16 sps:$4 sm:$0xff]   ;;  %v3951_v32 = vld [vmem:[#allocation9 + $0xe0] ss:$16 sps:$4 sm:$0xff]  }
  0x69   :  { %v3952_v33 = vld [vmem:[#allocation9 + $0xe8] ss:$16 sps:$4 sm:$0xff]   ;;  %v3955_v34 = vld [vmem:[#allocation8 + $0x4] ss:$16 sps:$4 sm:$0xff]   ;;  %v3958_v35 = vld [vmem:[#allocation8 + $0xc] ss:$16 sps:$4 sm:$0xff]  }
  0x6a   :  { %573 = vmatpush1.bf16.msra.mxu0 %v3921_v12  ;;  %616 = vmatpush1.bf16.msra.mxu1 %v3922_v13  ;;  %v3953_v36 = vld [vmem:[#allocation8] ss:$16 sps:$4 sm:$0xff]   ;;  %v3956_v38 = vld [vmem:[#allocation8 + $0x8] ss:$16 sps:$4 sm:$0xff]   ;;  %v3962_v39 = vld [vmem:[#allocation8 + $0x24] ss:$16 sps:$4 sm:$0xff]  }
  0x6b   :  { %574 = vmatprep.subr.bf16.mxu0 %v3923_v14  ;;  %617 = vmatprep.subr.bf16.mxu1 %v3925_v15  ;;  %v3965_v40 = vld [vmem:[#allocation8 + $0x2c] ss:$16 sps:$4 sm:$0xff]   ;;  %v3960_v41 = vld [vmem:[#allocation8 + $0x20] ss:$16 sps:$4 sm:$0xff]   ;;  %v3963_v42 = vld [vmem:[#allocation8 + $0x28] ss:$16 sps:$4 sm:$0xff]  }
  0x6c   :  { %v3968_v43 = vld [vmem:[#allocation8 + $0x44] ss:$16 sps:$4 sm:$0xff]   ;;  %v3971_v44 = vld [vmem:[#allocation8 + $0x4c] ss:$16 sps:$4 sm:$0xff]   ;;  %v3966_v45 = vld [vmem:[#allocation8 + $0x40] ss:$16 sps:$4 sm:$0xff]  }
  0x6d   :  { %v3969_v46 = vld [vmem:[#allocation8 + $0x48] ss:$16 sps:$4 sm:$0xff]   ;;  %v3974_v47 = vld [vmem:[#allocation8 + $0x64] ss:$16 sps:$4 sm:$0xff]   ;;  %v3977_v48 = vld [vmem:[#allocation8 + $0x6c] ss:$16 sps:$4 sm:$0xff]  }
  0x6e   :  { %575 = vmatpush1.bf16.msra.mxu0 %v3927_v16  ;;  %618 = vmatpush1.bf16.msra.mxu1 %v3928_v17  ;;  %v3972_v49 = vld [vmem:[#allocation8 + $0x60] ss:$16 sps:$4 sm:$0xff]   ;;  %v3975_v50 = vld [vmem:[#allocation8 + $0x68] ss:$16 sps:$4 sm:$0xff]   ;;  %v3980_v51 = vld [vmem:[#allocation8 + $0x84] ss:$16 sps:$4 sm:$0xff]  }
  0x6f   :  { %576 = vmatprep.subr.bf16.mxu0 %v3929_v18  ;;  %619 = vmatprep.subr.bf16.mxu1 %v3931_v19  ;;  %v3983_v52 = vld [vmem:[#allocation8 + $0x8c] ss:$16 sps:$4 sm:$0xff]   ;;  %v3978_v53 = vld [vmem:[#allocation8 + $0x80] ss:$16 sps:$4 sm:$0xff]   ;;  %v3981_v54 = vld [vmem:[#allocation8 + $0x88] ss:$16 sps:$4 sm:$0xff]  }
  0x70   :  { %v3986_v55 = vld [vmem:[#allocation8 + $0xa4] ss:$16 sps:$4 sm:$0xff]   ;;  %v3989_v56 = vld [vmem:[#allocation8 + $0xac] ss:$16 sps:$4 sm:$0xff]   ;;  %v3984_v57 = vld [vmem:[#allocation8 + $0xa0] ss:$16 sps:$4 sm:$0xff]  }
  0x71   :  { %v3987_v58 = vld [vmem:[#allocation8 + $0xa8] ss:$16 sps:$4 sm:$0xff]   ;;  %v3992_v59 = vld [vmem:[#allocation8 + $0xc4] ss:$16 sps:$4 sm:$0xff]   ;;  %v3995_v60 = vld [vmem:[#allocation8 + $0xcc] ss:$16 sps:$4 sm:$0xff]  }
  0x72   :  { %577 = vmatpush1.bf16.msra.mxu0 %v3933_v20  ;;  %620 = vmatpush1.bf16.msra.mxu1 %v3934_v21  ;;  %v3990_v61 = vld [vmem:[#allocation8 + $0xc0] ss:$16 sps:$4 sm:$0xff]   ;;  %v3993_v62 = vld [vmem:[#allocation8 + $0xc8] ss:$16 sps:$4 sm:$0xff]   ;;  %v3998_v63 = vld [vmem:[#allocation8 + $0xe4] ss:$16 sps:$4 sm:$0xff]  }
  0x73   :  { %578 = vmatprep.subr.bf16.mxu0 %v3935_v22  ;;  %621 = vmatprep.subr.bf16.mxu1 %v3937_v23  ;;  %v4001_v0 = vld [vmem:[#allocation8 + $0xec] ss:$16 sps:$4 sm:$0xff]   ;;  %v3996_v1 = vld [vmem:[#allocation8 + $0xe0] ss:$16 sps:$4 sm:$0xff]   ;;  %v3999_v2 = vld [vmem:[#allocation8 + $0xe8] ss:$16 sps:$4 sm:$0xff]  }
  0x74   :  { %v4004_v3 = vld [vmem:[#allocation8 + $0x104] ss:$16 sps:$4 sm:$0xff]   ;;  %v4007_v4 = vld [vmem:[#allocation8 + $0x10c] ss:$16 sps:$4 sm:$0xff]   ;;  %v4002_v5 = vld [vmem:[#allocation8 + $0x100] ss:$16 sps:$4 sm:$0xff]  }
  0x75   :  { %v4005_v6 = vld [vmem:[#allocation8 + $0x108] ss:$16 sps:$4 sm:$0xff]   ;;  %v4010_v7 = vld [vmem:[#allocation8 + $0x124] ss:$16 sps:$4 sm:$0xff]   ;;  %v4013_v8 = vld [vmem:[#allocation8 + $0x12c] ss:$16 sps:$4 sm:$0xff]  }
  0x76   :  { %579 = vmatpush1.bf16.msra.mxu0 %v3939_v24  ;;  %622 = vmatpush1.bf16.msra.mxu1 %v3940_v25  ;;  %v104_v9 = vld [vmem:[#allocation3] sm:$0xff]  ;;  %v4008_v12 = vld [vmem:[#allocation8 + $0x120] ss:$16 sps:$4 sm:$0xff]   ;;  %v4016_v14 = vld [vmem:[#allocation8 + $0x144] ss:$16 sps:$4 sm:$0xff]   ;;  %vm3395_vm0 = vcmask 130112  }
  0x77   :  { %580 = vmatprep.subr.bf16.mxu0 %v3941_v26  ;;  %623 = vmatprep.subr.bf16.mxu1 %v3943_v27  ;;  %v108_v10 = vld [vmem:[#allocation3 + $0x20] sm:$0xff]  ;;  %v4014_v16 = vld [vmem:[#allocation8 + $0x140] ss:$16 sps:$4 sm:$0xff]   ;;  %v4022_v18 = vld [vmem:[#allocation8 + $0x164] ss:$16 sps:$4 sm:$0xff]   ;;  %vm3398_vm1 = vcmask 122880  }
  0x78   :  { %v3451_v11 = vcombine.high %v104_v9, %v108_v10  ;;  %v4011_v13 = vld [vmem:[#allocation8 + $0x128] ss:$16 sps:$4 sm:$0xff]   ;;  %v4019_v15 = vld [vmem:[#allocation8 + $0x14c] ss:$16 sps:$4 sm:$0xff]   ;;  %v4020_v20 = vld [vmem:[#allocation8 + $0x160] ss:$16 sps:$4 sm:$0xff]  }
  0x79   :  { %v4017_v17 = vld [vmem:[#allocation8 + $0x148] ss:$16 sps:$4 sm:$0xff]   ;;  %v4025_v19 = vld [vmem:[#allocation8 + $0x16c] ss:$16 sps:$4 sm:$0xff]   ;;  %v4028_v22 = vld [vmem:[#allocation8 + $0x184] ss:$16 sps:$4 sm:$0xff]  }
  0x7a   :  { %581 = vmatpush1.bf16.msra.mxu0 %v3945_v28  ;;  %624 = vmatpush1.bf16.msra.mxu1 %v3946_v29  ;;  %v4023_v21 = vld [vmem:[#allocation8 + $0x168] ss:$16 sps:$4 sm:$0xff]   ;;  %v4031_v23 = vld [vmem:[#allocation8 + $0x18c] ss:$16 sps:$4 sm:$0xff]   ;;  %v4026_v24 = vld [vmem:[#allocation8 + $0x180] ss:$16 sps:$4 sm:$0xff]  }
  0x7b   :  { %582 = vmatprep.subr.bf16.mxu0 %v3947_v30  ;;  %625 = vmatprep.subr.bf16.mxu1 %v3949_v31  ;;  %v4029_v25 = vld [vmem:[#allocation8 + $0x188] ss:$16 sps:$4 sm:$0xff]   ;;  %v4034_v26 = vld [vmem:[#allocation8 + $0x1a4] ss:$16 sps:$4 sm:$0xff]   ;;  %v4037_v27 = vld [vmem:[#allocation8 + $0x1ac] ss:$16 sps:$4 sm:$0xff]  }
  0x7c   :  { %v4032_v28 = vld [vmem:[#allocation8 + $0x1a0] ss:$16 sps:$4 sm:$0xff]   ;;  %v4035_v29 = vld [vmem:[#allocation8 + $0x1a8] ss:$16 sps:$4 sm:$0xff]   ;;  %v4040_v30 = vld [vmem:[#allocation8 + $0x1c4] ss:$16 sps:$4 sm:$0xff]  }
  0x7d   :  { %v4043_v31 = vld [vmem:[#allocation8 + $0x1cc] ss:$16 sps:$4 sm:$0xff]  }
  0x7e   :  { %583 = vmatpush1.bf16.msra.mxu0 %v3951_v32  ;;  %626 = vmatpush1.bf16.msra.mxu1 %v3952_v33  ;;  %v4038_v32 = vld [vmem:[#allocation8 + $0x1c0] ss:$16 sps:$4 sm:$0xff]   ;;  %v4041_v33 = vld [vmem:[#allocation8 + $0x1c8] ss:$16 sps:$4 sm:$0xff]  }
  0x7f   :  { %1974 = vmatprep.subr.bf16.mxu0 %v3955_v34  ;;  %2146 = vmatprep.subr.bf16.mxu1 %v3958_v35  ;;  %v4046_v34 = vld [vmem:[#allocation8 + $0x1e4] ss:$16 sps:$4 sm:$0xff]   ;;  %v4049_v35 = vld [vmem:[#allocation8 + $0x1ec] ss:$16 sps:$4 sm:$0xff]  }
  0x81   :  { %601 = vmatmul.mubr.bf16.vlgmr.msra.gmra.mrb[0].mxu0 %v3959_v37  ;;  %644 = vmatmul.mubr.bf16.vlgmr.msra.gmra.mrb[0].mxu1 %v3959_v37  ;;  %v4047_v37 = vld [vmem:[#allocation8 + $0x1e8] ss:$16 sps:$4 sm:$0xff]  }
  0x82   :  { %1975 = vmatpush1.bf16.msra.mxu0 %v3953_v36  ;;  %2147 = vmatpush1.bf16.msra.mxu1 %v3956_v38  ;;  %v4044_v36 = vld [vmem:[#allocation8 + $0x1e0] ss:$16 sps:$4 sm:$0xff]   ;;  %v4052_v38 = vld [vmem:[#allocation8 + $0x204] ss:$16 sps:$4 sm:$0xff]  }
  0x83   :  { %1976 = vmatprep.subr.bf16.mxu0 %v3962_v39  ;;  %2148 = vmatprep.subr.bf16.mxu1 %v3965_v40  ;;  %v4055_v39 = vld [vmem:[#allocation8 + $0x20c] ss:$16 sps:$4 sm:$0xff]   ;;  %v3450_v40 = vcombine.low %v104_v9, %v108_v10  ;;  %v4095_v9 = vld [vmem:[#allocation8 + $0x2e8] ss:$16 sps:$4 sm:$0xff]   ;;  %v4100_v10 = vld [vmem:[#allocation8 + $0x304] ss:$16 sps:$4 sm:$0xff]  }
  0x84   :  { %2006 = vmatprep.mubr.bf16.mxu0 %v3451_v11  ;;  %2178 = vmatprep.mubr.bf16.mxu1 %v3451_v11  ;;  %v4103_v11 = vld [vmem:[#allocation8 + $0x30c] ss:$16 sps:$4 sm:$0xff]  }
  0x86   :  { %1977 = vmatpush1.bf16.msra.mxu0 %v3960_v41  ;;  %2149 = vmatpush1.bf16.msra.mxu1 %v3963_v42  ;;  %v4050_v41 = vld [vmem:[#allocation8 + $0x200] ss:$16 sps:$4 sm:$0xff]   ;;  %v4053_v42 = vld [vmem:[#allocation8 + $0x208] ss:$16 sps:$4 sm:$0xff]  }
  0x87   :  { %1978 = vmatprep.subr.bf16.mxu0 %v3968_v43  ;;  %2150 = vmatprep.subr.bf16.mxu1 %v3971_v44  ;;  %v4058_v43 = vld [vmem:[#allocation8 + $0x224] ss:$16 sps:$4 sm:$0xff]   ;;  %v4061_v44 = vld [vmem:[#allocation8 + $0x22c] ss:$16 sps:$4 sm:$0xff]  }
  0x8a   :  { %1979 = vmatpush1.bf16.msra.mxu0 %v3966_v45  ;;  %2151 = vmatpush1.bf16.msra.mxu1 %v3969_v46  ;;  %v4056_v45 = vld [vmem:[#allocation8 + $0x220] ss:$16 sps:$4 sm:$0xff]   ;;  %v4059_v46 = vld [vmem:[#allocation8 + $0x228] ss:$16 sps:$4 sm:$0xff]  }
  0x8b   :  { %1980 = vmatprep.subr.bf16.mxu0 %v3974_v47  ;;  %2152 = vmatprep.subr.bf16.mxu1 %v3977_v48  ;;  %v4064_v47 = vld [vmem:[#allocation8 + $0x244] ss:$16 sps:$4 sm:$0xff]   ;;  %v4067_v48 = vld [vmem:[#allocation8 + $0x24c] ss:$16 sps:$4 sm:$0xff]  }
  0x8e   :  { %1981 = vmatpush1.bf16.msra.mxu0 %v3972_v49  ;;  %2153 = vmatpush1.bf16.msra.mxu1 %v3975_v50  ;;  %v4062_v49 = vld [vmem:[#allocation8 + $0x240] ss:$16 sps:$4 sm:$0xff]   ;;  %v4065_v50 = vld [vmem:[#allocation8 + $0x248] ss:$16 sps:$4 sm:$0xff]  }
  0x8f   :  { %1982 = vmatprep.subr.bf16.mxu0 %v3980_v51  ;;  %2154 = vmatprep.subr.bf16.mxu1 %v3983_v52  ;;  %v4070_v51 = vld [vmem:[#allocation8 + $0x264] ss:$16 sps:$4 sm:$0xff]   ;;  %v4073_v52 = vld [vmem:[#allocation8 + $0x26c] ss:$16 sps:$4 sm:$0xff]  }
  0x92   :  { %1983 = vmatpush1.bf16.msra.mxu0 %v3978_v53  ;;  %2155 = vmatpush1.bf16.msra.mxu1 %v3981_v54  ;;  %v4068_v53 = vld [vmem:[#allocation8 + $0x260] ss:$16 sps:$4 sm:$0xff]   ;;  %v4071_v54 = vld [vmem:[#allocation8 + $0x268] ss:$16 sps:$4 sm:$0xff]  }
  0x93   :  { %1984 = vmatprep.subr.bf16.mxu0 %v3986_v55  ;;  %2156 = vmatprep.subr.bf16.mxu1 %v3989_v56  ;;  %v4076_v55 = vld [vmem:[#allocation8 + $0x284] ss:$16 sps:$4 sm:$0xff]  }
  0x94   :  { %v4805_v56 = vld [vmem:[#allocation3 + $0x8] sm:$0xff] }
  0x96   :  { %1985 = vmatpush1.bf16.msra.mxu0 %v3984_v57  ;;  %2157 = vmatpush1.bf16.msra.mxu1 %v3987_v58  ;;  %v4807_v57 = vld [vmem:[#allocation3 + $0x28] sm:$0xff]  ;;  %v4079_v58 = vld [vmem:[#allocation8 + $0x28c] ss:$16 sps:$4 sm:$0xff]  }
  0x97   :  { %1986 = vmatprep.subr.bf16.mxu0 %v3992_v59  ;;  %2158 = vmatprep.subr.bf16.mxu1 %v3995_v60  ;;  %v3453_v59 = vcombine.high %v4805_v56, %v4807_v57  ;;  %v4074_v60 = vld [vmem:[#allocation8 + $0x280] ss:$16 sps:$4 sm:$0xff]  }
  0x9a   :  { %1987 = vmatpush1.bf16.msra.mxu0 %v3990_v61  ;;  %2159 = vmatpush1.bf16.msra.mxu1 %v3993_v62  ;;  %v4077_v61 = vld [vmem:[#allocation8 + $0x288] ss:$16 sps:$4 sm:$0xff]   ;;  %v4082_v62 = vld [vmem:[#allocation8 + $0x2a4] ss:$16 sps:$4 sm:$0xff]  }
  0x9b   :  { %1988 = vmatprep.subr.bf16.mxu0 %v3998_v63  ;;  %2160 = vmatprep.subr.bf16.mxu1 %v4001_v0  ;;  %v4085_v63 = vld [vmem:[#allocation8 + $0x2ac] ss:$16 sps:$4 sm:$0xff]   ;;  %v4080_v0 = vld [vmem:[#allocation8 + $0x2a0] ss:$16 sps:$4 sm:$0xff]  }
  0x9e   :  { %1989 = vmatpush1.bf16.msra.mxu0 %v3996_v1  ;;  %2161 = vmatpush1.bf16.msra.mxu1 %v3999_v2  ;;  %v4083_v1 = vld [vmem:[#allocation8 + $0x2a8] ss:$16 sps:$4 sm:$0xff]   ;;  %v4088_v2 = vld [vmem:[#allocation8 + $0x2c4] ss:$16 sps:$4 sm:$0xff]  }
  0x9f   :  { %1990 = vmatprep.subr.bf16.mxu0 %v4004_v3  ;;  %2162 = vmatprep.subr.bf16.mxu1 %v4007_v4  ;;  %v4091_v3 = vld [vmem:[#allocation8 + $0x2cc] ss:$16 sps:$4 sm:$0xff]   ;;  %v4086_v4 = vld [vmem:[#allocation8 + $0x2c0] ss:$16 sps:$4 sm:$0xff]  }
  0xa2   :  { %1991 = vmatpush1.bf16.msra.mxu0 %v4002_v5  ;;  %2163 = vmatpush1.bf16.msra.mxu1 %v4005_v6  ;;  %v4089_v5 = vld [vmem:[#allocation8 + $0x2c8] ss:$16 sps:$4 sm:$0xff]   ;;  %v4094_v6 = vld [vmem:[#allocation8 + $0x2e4] ss:$16 sps:$4 sm:$0xff]  }
  0xa3   :  { %1992 = vmatprep.subr.bf16.mxu0 %v4010_v7  ;;  %2164 = vmatprep.subr.bf16.mxu1 %v4013_v8  ;;  %v4097_v7 = vld [vmem:[#allocation8 + $0x2ec] ss:$16 sps:$4 sm:$0xff]   ;;  %v4092_v8 = vld [vmem:[#allocation8 + $0x2e0] ss:$16 sps:$4 sm:$0xff]  }
  0xa6   :  { %1993 = vmatpush1.bf16.msra.mxu0 %v4008_v12  ;;  %2165 = vmatpush1.bf16.msra.mxu1 %v4011_v13  ;;  %v4098_v12 = vld [vmem:[#allocation8 + $0x300] ss:$16 sps:$4 sm:$0xff]   ;;  %v4101_v13 = vld [vmem:[#allocation8 + $0x308] ss:$16 sps:$4 sm:$0xff]  }
  0xa7   :  { %1994 = vmatprep.subr.bf16.mxu0 %v4016_v14  ;;  %2166 = vmatprep.subr.bf16.mxu1 %v4019_v15  ;;  %v4106_v14 = vld [vmem:[#allocation8 + $0x324] ss:$16 sps:$4 sm:$0xff]   ;;  %v4109_v15 = vld [vmem:[#allocation8 + $0x32c] ss:$16 sps:$4 sm:$0xff]  }
  0xaa   :  { %1995 = vmatpush1.bf16.msra.mxu0 %v4014_v16  ;;  %2167 = vmatpush1.bf16.msra.mxu1 %v4017_v17  ;;  %v4104_v16 = vld [vmem:[#allocation8 + $0x320] ss:$16 sps:$4 sm:$0xff]   ;;  %v4107_v17 = vld [vmem:[#allocation8 + $0x328] ss:$16 sps:$4 sm:$0xff]  }
  0xab   :  { %1996 = vmatprep.subr.bf16.mxu0 %v4022_v18  ;;  %2168 = vmatprep.subr.bf16.mxu1 %v4025_v19  ;;  %v4112_v18 = vld [vmem:[#allocation8 + $0x344] ss:$16 sps:$4 sm:$0xff]   ;;  %v4115_v19 = vld [vmem:[#allocation8 + $0x34c] ss:$16 sps:$4 sm:$0xff]  }
  0xae   :  { %1997 = vmatpush1.bf16.msra.mxu0 %v4020_v20  ;;  %2169 = vmatpush1.bf16.msra.mxu1 %v4023_v21  ;;  %v4110_v20 = vld [vmem:[#allocation8 + $0x340] ss:$16 sps:$4 sm:$0xff]   ;;  %v4113_v21 = vld [vmem:[#allocation8 + $0x348] ss:$16 sps:$4 sm:$0xff]  }
  0xaf   :  { %1998 = vmatprep.subr.bf16.mxu0 %v4028_v22  ;;  %2170 = vmatprep.subr.bf16.mxu1 %v4031_v23  ;;  %v4118_v22 = vld [vmem:[#allocation8 + $0x364] ss:$16 sps:$4 sm:$0xff]   ;;  %v4121_v23 = vld [vmem:[#allocation8 + $0x36c] ss:$16 sps:$4 sm:$0xff]  }
  0xb2   :  { %1999 = vmatpush1.bf16.msra.mxu0 %v4026_v24  ;;  %2171 = vmatpush1.bf16.msra.mxu1 %v4029_v25  ;;  %v4116_v24 = vld [vmem:[#allocation8 + $0x360] ss:$16 sps:$4 sm:$0xff]   ;;  %v4119_v25 = vld [vmem:[#allocation8 + $0x368] ss:$16 sps:$4 sm:$0xff]  }
  0xb3   :  { %2000 = vmatprep.subr.bf16.mxu0 %v4034_v26  ;;  %2172 = vmatprep.subr.bf16.mxu1 %v4037_v27  ;;  %v4124_v26 = vld [vmem:[#allocation8 + $0x384] ss:$16 sps:$4 sm:$0xff]   ;;  %v4127_v27 = vld [vmem:[#allocation8 + $0x38c] ss:$16 sps:$4 sm:$0xff]  }
  0xb6   :  { %2001 = vmatpush1.bf16.msra.mxu0 %v4032_v28  ;;  %2173 = vmatpush1.bf16.msra.mxu1 %v4035_v29  ;;  %v4122_v28 = vld [vmem:[#allocation8 + $0x380] ss:$16 sps:$4 sm:$0xff]   ;;  %v4125_v29 = vld [vmem:[#allocation8 + $0x388] ss:$16 sps:$4 sm:$0xff]  }
  0xb7   :  { %2002 = vmatprep.subr.bf16.mxu0 %v4040_v30  ;;  %2174 = vmatprep.subr.bf16.mxu1 %v4043_v31  ;;  %v4130_v30 = vld [vmem:[#allocation8 + $0x3a4] ss:$16 sps:$4 sm:$0xff]   ;;  %v4133_v31 = vld [vmem:[#allocation8 + $0x3ac] ss:$16 sps:$4 sm:$0xff]  }
  0xba   :  { %2003 = vmatpush1.bf16.msra.mxu0 %v4038_v32  ;;  %2175 = vmatpush1.bf16.msra.mxu1 %v4041_v33  ;;  %v4128_v32 = vld [vmem:[#allocation8 + $0x3a0] ss:$16 sps:$4 sm:$0xff]   ;;  %v4131_v33 = vld [vmem:[#allocation8 + $0x3a8] ss:$16 sps:$4 sm:$0xff]  }
  0xbb   :  { %2004 = vmatprep.subr.bf16.mxu0 %v4046_v34  ;;  %2176 = vmatprep.subr.bf16.mxu1 %v4049_v35  ;;  %v4136_v34 = vld [vmem:[#allocation8 + $0x3c4] ss:$16 sps:$4 sm:$0xff]   ;;  %v4139_v35 = vld [vmem:[#allocation8 + $0x3cc] ss:$16 sps:$4 sm:$0xff]  }
  0xbe   :  { %2005 = vmatpush1.bf16.msra.mxu0 %v4044_v36  ;;  %2177 = vmatpush1.bf16.msra.mxu1 %v4047_v37  ;;  %v4134_v36 = vld [vmem:[#allocation8 + $0x3c0] ss:$16 sps:$4 sm:$0xff]   ;;  %v4137_v37 = vld [vmem:[#allocation8 + $0x3c8] ss:$16 sps:$4 sm:$0xff]  }
  0xbf   :  { %2017 = vmatprep.subr.bf16.mxu0 %v4052_v38  ;;  %2189 = vmatprep.subr.bf16.mxu1 %v4055_v39  ;;  %v4142_v38 = vld [vmem:[#allocation8 + $0x3e4] ss:$16 sps:$4 sm:$0xff]   ;;  %v4145_v39 = vld [vmem:[#allocation8 + $0x3ec] ss:$16 sps:$4 sm:$0xff]  }
  0xc1   :  { %2007 = vmatmul.mubr.bf16.vlgmr.msra.gmra.mrb[0].mxu0 %v3450_v40  ;;  %2179 = vmatmul.mubr.bf16.vlgmr.msra.gmra.mrb[0].mxu1 %v3450_v40  ;;  %v4140_v40 = vld [vmem:[#allocation8 + $0x3e0] ss:$16 sps:$4 sm:$0xff]  }
  0xc2   :  { %2018 = vmatpush1.bf16.msra.mxu0 %v4050_v41  ;;  %2190 = vmatpush1.bf16.msra.mxu1 %v4053_v42  ;;  %v4143_v41 = vld [vmem:[#allocation8 + $0x3e8] ss:$16 sps:$4 sm:$0xff]   ;;  %v4148_v42 = vld [vmem:[#allocation8 + $0x404] ss:$16 sps:$4 sm:$0xff]  }
  0xc3   :  { %2019 = vmatprep.subr.bf16.mxu0 %v4058_v43  ;;  %2191 = vmatprep.subr.bf16.mxu1 %v4061_v44  ;;  %v4151_v43 = vld [vmem:[#allocation8 + $0x40c] ss:$16 sps:$4 sm:$0xff]   ;;  %v4146_v44 = vld [vmem:[#allocation8 + $0x400] ss:$16 sps:$4 sm:$0xff]  }
  0xc4   :  { %2049 = vmatprep.mubr.bf16.mxu0 %v3453_v59  ;;  %2221 = vmatprep.mubr.bf16.mxu1 %v3453_v59  ;;  %v4169_v59 = vld [vmem:[#allocation8 + $0x46c] ss:$16 sps:$4 sm:$0xff]  }
  0xc6   :  { %2020 = vmatpush1.bf16.msra.mxu0 %v4056_v45  ;;  %2192 = vmatpush1.bf16.msra.mxu1 %v4059_v46  ;;  %v4811_v45 = vld [vmem:[#allocation3 + $0x10] sm:$0xff]  ;;  %v3452_v46 = vcombine.low %v4805_v56, %v4807_v57  ;;  %v4158_v56 = vld [vmem:[#allocation8 + $0x440] ss:$16 sps:$4 sm:$0xff]  }
  0xc7   :  { %2021 = vmatprep.subr.bf16.mxu0 %v4064_v47  ;;  %2193 = vmatprep.subr.bf16.mxu1 %v4067_v48  ;;  %v4815_v47 = vld [vmem:[#allocation3 + $0x30] sm:$0xff] }
  0xc8   :  { %v4149_v48 = vld [vmem:[#allocation8 + $0x408] ss:$16 sps:$4 sm:$0xff]  }
  0xc9   :  { %v4161_v57 = vld [vmem:[#allocation8 + $0x448] ss:$16 sps:$4 sm:$0xff]  }
  0xca   :  { %2022 = vmatpush1.bf16.msra.mxu0 %v4062_v49  ;;  %2194 = vmatpush1.bf16.msra.mxu1 %v4065_v50  ;;  %v4154_v49 = vld [vmem:[#allocation8 + $0x424] ss:$16 sps:$4 sm:$0xff]   ;;  %v4157_v50 = vld [vmem:[#allocation8 + $0x42c] ss:$16 sps:$4 sm:$0xff]  }
  0xcb   :  { %2023 = vmatprep.subr.bf16.mxu0 %v4070_v51  ;;  %2195 = vmatprep.subr.bf16.mxu1 %v4073_v52  ;;  %v3455_v51 = vcombine.high %v4811_v45, %v4815_v47  ;;  %v4152_v52 = vld [vmem:[#allocation8 + $0x420] ss:$16 sps:$4 sm:$0xff]  }
  0xce   :  { %2024 = vmatpush1.bf16.msra.mxu0 %v4068_v53  ;;  %2196 = vmatpush1.bf16.msra.mxu1 %v4071_v54  ;;  %v4155_v53 = vld [vmem:[#allocation8 + $0x428] ss:$16 sps:$4 sm:$0xff]   ;;  %v4160_v54 = vld [vmem:[#allocation8 + $0x444] ss:$16 sps:$4 sm:$0xff]  }
  0xcf   :  { %2025 = vmatprep.subr.bf16.mxu0 %v4076_v55  ;;  %2197 = vmatprep.subr.bf16.mxu1 %v4079_v58  ;;  %v4163_v55 = vld [vmem:[#allocation8 + $0x44c] ss:$16 sps:$4 sm:$0xff]   ;;  %v4166_v58 = vld [vmem:[#allocation8 + $0x464] ss:$16 sps:$4 sm:$0xff]  }
  0xd2   :  { %2026 = vmatpush1.bf16.msra.mxu0 %v4074_v60  ;;  %2198 = vmatpush1.bf16.msra.mxu1 %v4077_v61  ;;  %v4164_v60 = vld [vmem:[#allocation8 + $0x460] ss:$16 sps:$4 sm:$0xff]   ;;  %v4167_v61 = vld [vmem:[#allocation8 + $0x468] ss:$16 sps:$4 sm:$0xff]  }
  0xd3   :  { %2027 = vmatprep.subr.bf16.mxu0 %v4082_v62  ;;  %2199 = vmatprep.subr.bf16.mxu1 %v4085_v63  ;;  %v4172_v62 = vld [vmem:[#allocation8 + $0x484] ss:$16 sps:$4 sm:$0xff]   ;;  %v4175_v63 = vld [vmem:[#allocation8 + $0x48c] ss:$16 sps:$4 sm:$0xff]  }
  0xd6   :  { %2028 = vmatpush1.bf16.msra.mxu0 %v4080_v0  ;;  %2200 = vmatpush1.bf16.msra.mxu1 %v4083_v1  ;;  %v4170_v0 = vld [vmem:[#allocation8 + $0x480] ss:$16 sps:$4 sm:$0xff]   ;;  %v4173_v1 = vld [vmem:[#allocation8 + $0x488] ss:$16 sps:$4 sm:$0xff]  }
  0xd7   :  { %2029 = vmatprep.subr.bf16.mxu0 %v4088_v2  ;;  %2201 = vmatprep.subr.bf16.mxu1 %v4091_v3  ;;  %v4178_v2 = vld [vmem:[#allocation8 + $0x4a4] ss:$16 sps:$4 sm:$0xff]   ;;  %v4181_v3 = vld [vmem:[#allocation8 + $0x4ac] ss:$16 sps:$4 sm:$0xff]  }
  0xda   :  { %2030 = vmatpush1.bf16.msra.mxu0 %v4086_v4  ;;  %2202 = vmatpush1.bf16.msra.mxu1 %v4089_v5  ;;  %v4176_v4 = vld [vmem:[#allocation8 + $0x4a0] ss:$16 sps:$4 sm:$0xff]   ;;  %v4179_v5 = vld [vmem:[#allocation8 + $0x4a8] ss:$16 sps:$4 sm:$0xff]  }
  0xdb   :  { %2031 = vmatprep.subr.bf16.mxu0 %v4094_v6  ;;  %2203 = vmatprep.subr.bf16.mxu1 %v4097_v7  ;;  %v4184_v6 = vld [vmem:[#allocation8 + $0x4c4] ss:$16 sps:$4 sm:$0xff]   ;;  %v4187_v7 = vld [vmem:[#allocation8 + $0x4cc] ss:$16 sps:$4 sm:$0xff]  }
  0xde   :  { %2032 = vmatpush1.bf16.msra.mxu0 %v4092_v8  ;;  %2204 = vmatpush1.bf16.msra.mxu1 %v4095_v9  ;;  %v4182_v8 = vld [vmem:[#allocation8 + $0x4c0] ss:$16 sps:$4 sm:$0xff]   ;;  %v4185_v9 = vld [vmem:[#allocation8 + $0x4c8] ss:$16 sps:$4 sm:$0xff]  }
  0xdf   :  { %2033 = vmatprep.subr.bf16.mxu0 %v4100_v10  ;;  %2205 = vmatprep.subr.bf16.mxu1 %v4103_v11  ;;  %v4190_v10 = vld [vmem:[#allocation8 + $0x4e4] ss:$16 sps:$4 sm:$0xff]   ;;  %v4193_v11 = vld [vmem:[#allocation8 + $0x4ec] ss:$16 sps:$4 sm:$0xff]  }
  0xe2   :  { %2034 = vmatpush1.bf16.msra.mxu0 %v4098_v12  ;;  %2206 = vmatpush1.bf16.msra.mxu1 %v4101_v13  ;;  %v4188_v12 = vld [vmem:[#allocation8 + $0x4e0] ss:$16 sps:$4 sm:$0xff]   ;;  %v4191_v13 = vld [vmem:[#allocation8 + $0x4e8] ss:$16 sps:$4 sm:$0xff]  }
  0xe3   :  { %2035 = vmatprep.subr.bf16.mxu0 %v4106_v14  ;;  %2207 = vmatprep.subr.bf16.mxu1 %v4109_v15  ;;  %v4196_v14 = vld [vmem:[#allocation8 + $0x504] ss:$16 sps:$4 sm:$0xff]   ;;  %v4199_v15 = vld [vmem:[#allocation8 + $0x50c] ss:$16 sps:$4 sm:$0xff]  }
  0xe6   :  { %2036 = vmatpush1.bf16.msra.mxu0 %v4104_v16  ;;  %2208 = vmatpush1.bf16.msra.mxu1 %v4107_v17  ;;  %v4194_v16 = vld [vmem:[#allocation8 + $0x500] ss:$16 sps:$4 sm:$0xff]   ;;  %v4197_v17 = vld [vmem:[#allocation8 + $0x508] ss:$16 sps:$4 sm:$0xff]  }
  0xe7   :  { %2037 = vmatprep.subr.bf16.mxu0 %v4112_v18  ;;  %2209 = vmatprep.subr.bf16.mxu1 %v4115_v19  ;;  %v4202_v18 = vld [vmem:[#allocation8 + $0x524] ss:$16 sps:$4 sm:$0xff]   ;;  %v4205_v19 = vld [vmem:[#allocation8 + $0x52c] ss:$16 sps:$4 sm:$0xff]  }
  0xea   :  { %2038 = vmatpush1.bf16.msra.mxu0 %v4110_v20  ;;  %2210 = vmatpush1.bf16.msra.mxu1 %v4113_v21  ;;  %v4200_v20 = vld [vmem:[#allocation8 + $0x520] ss:$16 sps:$4 sm:$0xff]   ;;  %v4203_v21 = vld [vmem:[#allocation8 + $0x528] ss:$16 sps:$4 sm:$0xff]  }
  0xeb   :  { %2039 = vmatprep.subr.bf16.mxu0 %v4118_v22  ;;  %2211 = vmatprep.subr.bf16.mxu1 %v4121_v23  ;;  %v4208_v22 = vld [vmem:[#allocation8 + $0x544] ss:$16 sps:$4 sm:$0xff]   ;;  %v4211_v23 = vld [vmem:[#allocation8 + $0x54c] ss:$16 sps:$4 sm:$0xff]  }
  0xee   :  { %2040 = vmatpush1.bf16.msra.mxu0 %v4116_v24  ;;  %2212 = vmatpush1.bf16.msra.mxu1 %v4119_v25  ;;  %v4206_v24 = vld [vmem:[#allocation8 + $0x540] ss:$16 sps:$4 sm:$0xff]   ;;  %v4209_v25 = vld [vmem:[#allocation8 + $0x548] ss:$16 sps:$4 sm:$0xff]  }
  0xef   :  { %2041 = vmatprep.subr.bf16.mxu0 %v4124_v26  ;;  %2213 = vmatprep.subr.bf16.mxu1 %v4127_v27  ;;  %v4214_v26 = vld [vmem:[#allocation8 + $0x564] ss:$16 sps:$4 sm:$0xff]   ;;  %v4217_v27 = vld [vmem:[#allocation8 + $0x56c] ss:$16 sps:$4 sm:$0xff]  }
  0xf2   :  { %2042 = vmatpush1.bf16.msra.mxu0 %v4122_v28  ;;  %2214 = vmatpush1.bf16.msra.mxu1 %v4125_v29  ;;  %v4212_v28 = vld [vmem:[#allocation8 + $0x560] ss:$16 sps:$4 sm:$0xff]   ;;  %v4215_v29 = vld [vmem:[#allocation8 + $0x568] ss:$16 sps:$4 sm:$0xff]  }
  0xf3   :  { %2043 = vmatprep.subr.bf16.mxu0 %v4130_v30  ;;  %2215 = vmatprep.subr.bf16.mxu1 %v4133_v31  ;;  %v4220_v30 = vld [vmem:[#allocation8 + $0x584] ss:$16 sps:$4 sm:$0xff]   ;;  %v4223_v31 = vld [vmem:[#allocation8 + $0x58c] ss:$16 sps:$4 sm:$0xff]  }
  0xf6   :  { %2044 = vmatpush1.bf16.msra.mxu0 %v4128_v32  ;;  %2216 = vmatpush1.bf16.msra.mxu1 %v4131_v33  ;;  %v4218_v32 = vld [vmem:[#allocation8 + $0x580] ss:$16 sps:$4 sm:$0xff]   ;;  %v4221_v33 = vld [vmem:[#allocation8 + $0x588] ss:$16 sps:$4 sm:$0xff]  }
  0xf7   :  { %2045 = vmatprep.subr.bf16.mxu0 %v4136_v34  ;;  %2217 = vmatprep.subr.bf16.mxu1 %v4139_v35  ;;  %v4226_v34 = vld [vmem:[#allocation8 + $0x5a4] ss:$16 sps:$4 sm:$0xff]   ;;  %v4229_v35 = vld [vmem:[#allocation8 + $0x5ac] ss:$16 sps:$4 sm:$0xff]  }
  0xfa   :  { %2046 = vmatpush1.bf16.msra.mxu0 %v4134_v36  ;;  %2218 = vmatpush1.bf16.msra.mxu1 %v4137_v37  ;;  %v4224_v36 = vld [vmem:[#allocation8 + $0x5a0] ss:$16 sps:$4 sm:$0xff]   ;;  %v4227_v37 = vld [vmem:[#allocation8 + $0x5a8] ss:$16 sps:$4 sm:$0xff]  }
  0xfb   :  { %2047 = vmatprep.subr.bf16.mxu0 %v4142_v38  ;;  %2219 = vmatprep.subr.bf16.mxu1 %v4145_v39  ;;  %v4232_v38 = vld [vmem:[#allocation8 + $0x5c4] ss:$16 sps:$4 sm:$0xff]   ;;  %v4235_v39 = vld [vmem:[#allocation8 + $0x5cc] ss:$16 sps:$4 sm:$0xff]  }
  0xfe   :  { %2048 = vmatpush1.bf16.msra.mxu0 %v4140_v40  ;;  %2220 = vmatpush1.bf16.msra.mxu1 %v4143_v41  ;;  %v4230_v40 = vld [vmem:[#allocation8 + $0x5c0] ss:$16 sps:$4 sm:$0xff]   ;;  %v4233_v41 = vld [vmem:[#allocation8 + $0x5c8] ss:$16 sps:$4 sm:$0xff]  }
  0xff   :  { %2060 = vmatprep.subr.bf16.mxu0 %v4148_v42  ;;  %2232 = vmatprep.subr.bf16.mxu1 %v4151_v43  ;;  %v4238_v42 = vld [vmem:[#allocation8 + $0x5e4] ss:$16 sps:$4 sm:$0xff]   ;;  %v4241_v43 = vld [vmem:[#allocation8 + $0x5ec] ss:$16 sps:$4 sm:$0xff]  }
 0x101   :  { %2050 = vmatmul.mubr.bf16.vlgmr.msra.gmra.mrb[0].mxu0 %v3452_v46  ;;  %2222 = vmatmul.mubr.bf16.vlgmr.msra.gmra.mrb[0].mxu1 %v3452_v46  ;;  %v4239_v46 = vld [vmem:[#allocation8 + $0x5e8] ss:$16 sps:$4 sm:$0xff]  }
 0x102   :  { %2061 = vmatpush1.bf16.msra.mxu0 %v4146_v44  ;;  %2233 = vmatpush1.bf16.msra.mxu1 %v4149_v48  ;;  %v4236_v44 = vld [vmem:[#allocation8 + $0x5e0] ss:$16 sps:$4 sm:$0xff]   ;;  %v4244_v48 = vld [vmem:[#allocation8 + $0x604] ss:$16 sps:$4 sm:$0xff]  }
 0x103   :  { %2062 = vmatprep.subr.bf16.mxu0 %v4154_v49  ;;  %2234 = vmatprep.subr.bf16.mxu1 %v4157_v50  ;;  %v4247_v49 = vld [vmem:[#allocation8 + $0x60c] ss:$16 sps:$4 sm:$0xff]   ;;  %v4242_v50 = vld [vmem:[#allocation8 + $0x600] ss:$16 sps:$4 sm:$0xff]  }
 0x104   :  { %2092 = vmatprep.mubr.bf16.mxu0 %v3455_v51  ;;  %2264 = vmatprep.mubr.bf16.mxu1 %v3455_v51  ;;  %v3454_v51 = vcombine.low %v4811_v45, %v4815_v47  ;;  %v4251_v45 = vld [vmem:[#allocation8 + $0x628] ss:$16 sps:$4 sm:$0xff]   ;;  %v4256_v47 = vld [vmem:[#allocation8 + $0x644] ss:$16 sps:$4 sm:$0xff]  }
 0x106   :  { %2063 = vmatpush1.bf16.msra.mxu0 %v4152_v52  ;;  %2235 = vmatpush1.bf16.msra.mxu1 %v4155_v53  ;;  %v4821_v52 = vld [vmem:[#allocation3 + $0x18] sm:$0xff] }
 0x107   :  { %2064 = vmatprep.subr.bf16.mxu0 %v4160_v54  ;;  %2236 = vmatprep.subr.bf16.mxu1 %v4163_v55  ;;  %v4823_v53 = vld [vmem:[#allocation3 + $0x38] sm:$0xff]  ;;  %v4245_v54 = vld [vmem:[#allocation8 + $0x608] ss:$16 sps:$4 sm:$0xff]  }
 0x108   :  { %v4250_v55 = vld [vmem:[#allocation8 + $0x624] ss:$16 sps:$4 sm:$0xff]  }
 0x10a   :  { %2065 = vmatpush1.bf16.msra.mxu0 %v4158_v56  ;;  %2237 = vmatpush1.bf16.msra.mxu1 %v4161_v57  ;;  %v4253_v56 = vld [vmem:[#allocation8 + $0x62c] ss:$16 sps:$4 sm:$0xff]   ;;  %v3457_v57 = vcombine.high %v4821_v52, %v4823_v53 }
 0x10b   :  { %2066 = vmatprep.subr.bf16.mxu0 %v4166_v58  ;;  %2238 = vmatprep.subr.bf16.mxu1 %v4169_v59  ;;  %v4248_v58 = vld [vmem:[#allocation8 + $0x620] ss:$16 sps:$4 sm:$0xff]   ;;  %v4259_v59 = vld [vmem:[#allocation8 + $0x64c] ss:$16 sps:$4 sm:$0xff]  }
 0x10e   :  { %2067 = vmatpush1.bf16.msra.mxu0 %v4164_v60  ;;  %2239 = vmatpush1.bf16.msra.mxu1 %v4167_v61  ;;  %v4254_v60 = vld [vmem:[#allocation8 + $0x640] ss:$16 sps:$4 sm:$0xff]   ;;  %v4257_v61 = vld [vmem:[#allocation8 + $0x648] ss:$16 sps:$4 sm:$0xff]  }
 0x10f   :  { %2068 = vmatprep.subr.bf16.mxu0 %v4172_v62  ;;  %2240 = vmatprep.subr.bf16.mxu1 %v4175_v63  ;;  %v4262_v62 = vld [vmem:[#allocation8 + $0x664] ss:$16 sps:$4 sm:$0xff]   ;;  %v4265_v63 = vld [vmem:[#allocation8 + $0x66c] ss:$16 sps:$4 sm:$0xff]  }
 0x112   :  { %2069 = vmatpush1.bf16.msra.mxu0 %v4170_v0  ;;  %2241 = vmatpush1.bf16.msra.mxu1 %v4173_v1  ;;  %v4260_v0 = vld [vmem:[#allocation8 + $0x660] ss:$16 sps:$4 sm:$0xff]   ;;  %v4263_v1 = vld [vmem:[#allocation8 + $0x668] ss:$16 sps:$4 sm:$0xff]  }
 0x113   :  { %2070 = vmatprep.subr.bf16.mxu0 %v4178_v2  ;;  %2242 = vmatprep.subr.bf16.mxu1 %v4181_v3  ;;  %v4268_v2 = vld [vmem:[#allocation8 + $0x684] ss:$16 sps:$4 sm:$0xff]   ;;  %v4271_v3 = vld [vmem:[#allocation8 + $0x68c] ss:$16 sps:$4 sm:$0xff]  }
 0x116   :  { %2071 = vmatpush1.bf16.msra.mxu0 %v4176_v4  ;;  %2243 = vmatpush1.bf16.msra.mxu1 %v4179_v5  ;;  %v4266_v4 = vld [vmem:[#allocation8 + $0x680] ss:$16 sps:$4 sm:$0xff]   ;;  %v4269_v5 = vld [vmem:[#allocation8 + $0x688] ss:$16 sps:$4 sm:$0xff]  }
 0x117   :  { %2072 = vmatprep.subr.bf16.mxu0 %v4184_v6  ;;  %2244 = vmatprep.subr.bf16.mxu1 %v4187_v7  ;;  %v4274_v6 = vld [vmem:[#allocation8 + $0x6a4] ss:$16 sps:$4 sm:$0xff]   ;;  %v4277_v7 = vld [vmem:[#allocation8 + $0x6ac] ss:$16 sps:$4 sm:$0xff]  }
 0x11a   :  { %2073 = vmatpush1.bf16.msra.mxu0 %v4182_v8  ;;  %2245 = vmatpush1.bf16.msra.mxu1 %v4185_v9  ;;  %v4272_v8 = vld [vmem:[#allocation8 + $0x6a0] ss:$16 sps:$4 sm:$0xff]   ;;  %v4275_v9 = vld [vmem:[#allocation8 + $0x6a8] ss:$16 sps:$4 sm:$0xff]  }
 0x11b   :  { %2074 = vmatprep.subr.bf16.mxu0 %v4190_v10  ;;  %2246 = vmatprep.subr.bf16.mxu1 %v4193_v11  ;;  %v4280_v10 = vld [vmem:[#allocation8 + $0x6c4] ss:$16 sps:$4 sm:$0xff]   ;;  %v4283_v11 = vld [vmem:[#allocation8 + $0x6cc] ss:$16 sps:$4 sm:$0xff]  }
 0x11e   :  { %2075 = vmatpush1.bf16.msra.mxu0 %v4188_v12  ;;  %2247 = vmatpush1.bf16.msra.mxu1 %v4191_v13  ;;  %v4278_v12 = vld [vmem:[#allocation8 + $0x6c0] ss:$16 sps:$4 sm:$0xff]   ;;  %v4281_v13 = vld [vmem:[#allocation8 + $0x6c8] ss:$16 sps:$4 sm:$0xff]  }
 0x11f   :  { %2076 = vmatprep.subr.bf16.mxu0 %v4196_v14  ;;  %2248 = vmatprep.subr.bf16.mxu1 %v4199_v15  ;;  %v4286_v14 = vld [vmem:[#allocation8 + $0x6e4] ss:$16 sps:$4 sm:$0xff]   ;;  %v4289_v15 = vld [vmem:[#allocation8 + $0x6ec] ss:$16 sps:$4 sm:$0xff]  }
 0x122   :  { %2077 = vmatpush1.bf16.msra.mxu0 %v4194_v16  ;;  %2249 = vmatpush1.bf16.msra.mxu1 %v4197_v17  ;;  %v4284_v16 = vld [vmem:[#allocation8 + $0x6e0] ss:$16 sps:$4 sm:$0xff]   ;;  %v4287_v17 = vld [vmem:[#allocation8 + $0x6e8] ss:$16 sps:$4 sm:$0xff]  }
 0x123   :  { %2078 = vmatprep.subr.bf16.mxu0 %v4202_v18  ;;  %2250 = vmatprep.subr.bf16.mxu1 %v4205_v19  ;;  %v4292_v18 = vld [vmem:[#allocation8 + $0x704] ss:$16 sps:$4 sm:$0xff]   ;;  %v4295_v19 = vld [vmem:[#allocation8 + $0x70c] ss:$16 sps:$4 sm:$0xff]  }
 0x126   :  { %2079 = vmatpush1.bf16.msra.mxu0 %v4200_v20  ;;  %2251 = vmatpush1.bf16.msra.mxu1 %v4203_v21  ;;  %v4290_v20 = vld [vmem:[#allocation8 + $0x700] ss:$16 sps:$4 sm:$0xff]   ;;  %v4293_v21 = vld [vmem:[#allocation8 + $0x708] ss:$16 sps:$4 sm:$0xff]  }
 0x127   :  { %2080 = vmatprep.subr.bf16.mxu0 %v4208_v22  ;;  %2252 = vmatprep.subr.bf16.mxu1 %v4211_v23  ;;  %v4298_v22 = vld [vmem:[#allocation8 + $0x724] ss:$16 sps:$4 sm:$0xff]   ;;  %v4301_v23 = vld [vmem:[#allocation8 + $0x72c] ss:$16 sps:$4 sm:$0xff]  }
 0x12a   :  { %2081 = vmatpush1.bf16.msra.mxu0 %v4206_v24  ;;  %2253 = vmatpush1.bf16.msra.mxu1 %v4209_v25  ;;  %v4296_v24 = vld [vmem:[#allocation8 + $0x720] ss:$16 sps:$4 sm:$0xff]   ;;  %v4299_v25 = vld [vmem:[#allocation8 + $0x728] ss:$16 sps:$4 sm:$0xff]  }
 0x12b   :  { %2082 = vmatprep.subr.bf16.mxu0 %v4214_v26  ;;  %2254 = vmatprep.subr.bf16.mxu1 %v4217_v27  ;;  %v4304_v26 = vld [vmem:[#allocation8 + $0x744] ss:$16 sps:$4 sm:$0xff]   ;;  %v4307_v27 = vld [vmem:[#allocation8 + $0x74c] ss:$16 sps:$4 sm:$0xff]  }
 0x12e   :  { %2083 = vmatpush1.bf16.msra.mxu0 %v4212_v28  ;;  %2255 = vmatpush1.bf16.msra.mxu1 %v4215_v29  ;;  %v4302_v28 = vld [vmem:[#allocation8 + $0x740] ss:$16 sps:$4 sm:$0xff]   ;;  %v4305_v29 = vld [vmem:[#allocation8 + $0x748] ss:$16 sps:$4 sm:$0xff]  }
 0x12f   :  { %2084 = vmatprep.subr.bf16.mxu0 %v4220_v30  ;;  %2256 = vmatprep.subr.bf16.mxu1 %v4223_v31  ;;  %v4310_v30 = vld [vmem:[#allocation8 + $0x764] ss:$16 sps:$4 sm:$0xff]   ;;  %v4313_v31 = vld [vmem:[#allocation8 + $0x76c] ss:$16 sps:$4 sm:$0xff]  }
 0x132   :  { %2085 = vmatpush1.bf16.msra.mxu0 %v4218_v32  ;;  %2257 = vmatpush1.bf16.msra.mxu1 %v4221_v33  ;;  %v4308_v32 = vld [vmem:[#allocation8 + $0x760] ss:$16 sps:$4 sm:$0xff]   ;;  %v4311_v33 = vld [vmem:[#allocation8 + $0x768] ss:$16 sps:$4 sm:$0xff]  }
 0x133   :  { %2086 = vmatprep.subr.bf16.mxu0 %v4226_v34  ;;  %2258 = vmatprep.subr.bf16.mxu1 %v4229_v35  ;;  %v4316_v34 = vld [vmem:[#allocation8 + $0x784] ss:$16 sps:$4 sm:$0xff]   ;;  %v4319_v35 = vld [vmem:[#allocation8 + $0x78c] ss:$16 sps:$4 sm:$0xff]  }
 0x136   :  { %2087 = vmatpush1.bf16.msra.mxu0 %v4224_v36  ;;  %2259 = vmatpush1.bf16.msra.mxu1 %v4227_v37  ;;  %v4314_v36 = vld [vmem:[#allocation8 + $0x780] ss:$16 sps:$4 sm:$0xff]   ;;  %v4317_v37 = vld [vmem:[#allocation8 + $0x788] ss:$16 sps:$4 sm:$0xff]  }
 0x137   :  { %2088 = vmatprep.subr.bf16.mxu0 %v4232_v38  ;;  %2260 = vmatprep.subr.bf16.mxu1 %v4235_v39  ;;  %v4322_v38 = vld [vmem:[#allocation8 + $0x7a4] ss:$16 sps:$4 sm:$0xff]   ;;  %v4325_v39 = vld [vmem:[#allocation8 + $0x7ac] ss:$16 sps:$4 sm:$0xff]  }
 0x13a   :  { %2089 = vmatpush1.bf16.msra.mxu0 %v4230_v40  ;;  %2261 = vmatpush1.bf16.msra.mxu1 %v4233_v41  ;;  %v4320_v40 = vld [vmem:[#allocation8 + $0x7a0] ss:$16 sps:$4 sm:$0xff]   ;;  %v4323_v41 = vld [vmem:[#allocation8 + $0x7a8] ss:$16 sps:$4 sm:$0xff]  }
 0x13b   :  { %2090 = vmatprep.subr.bf16.mxu0 %v4238_v42  ;;  %2262 = vmatprep.subr.bf16.mxu1 %v4241_v43  ;;  %v4328_v42 = vld [vmem:[#allocation8 + $0x7c4] ss:$16 sps:$4 sm:$0xff]   ;;  %v4331_v43 = vld [vmem:[#allocation8 + $0x7cc] ss:$16 sps:$4 sm:$0xff]  }
 0x13e   :  { %2091 = vmatpush1.bf16.msra.mxu0 %v4236_v44  ;;  %2263 = vmatpush1.bf16.msra.mxu1 %v4239_v46  ;;  %v4326_v44 = vld [vmem:[#allocation8 + $0x7c0] ss:$16 sps:$4 sm:$0xff]   ;;  %v4329_v46 = vld [vmem:[#allocation8 + $0x7c8] ss:$16 sps:$4 sm:$0xff]  }
 0x13f   :  { %2103 = vmatprep.subr.bf16.mxu0 %v4244_v48  ;;  %2275 = vmatprep.subr.bf16.mxu1 %v4247_v49  ;;  %v4334_v48 = vld [vmem:[#allocation8 + $0x7e4] ss:$16 sps:$4 sm:$0xff]   ;;  %v4337_v49 = vld [vmem:[#allocation8 + $0x7ec] ss:$16 sps:$4 sm:$0xff]  }
 0x141   :  { %2093 = vmatmul.mubr.bf16.vlgmr.msra.gmra.mrb[0].mxu0 %v3454_v51  ;;  %2265 = vmatmul.mubr.bf16.vlgmr.msra.gmra.mrb[0].mxu1 %v3454_v51  ;;  %v4335_v51 = vld [vmem:[#allocation8 + $0x7e8] ss:$16 sps:$4 sm:$0xff]  }
 0x142   :  { %2104 = vmatpush1.bf16.msra.mxu0 %v4242_v50  ;;  %2276 = vmatpush1.bf16.msra.mxu1 %v4245_v54  ;;  %v4332_v50 = vld [vmem:[#allocation8 + $0x7e0] ss:$16 sps:$4 sm:$0xff]   ;;  %v4340_v54 = vld [vmem:[#allocation11 + $0x4] ss:$16 sps:$4 sm:$0xff]  }
 0x143   :  { %2105 = vmatprep.subr.bf16.mxu0 %v4250_v55  ;;  %2277 = vmatprep.subr.bf16.mxu1 %v4253_v56  ;;  %v4343_v55 = vld [vmem:[#allocation11 + $0xc] ss:$16 sps:$4 sm:$0xff]   ;;  %v3456_v56 = vcombine.low %v4821_v52, %v4823_v53  ;;  %v4350_v52 = vld [vmem:[#allocation11 + $0x40] ss:$16 sps:$4 sm:$0xff]   ;;  %v4353_v53 = vld [vmem:[#allocation11 + $0x48] ss:$16 sps:$4 sm:$0xff]  }
 0x144   :  { %2135 = vmatprep.mubr.bf16.mxu0 %v3457_v57  ;;  %2307 = vmatprep.mubr.bf16.mxu1 %v3457_v57  ;;  %v4338_v57 = vld [vmem:[#allocation11] ss:$16 sps:$4 sm:$0xff]  }
 0x146   :  { %2106 = vmatpush1.bf16.msra.mxu0 %v4248_v58  ;;  %2278 = vmatpush1.bf16.msra.mxu1 %v4251_v45  ;;  %v4341_v58 = vld [vmem:[#allocation11 + $0x8] ss:$16 sps:$4 sm:$0xff]   ;;  %v4346_v45 = vld [vmem:[#allocation11 + $0x24] ss:$16 sps:$4 sm:$0xff]  }
 0x147   :  { %2107 = vmatprep.subr.bf16.mxu0 %v4256_v47  ;;  %2279 = vmatprep.subr.bf16.mxu1 %v4259_v59  ;;  %v4349_v47 = vld [vmem:[#allocation11 + $0x2c] ss:$16 sps:$4 sm:$0xff]   ;;  %v4344_v59 = vld [vmem:[#allocation11 + $0x20] ss:$16 sps:$4 sm:$0xff]  }
 0x14a   :  { %2108 = vmatpush1.bf16.msra.mxu0 %v4254_v60  ;;  %2280 = vmatpush1.bf16.msra.mxu1 %v4257_v61  ;;  %v4347_v60 = vld [vmem:[#allocation11 + $0x28] ss:$16 sps:$4 sm:$0xff]   ;;  %v4352_v61 = vld [vmem:[#allocation11 + $0x44] ss:$16 sps:$4 sm:$0xff]  }
 0x14b   :  { %2109 = vmatprep.subr.bf16.mxu0 %v4262_v62  ;;  %2281 = vmatprep.subr.bf16.mxu1 %v4265_v63  ;;  %v4355_v62 = vld [vmem:[#allocation11 + $0x4c] ss:$16 sps:$4 sm:$0xff]   ;;  %v4358_v63 = vld [vmem:[#allocation11 + $0x64] ss:$16 sps:$4 sm:$0xff]  }
 0x14e   :  { %2110 = vmatpush1.bf16.msra.mxu0 %v4260_v0  ;;  %2282 = vmatpush1.bf16.msra.mxu1 %v4263_v1  ;;  %v4361_v0 = vld [vmem:[#allocation11 + $0x6c] ss:$16 sps:$4 sm:$0xff]   ;;  %v4356_v1 = vld [vmem:[#allocation11 + $0x60] ss:$16 sps:$4 sm:$0xff]  }
 0x14f   :  { %2111 = vmatprep.subr.bf16.mxu0 %v4268_v2  ;;  %2283 = vmatprep.subr.bf16.mxu1 %v4271_v3  ;;  %v4359_v2 = vld [vmem:[#allocation11 + $0x68] ss:$16 sps:$4 sm:$0xff]   ;;  %v4364_v3 = vld [vmem:[#allocation11 + $0x84] ss:$16 sps:$4 sm:$0xff]  }
 0x152   :  { %2112 = vmatpush1.bf16.msra.mxu0 %v4266_v4  ;;  %2284 = vmatpush1.bf16.msra.mxu1 %v4269_v5  ;;  %v4367_v4 = vld [vmem:[#allocation11 + $0x8c] ss:$16 sps:$4 sm:$0xff]   ;;  %v4362_v5 = vld [vmem:[#allocation11 + $0x80] ss:$16 sps:$4 sm:$0xff]  }
 0x153   :  { %2113 = vmatprep.subr.bf16.mxu0 %v4274_v6  ;;  %2285 = vmatprep.subr.bf16.mxu1 %v4277_v7  ;;  %v4365_v6 = vld [vmem:[#allocation11 + $0x88] ss:$16 sps:$4 sm:$0xff]   ;;  %v4370_v7 = vld [vmem:[#allocation11 + $0xa4] ss:$16 sps:$4 sm:$0xff]  }
 0x156   :  { %2114 = vmatpush1.bf16.msra.mxu0 %v4272_v8  ;;  %2286 = vmatpush1.bf16.msra.mxu1 %v4275_v9  ;;  %v4373_v8 = vld [vmem:[#allocation11 + $0xac] ss:$16 sps:$4 sm:$0xff]   ;;  %v4368_v9 = vld [vmem:[#allocation11 + $0xa0] ss:$16 sps:$4 sm:$0xff]  }
 0x157   :  { %2115 = vmatprep.subr.bf16.mxu0 %v4280_v10  ;;  %2287 = vmatprep.subr.bf16.mxu1 %v4283_v11  ;;  %v4371_v10 = vld [vmem:[#allocation11 + $0xa8] ss:$16 sps:$4 sm:$0xff]   ;;  %v4376_v11 = vld [vmem:[#allocation11 + $0xc4] ss:$16 sps:$4 sm:$0xff]  }
 0x15a   :  { %2116 = vmatpush1.bf16.msra.mxu0 %v4278_v12  ;;  %2288 = vmatpush1.bf16.msra.mxu1 %v4281_v13  ;;  %v4379_v12 = vld [vmem:[#allocation11 + $0xcc] ss:$16 sps:$4 sm:$0xff]   ;;  %v4374_v13 = vld [vmem:[#allocation11 + $0xc0] ss:$16 sps:$4 sm:$0xff]  }
 0x15b   :  { %2117 = vmatprep.subr.bf16.mxu0 %v4286_v14  ;;  %2289 = vmatprep.subr.bf16.mxu1 %v4289_v15  ;;  %v4377_v14 = vld [vmem:[#allocation11 + $0xc8] ss:$16 sps:$4 sm:$0xff]   ;;  %v4382_v15 = vld [vmem:[#allocation11 + $0xe4] ss:$16 sps:$4 sm:$0xff]  }
 0x15e   :  { %2118 = vmatpush1.bf16.msra.mxu0 %v4284_v16  ;;  %2290 = vmatpush1.bf16.msra.mxu1 %v4287_v17  ;;  %v4385_v16 = vld [vmem:[#allocation11 + $0xec] ss:$16 sps:$4 sm:$0xff]   ;;  %v4380_v17 = vld [vmem:[#allocation11 + $0xe0] ss:$16 sps:$4 sm:$0xff]  }
 0x15f   :  { %2119 = vmatprep.subr.bf16.mxu0 %v4292_v18  ;;  %2291 = vmatprep.subr.bf16.mxu1 %v4295_v19  ;;  %v4383_v18 = vld [vmem:[#allocation11 + $0xe8] ss:$16 sps:$4 sm:$0xff]   ;;  %v4388_v19 = vld [vmem:[#allocation11 + $0x104] ss:$16 sps:$4 sm:$0xff]  }
 0x162   :  { %2120 = vmatpush1.bf16.msra.mxu0 %v4290_v20  ;;  %2292 = vmatpush1.bf16.msra.mxu1 %v4293_v21  ;;  %v4391_v20 = vld [vmem:[#allocation11 + $0x10c] ss:$16 sps:$4 sm:$0xff]   ;;  %v4386_v21 = vld [vmem:[#allocation11 + $0x100] ss:$16 sps:$4 sm:$0xff]  }
 0x163   :  { %2121 = vmatprep.subr.bf16.mxu0 %v4298_v22  ;;  %2293 = vmatprep.subr.bf16.mxu1 %v4301_v23  ;;  %v4389_v22 = vld [vmem:[#allocation11 + $0x108] ss:$16 sps:$4 sm:$0xff]   ;;  %v4394_v23 = vld [vmem:[#allocation11 + $0x124] ss:$16 sps:$4 sm:$0xff]  }
 0x166   :  { %2122 = vmatpush1.bf16.msra.mxu0 %v4296_v24  ;;  %2294 = vmatpush1.bf16.msra.mxu1 %v4299_v25  ;;  %v4397_v24 = vld [vmem:[#allocation11 + $0x12c] ss:$16 sps:$4 sm:$0xff]   ;;  %v4392_v25 = vld [vmem:[#allocation11 + $0x120] ss:$16 sps:$4 sm:$0xff]  }
 0x167   :  { %2123 = vmatprep.subr.bf16.mxu0 %v4304_v26  ;;  %2295 = vmatprep.subr.bf16.mxu1 %v4307_v27  ;;  %v4395_v26 = vld [vmem:[#allocation11 + $0x128] ss:$16 sps:$4 sm:$0xff]   ;;  %v4400_v27 = vld [vmem:[#allocation11 + $0x144] ss:$16 sps:$4 sm:$0xff]  }
 0x16a   :  { %2124 = vmatpush1.bf16.msra.mxu0 %v4302_v28  ;;  %2296 = vmatpush1.bf16.msra.mxu1 %v4305_v29  ;;  %v4403_v28 = vld [vmem:[#allocation11 + $0x14c] ss:$16 sps:$4 sm:$0xff]   ;;  %v4398_v29 = vld [vmem:[#allocation11 + $0x140] ss:$16 sps:$4 sm:$0xff]  }
 0x16b   :  { %2125 = vmatprep.subr.bf16.mxu0 %v4310_v30  ;;  %2297 = vmatprep.subr.bf16.mxu1 %v4313_v31  ;;  %v4401_v30 = vld [vmem:[#allocation11 + $0x148] ss:$16 sps:$4 sm:$0xff]   ;;  %v4406_v31 = vld [vmem:[#allocation11 + $0x164] ss:$16 sps:$4 sm:$0xff]  }
 0x16e   :  { %2126 = vmatpush1.bf16.msra.mxu0 %v4308_v32  ;;  %2298 = vmatpush1.bf16.msra.mxu1 %v4311_v33  ;;  %v4409_v32 = vld [vmem:[#allocation11 + $0x16c] ss:$16 sps:$4 sm:$0xff]   ;;  %v4404_v33 = vld [vmem:[#allocation11 + $0x160] ss:$16 sps:$4 sm:$0xff]  }
 0x16f   :  { %2127 = vmatprep.subr.bf16.mxu0 %v4316_v34  ;;  %2299 = vmatprep.subr.bf16.mxu1 %v4319_v35  ;;  %v4407_v34 = vld [vmem:[#allocation11 + $0x168] ss:$16 sps:$4 sm:$0xff]   ;;  %v4412_v35 = vld [vmem:[#allocation11 + $0x184] ss:$16 sps:$4 sm:$0xff]  }
 0x172   :  { %2128 = vmatpush1.bf16.msra.mxu0 %v4314_v36  ;;  %2300 = vmatpush1.bf16.msra.mxu1 %v4317_v37  ;;  %v4415_v36 = vld [vmem:[#allocation11 + $0x18c] ss:$16 sps:$4 sm:$0xff]   ;;  %v4410_v37 = vld [vmem:[#allocation11 + $0x180] ss:$16 sps:$4 sm:$0xff]  }
 0x173   :  { %2129 = vmatprep.subr.bf16.mxu0 %v4322_v38  ;;  %2301 = vmatprep.subr.bf16.mxu1 %v4325_v39  ;;  %v4413_v38 = vld [vmem:[#allocation11 + $0x188] ss:$16 sps:$4 sm:$0xff]   ;;  %v4418_v39 = vld [vmem:[#allocation11 + $0x1a4] ss:$16 sps:$4 sm:$0xff]  }
 0x176   :  { %2130 = vmatpush1.bf16.msra.mxu0 %v4320_v40  ;;  %2302 = vmatpush1.bf16.msra.mxu1 %v4323_v41  ;;  %v4421_v40 = vld [vmem:[#allocation11 + $0x1ac] ss:$16 sps:$4 sm:$0xff]   ;;  %v4416_v41 = vld [vmem:[#allocation11 + $0x1a0] ss:$16 sps:$4 sm:$0xff]  }
 0x177   :  { %2131 = vmatprep.subr.bf16.mxu0 %v4328_v42  ;;  %2303 = vmatprep.subr.bf16.mxu1 %v4331_v43  ;;  %v4419_v42 = vld [vmem:[#allocation11 + $0x1a8] ss:$16 sps:$4 sm:$0xff]   ;;  %v4424_v43 = vld [vmem:[#allocation11 + $0x1c4] ss:$16 sps:$4 sm:$0xff]  }
 0x17a   :  { %2132 = vmatpush1.bf16.msra.mxu0 %v4326_v44  ;;  %2304 = vmatpush1.bf16.msra.mxu1 %v4329_v46  ;;  %v4427_v44 = vld [vmem:[#allocation11 + $0x1cc] ss:$16 sps:$4 sm:$0xff]   ;;  %v4422_v46 = vld [vmem:[#allocation11 + $0x1c0] ss:$16 sps:$4 sm:$0xff]  }
 0x17b   :  { %2133 = vmatprep.subr.bf16.mxu0 %v4334_v48  ;;  %2305 = vmatprep.subr.bf16.mxu1 %v4337_v49  ;;  %v4425_v48 = vld [vmem:[#allocation11 + $0x1c8] ss:$16 sps:$4 sm:$0xff]   ;;  %v4430_v49 = vld [vmem:[#allocation11 + $0x1e4] ss:$16 sps:$4 sm:$0xff]  }
 0x17e   :  { %2134 = vmatpush1.bf16.msra.mxu0 %v4332_v50  ;;  %2306 = vmatpush1.bf16.msra.mxu1 %v4335_v51  ;;  %v4433_v50 = vld [vmem:[#allocation11 + $0x1ec] ss:$16 sps:$4 sm:$0xff]   ;;  %v4428_v51 = vld [vmem:[#allocation11 + $0x1e0] ss:$16 sps:$4 sm:$0xff]  }
 0x17f   :  { %3150 = vmatprep.subr.bf16.mxu0 %v4340_v54  ;;  %3236 = vmatprep.subr.bf16.mxu1 %v4343_v55  ;;  %v4431_v54 = vld [vmem:[#allocation11 + $0x1e8] ss:$16 sps:$4 sm:$0xff]   ;;  %v4436_v55 = vld [vmem:[#allocation11 + $0x204] ss:$16 sps:$4 sm:$0xff]  }
 0x181   :  { %2136 = vmatmul.mubr.bf16.vlgmr.msra.gmra.mrb[0].mxu0 %v3456_v56  ;;  %2308 = vmatmul.mubr.bf16.vlgmr.msra.gmra.mrb[0].mxu1 %v3456_v56  ;;  %v4439_v56 = vld [vmem:[#allocation11 + $0x20c] ss:$16 sps:$4 sm:$0xff]  }
 0x182   :  { %3151 = vmatpush1.bf16.msra.mxu0 %v4338_v57  ;;  %3237 = vmatpush1.bf16.msra.mxu1 %v4341_v58  ;;  %v2320_v57 = vlaneseq }
 0x183   :  { %3152 = vmatprep.subr.bf16.mxu0 %v4346_v45  ;;  %3238 = vmatprep.subr.bf16.mxu1 %v4349_v47 }
 0x184   :  { %v4830_v58 = vshrl.u32 %v2320_v57, 7 }
 0x186   :  { %3153 = vmatpush1.bf16.msra.mxu0 %v4344_v59  ;;  %3239 = vmatpush1.bf16.msra.mxu1 %v4347_v60  ;;  %v4833_v45 = vsub.s32 0, %v4830_v58  ;;  %v4836_v47 = vsub.s32 2, %v4830_v58  ;;  %v2318_v59 = vld [vmem:[%s4889_s4] sm:$0xf]  ;;  %v4842_v60 = vsub.s32 1, %v4830_v58 }
 0x187   :  { %3154 = vmatprep.subr.bf16.mxu0 %v4352_v61  ;;  %3240 = vmatprep.subr.bf16.mxu1 %v4355_v62  ;;  %v4845_v61 = vsub.s32 3, %v4830_v58 }
 0x188   :  { %v2323_v62 = vrot.slane %v2318_v59, %v4833_v45 }
 0x18a   :  { %3155 = vmatpush1.bf16.msra.mxu0 %v4350_v52  ;;  %3241 = vmatpush1.bf16.msra.mxu1 %v4353_v53  ;;  %v2331_v52 = vrot.slane %v2318_v59, %v4836_v47  ;;  %v2327_v53 = vrot.slane %v2318_v59, %v4842_v60 }
 0x18b   :  { %3156 = vmatprep.subr.bf16.mxu0 %v4358_v63  ;;  %3242 = vmatprep.subr.bf16.mxu1 %v4361_v0  ;;  %v2335_v63 = vrot.slane %v2318_v59, %v4845_v61  ;;  %v4473_v59 = vld [vmem:[#allocation11 + $0x2c8] ss:$16 sps:$4 sm:$0xff]  }
 0x18e   :  { %3157 = vmatpush1.bf16.msra.mxu0 %v4356_v1  ;;  %3243 = vmatpush1.bf16.msra.mxu1 %v4359_v2 }
 0x18f   :  { %3158 = vmatprep.subr.bf16.mxu0 %v4364_v3  ;;  %3244 = vmatprep.subr.bf16.mxu1 %v4367_v4 }
 0x192   :  { %3159 = vmatpush1.bf16.msra.mxu0 %v4362_v5  ;;  %3245 = vmatpush1.bf16.msra.mxu1 %v4365_v6 }
 0x193   :  { %3160 = vmatprep.subr.bf16.mxu0 %v4370_v7  ;;  %3246 = vmatprep.subr.bf16.mxu1 %v4373_v8 }
 0x196   :  { %3161 = vmatpush1.bf16.msra.mxu0 %v4368_v9  ;;  %3247 = vmatpush1.bf16.msra.mxu1 %v4371_v10 }
 0x197   :  { %3162 = vmatprep.subr.bf16.mxu0 %v4376_v11  ;;  %3248 = vmatprep.subr.bf16.mxu1 %v4379_v12 }
 0x19a   :  { %3163 = vmatpush1.bf16.msra.mxu0 %v4374_v13  ;;  %3249 = vmatpush1.bf16.msra.mxu1 %v4377_v14 }
 0x19b   :  { %3164 = vmatprep.subr.bf16.mxu0 %v4382_v15  ;;  %3250 = vmatprep.subr.bf16.mxu1 %v4385_v16 }
 0x19e   :  { %3165 = vmatpush1.bf16.msra.mxu0 %v4380_v17  ;;  %3251 = vmatpush1.bf16.msra.mxu1 %v4383_v18 }
 0x19f   :  { %3166 = vmatprep.subr.bf16.mxu0 %v4388_v19  ;;  %3252 = vmatprep.subr.bf16.mxu1 %v4391_v20 }
 0x1a2   :  { %3167 = vmatpush1.bf16.msra.mxu0 %v4386_v21  ;;  %3253 = vmatpush1.bf16.msra.mxu1 %v4389_v22 }
 0x1a3   :  { %3168 = vmatprep.subr.bf16.mxu0 %v4394_v23  ;;  %3254 = vmatprep.subr.bf16.mxu1 %v4397_v24 }
 0x1a6   :  { %3169 = vmatpush1.bf16.msra.mxu0 %v4392_v25  ;;  %3255 = vmatpush1.bf16.msra.mxu1 %v4395_v26 }
 0x1a7   :  { %3170 = vmatprep.subr.bf16.mxu0 %v4400_v27  ;;  %3256 = vmatprep.subr.bf16.mxu1 %v4403_v28  ;;  %v4434_v28 = vld [vmem:[#allocation11 + $0x200] ss:$16 sps:$4 sm:$0xff]  }
 0x1aa   :  { %3171 = vmatpush1.bf16.msra.mxu0 %v4398_v29  ;;  %3257 = vmatpush1.bf16.msra.mxu1 %v4401_v30  ;;  %v4437_v29 = vld [vmem:[#allocation11 + $0x208] ss:$16 sps:$4 sm:$0xff]   ;;  %v4442_v30 = vld [vmem:[#allocation11 + $0x224] ss:$16 sps:$4 sm:$0xff]  }
 0x1ab   :  { %3172 = vmatprep.subr.bf16.mxu0 %v4406_v31  ;;  %3258 = vmatprep.subr.bf16.mxu1 %v4409_v32  ;;  %v4445_v31 = vld [vmem:[#allocation11 + $0x22c] ss:$16 sps:$4 sm:$0xff]   ;;  %v4440_v32 = vld [vmem:[#allocation11 + $0x220] ss:$16 sps:$4 sm:$0xff]  }
 0x1ae   :  { %3173 = vmatpush1.bf16.msra.mxu0 %v4404_v33  ;;  %3259 = vmatpush1.bf16.msra.mxu1 %v4407_v34  ;;  %v4443_v33 = vld [vmem:[#allocation11 + $0x228] ss:$16 sps:$4 sm:$0xff]   ;;  %v4448_v34 = vld [vmem:[#allocation11 + $0x244] ss:$16 sps:$4 sm:$0xff]  }
 0x1af   :  { %3174 = vmatprep.subr.bf16.mxu0 %v4412_v35  ;;  %3260 = vmatprep.subr.bf16.mxu1 %v4415_v36  ;;  %v4451_v35 = vld [vmem:[#allocation11 + $0x24c] ss:$16 sps:$4 sm:$0xff]   ;;  %v4446_v36 = vld [vmem:[#allocation11 + $0x240] ss:$16 sps:$4 sm:$0xff]  }
 0x1b2   :  { %3175 = vmatpush1.bf16.msra.mxu0 %v4410_v37  ;;  %3261 = vmatpush1.bf16.msra.mxu1 %v4413_v38  ;;  %v4449_v37 = vld [vmem:[#allocation11 + $0x248] ss:$16 sps:$4 sm:$0xff]   ;;  %v4454_v38 = vld [vmem:[#allocation11 + $0x264] ss:$16 sps:$4 sm:$0xff]  }
 0x1b3   :  { %3176 = vmatprep.subr.bf16.mxu0 %v4418_v39  ;;  %3262 = vmatprep.subr.bf16.mxu1 %v4421_v40  ;;  %v4457_v39 = vld [vmem:[#allocation11 + $0x26c] ss:$16 sps:$4 sm:$0xff]   ;;  %v4452_v40 = vld [vmem:[#allocation11 + $0x260] ss:$16 sps:$4 sm:$0xff]  }
 0x1b6   :  { %3177 = vmatpush1.bf16.msra.mxu0 %v4416_v41  ;;  %3263 = vmatpush1.bf16.msra.mxu1 %v4419_v42  ;;  %v4455_v41 = vld [vmem:[#allocation11 + $0x268] ss:$16 sps:$4 sm:$0xff]   ;;  %v4460_v42 = vld [vmem:[#allocation11 + $0x284] ss:$16 sps:$4 sm:$0xff]  }
 0x1b7   :  { %3178 = vmatprep.subr.bf16.mxu0 %v4424_v43  ;;  %3264 = vmatprep.subr.bf16.mxu1 %v4427_v44  ;;  %v4463_v43 = vld [vmem:[#allocation11 + $0x28c] ss:$16 sps:$4 sm:$0xff]   ;;  %v4458_v44 = vld [vmem:[#allocation11 + $0x280] ss:$16 sps:$4 sm:$0xff]  }
 0x1ba   :  { %3179 = vmatpush1.bf16.msra.mxu0 %v4422_v46  ;;  %3265 = vmatpush1.bf16.msra.mxu1 %v4425_v48  ;;  %v4461_v46 = vld [vmem:[#allocation11 + $0x288] ss:$16 sps:$4 sm:$0xff]   ;;  %v4466_v48 = vld [vmem:[#allocation11 + $0x2a4] ss:$16 sps:$4 sm:$0xff]  }
 0x1bb   :  { %3180 = vmatprep.subr.bf16.mxu0 %v4430_v49  ;;  %3266 = vmatprep.subr.bf16.mxu1 %v4433_v50  ;;  %v4469_v49 = vld [vmem:[#allocation11 + $0x2ac] ss:$16 sps:$4 sm:$0xff]   ;;  %v4464_v50 = vld [vmem:[#allocation11 + $0x2a0] ss:$16 sps:$4 sm:$0xff]  }
 0x1be   :  { %3181 = vmatpush1.bf16.msra.mxu0 %v4428_v51  ;;  %3267 = vmatpush1.bf16.msra.mxu1 %v4431_v54  ;;  %v4467_v51 = vld [vmem:[#allocation11 + $0x2a8] ss:$16 sps:$4 sm:$0xff]   ;;  %v4472_v54 = vld [vmem:[#allocation11 + $0x2c4] ss:$16 sps:$4 sm:$0xff]  }
 0x1bf   :  { %3193 = vmatprep.subr.bf16.mxu0 %v4436_v55  ;;  %3279 = vmatprep.subr.bf16.mxu1 %v4439_v56  ;;  %v4475_v55 = vld [vmem:[#allocation11 + $0x2cc] ss:$16 sps:$4 sm:$0xff]   ;;  %v4470_v56 = vld [vmem:[#allocation11 + $0x2c0] ss:$16 sps:$4 sm:$0xff]  }
 0x254   :  { %v2137_v0 = vpop.f32.mrb[0].mxu0  ;;  %v2309_v1 = vpop.f32.mrb[0].mxu1 }
 0x255   :  { %v2340_v2 = vadd.f32 %v2323_v62, %v2137_v0  ;;  %v2342_v3 = vadd.f32 %v2331_v52, %v2309_v1  ;;  %v2139_v4 = vpop.f32.mrb[1].mxu0  ;;  %v2311_v5 = vpop.f32.mrb[1].mxu1  ;;  %v4484_v0 = vld [vmem:[#allocation11 + $0x304] ss:$16 sps:$4 sm:$0xff]   ;;  %v4487_v1 = vld [vmem:[#allocation11 + $0x30c] ss:$16 sps:$4 sm:$0xff]  }
 0x256   :  { %v2341_v6 = vadd.f32 %v2327_v53, %v2139_v4  ;;  %v2343_v7 = vadd.f32 %v2335_v63, %v2311_v5  ;;  %v2141_v8 = vpop.f32.mrb[2].mxu0  ;;  %v2313_v9 = vpop.f32.mrb[2].mxu1  ;;  %v4490_v4 = vld [vmem:[#allocation11 + $0x324] ss:$16 sps:$4 sm:$0xff]   ;;  %v4493_v5 = vld [vmem:[#allocation11 + $0x32c] ss:$16 sps:$4 sm:$0xff]  }
 0x257   :  { %v2344_v10 = vadd.f32 %v2323_v62, %v2141_v8  ;;  %v2346_v11 = vadd.f32 %v2331_v52, %v2313_v9  ;;  %v2143_v12 = vpop.f32.mrb[3].mxu0  ;;  %v2315_v13 = vpop.f32.mrb[3].mxu1  ;;  %v2348_v16 = vmax.f32 %v2340_v2, 0.0  ;;  %v2350_v17 = vmax.f32 %v2342_v3, 0.0  ;;  %v4478_v62 = vld [vmem:[#allocation11 + $0x2e4] ss:$16 sps:$4 sm:$0xff]  }
 0x258   :  { %v2345_v14 = vadd.f32 %v2327_v53, %v2143_v12  ;;  %v2347_v15 = vadd.f32 %v2335_v63, %v2315_v13  ;;  %v2349_v20 = vmax.f32 %v2341_v6, 0.0  ;;  %v2351_v21 = vmax.f32 %v2343_v7, 0.0  ;;  %v4481_v52 = vld [vmem:[#allocation11 + $0x2ec] ss:$16 sps:$4 sm:$0xff]   ;;  %v4476_v53 = vld [vmem:[#allocation11 + $0x2e0] ss:$16 sps:$4 sm:$0xff]  }
 0x259   :  { %v2352_v18 = vmax.f32 %v2344_v10, 0.0  ;;  %v2354_v19 = vmax.f32 %v2346_v11, 0.0  ;;  %v4479_v63 = vld [vmem:[#allocation11 + $0x2e8] ss:$16 sps:$4 sm:$0xff]   ;;  %v4482_v2 = vld [vmem:[#allocation11 + $0x300] ss:$16 sps:$4 sm:$0xff]  }
 0x25a   :  { %v2353_v22 = vmax.f32 %v2345_v14, 0.0  ;;  %v2355_v23 = vmax.f32 %v2347_v15, 0.0  ;;  %v4485_v3 = vld [vmem:[#allocation11 + $0x308] ss:$16 sps:$4 sm:$0xff]   ;;  %v4488_v6 = vld [vmem:[#allocation11 + $0x320] ss:$16 sps:$4 sm:$0xff]  }
 0x25b   :  { %v2356_v24 = vpack.c.bf16 %v2352_v18, %v2348_v16  ;;  %v4851_v25 = vpack.c.bf16 %v2354_v19, %v2350_v17  ;;  %v4491_v7 = vld [vmem:[#allocation11 + $0x328] ss:$16 sps:$4 sm:$0xff]   ;;  %v4496_v8 = vld [vmem:[#allocation11 + $0x344] ss:$16 sps:$4 sm:$0xff]   ;;  %v4499_v9 = vld [vmem:[#allocation11 + $0x34c] ss:$16 sps:$4 sm:$0xff]  }
 0x25c   :  { %v2357_v26 = vpack.c.bf16 %v2353_v22, %v2349_v20  ;;  %v2359_v27 = vpack.c.bf16 %v2355_v23, %v2351_v21  ;;  %v4494_v10 = vld [vmem:[#allocation11 + $0x340] ss:$16 sps:$4 sm:$0xff]   ;;  %v4497_v11 = vld [vmem:[#allocation11 + $0x348] ss:$16 sps:$4 sm:$0xff]   ;;  %v4502_v12 = vld [vmem:[#allocation11 + $0x364] ss:$16 sps:$4 sm:$0xff]  }
 0x25d   :  { %v4505_v13 = vld [vmem:[#allocation11 + $0x36c] ss:$16 sps:$4 sm:$0xff]   ;;  %v4500_v14 = vld [vmem:[#allocation11 + $0x360] ss:$16 sps:$4 sm:$0xff]   ;;  %v4503_v15 = vld [vmem:[#allocation11 + $0x368] ss:$16 sps:$4 sm:$0xff]  }
 0x25e   :  { %3182 = vmatprep.mubr.bf16.mxu0 %v2357_v26  ;;  %3268 = vmatprep.mubr.bf16.mxu1 %v2357_v26  ;;  %v4508_v16 = vld [vmem:[#allocation11 + $0x384] ss:$16 sps:$4 sm:$0xff]   ;;  %v4511_v17 = vld [vmem:[#allocation11 + $0x38c] ss:$16 sps:$4 sm:$0xff]   ;;  %v4506_v18 = vld [vmem:[#allocation11 + $0x380] ss:$16 sps:$4 sm:$0xff]  }
 0x25f   :  { %3183 = vmatmul.mubr.bf16.vlgmr.msra.gmra.mrb[4].mxu0 %v2356_v24  ;;  %3269 = vmatmul.mubr.bf16.vlgmr.msra.gmra.mrb[4].mxu1 %v2356_v24  ;;  %v4509_v19 = vld [vmem:[#allocation11 + $0x388] ss:$16 sps:$4 sm:$0xff]   ;;  %v4514_v20 = vld [vmem:[#allocation11 + $0x3a4] ss:$16 sps:$4 sm:$0xff]   ;;  %v4517_v21 = vld [vmem:[#allocation11 + $0x3ac] ss:$16 sps:$4 sm:$0xff]  }
 0x260   :  { %3194 = vmatpush1.bf16.msra.mxu0 %v4434_v28  ;;  %3280 = vmatpush1.bf16.msra.mxu1 %v4437_v29  ;;  %v4512_v22 = vld [vmem:[#allocation11 + $0x3a0] ss:$16 sps:$4 sm:$0xff]   ;;  %v4515_v23 = vld [vmem:[#allocation11 + $0x3a8] ss:$16 sps:$4 sm:$0xff]   ;;  %v4520_v24 = vld [vmem:[#allocation11 + $0x3c4] ss:$16 sps:$4 sm:$0xff]  }
 0x261   :  { %3225 = vmatprep.mubr.bf16.mxu0 %v2359_v27  ;;  %3311 = vmatprep.mubr.bf16.mxu1 %v2359_v27  ;;  %v4523_v26 = vld [vmem:[#allocation11 + $0x3cc] ss:$16 sps:$4 sm:$0xff]   ;;  %v4518_v27 = vld [vmem:[#allocation11 + $0x3c0] ss:$16 sps:$4 sm:$0xff]   ;;  %v4521_v28 = vld [vmem:[#allocation11 + $0x3c8] ss:$16 sps:$4 sm:$0xff]  }
 0x262   :  { %3195 = vmatprep.subr.bf16.mxu0 %v4442_v30  ;;  %3281 = vmatprep.subr.bf16.mxu1 %v4445_v31  ;;  %v4526_v29 = vld [vmem:[#allocation11 + $0x3e4] ss:$16 sps:$4 sm:$0xff]   ;;  %v4529_v30 = vld [vmem:[#allocation11 + $0x3ec] ss:$16 sps:$4 sm:$0xff]   ;;  %v4524_v31 = vld [vmem:[#allocation11 + $0x3e0] ss:$16 sps:$4 sm:$0xff]  }
 0x264   :  { %3196 = vmatpush1.bf16.msra.mxu0 %v4440_v32  ;;  %3282 = vmatpush1.bf16.msra.mxu1 %v4443_v33  ;;  %v4527_v32 = vld [vmem:[#allocation11 + $0x3e8] ss:$16 sps:$4 sm:$0xff]   ;;  %v3370_v33 = vld [vmem:[#allocation2] sm:$0x1] }
 0x265   :  { %3197 = vmatprep.subr.bf16.mxu0 %v4448_v34  ;;  %3283 = vmatprep.subr.bf16.mxu1 %v4451_v35  ;;  %v2488_v34 = vld [vmem:[%s4891_s6] sm:$0xf]  ;;  %s4682_s6 = smov [#allocation12]  }
 0x266   :  { %3373 = vperm.xlu1 %3903, %v3370_v33   ;;  %v2493_v35 = vrot.slane %v2488_v34, %v4833_v45 }
 0x268   :  { %3198 = vmatpush1.bf16.msra.mxu0 %v4446_v36  ;;  %3284 = vmatpush1.bf16.msra.mxu1 %v4449_v37  ;;  %v2501_v36 = vrot.slane %v2488_v34, %v4836_v47  ;;  %v3330_v37 = vld [vmem:[%s4892_s7] sm:$0xf]  ;;  %s3406_s7 = sshll.u32 %s4682_s6, 4  ;;  %s3407_s7 = int_to_ptr.vmem [resolvable:$true] %s3406_s7 }
 0x269   :  { %3199 = vmatprep.subr.bf16.mxu0 %v4454_v38  ;;  %3285 = vmatprep.subr.bf16.mxu1 %v4457_v39  ;;  %v2497_v38 = vrot.slane %v2488_v34, %v4842_v60  ;;  %v2505_v39 = vrot.slane %v2488_v34, %v4845_v61  ;;  %s4640_s10 = scalar_lea.vmem %s3407_s7, 16  ;;  %s4644_s11 = scalar_lea.vmem %s3407_s7, 32 }
 0x26a   :  { %p4641_p12 = scmp.ne.s32.totalorder %s3407_s7, %s4640_s10  ;;  %p4645_p13 = scmp.lt.s32.totalorder %s3407_s7, %s3407_s7 }
 0x26b   :  { %p4646_p0 = scmp.lt.s32.totalorder %s4644_s11, %s4640_s10 }
 0x26c   :  { %3200 = vmatpush1.bf16.msra.mxu0 %v4452_v40  ;;  %3286 = vmatpush1.bf16.msra.mxu1 %v4455_v41 }
 0x26d   :  { %3201 = vmatprep.subr.bf16.mxu0 %v4460_v42  ;;  %3287 = vmatprep.subr.bf16.mxu1 %v4463_v43  ;;  %v3335_v42 = vrot.slane %v3330_v37, %v4833_v45  ;;  %p4647_p1 = por %p4646_p0, %p4645_p13 }
 0x26f   :  { %p4648_p2 = pnand %p4647_p1, %p4641_p12 }
 0x270   :  { %3202 = vmatpush1.bf16.msra.mxu0 %v4458_v44  ;;  %3288 = vmatpush1.bf16.msra.mxu1 %v4461_v46 }
 0x271   :  { %3203 = vmatprep.subr.bf16.mxu0 %v4466_v48  ;;  %3289 = vmatprep.subr.bf16.mxu1 %v4469_v49  ;;  %v3339_v49 = vrot.slane %v3330_v37, %v4842_v60 }
 0x274   :  { %3204 = vmatpush1.bf16.msra.mxu0 %v4464_v50  ;;  %3290 = vmatpush1.bf16.msra.mxu1 %v4467_v51 }
 0x275   :  { %3205 = vmatprep.subr.bf16.mxu0 %v4472_v54  ;;  %3291 = vmatprep.subr.bf16.mxu1 %v4475_v55 }
 0x278   :  { %3206 = vmatpush1.bf16.msra.mxu0 %v4470_v56  ;;  %3292 = vmatpush1.bf16.msra.mxu1 %v4473_v59  ;;  %v3343_v56 = vrot.slane %v3330_v37, %v4836_v47 }
 0x279   :  { %3207 = vmatprep.subr.bf16.mxu0 %v4478_v62  ;;  %3293 = vmatprep.subr.bf16.mxu1 %v4481_v52 }
 0x27c   :  { %3208 = vmatpush1.bf16.msra.mxu0 %v4476_v53  ;;  %3294 = vmatpush1.bf16.msra.mxu1 %v4479_v63 }
 0x27d   :  { %3209 = vmatprep.subr.bf16.mxu0 %v4484_v0  ;;  %3295 = vmatprep.subr.bf16.mxu1 %v4487_v1 }
 0x280   :  { %3210 = vmatpush1.bf16.msra.mxu0 %v4482_v2  ;;  %3296 = vmatpush1.bf16.msra.mxu1 %v4485_v3 }
 0x281   :  { %3211 = vmatprep.subr.bf16.mxu0 %v4490_v4  ;;  %3297 = vmatprep.subr.bf16.mxu1 %v4493_v5  ;;  %v3347_v5 = vrot.slane %v3330_v37, %v4845_v61 }
 0x284   :  { %3212 = vmatpush1.bf16.msra.mxu0 %v4488_v6  ;;  %3298 = vmatpush1.bf16.msra.mxu1 %v4491_v7 }
 0x285   :  { %3213 = vmatprep.subr.bf16.mxu0 %v4496_v8  ;;  %3299 = vmatprep.subr.bf16.mxu1 %v4499_v9 }
 0x288   :  { %3214 = vmatpush1.bf16.msra.mxu0 %v4494_v10  ;;  %3300 = vmatpush1.bf16.msra.mxu1 %v4497_v11 }
 0x289   :  { %3215 = vmatprep.subr.bf16.mxu0 %v4502_v12  ;;  %3301 = vmatprep.subr.bf16.mxu1 %v4505_v13 }
 0x28c   :  { %3216 = vmatpush1.bf16.msra.mxu0 %v4500_v14  ;;  %3302 = vmatpush1.bf16.msra.mxu1 %v4503_v15 }
 0x28d   :  { %3217 = vmatprep.subr.bf16.mxu0 %v4508_v16  ;;  %3303 = vmatprep.subr.bf16.mxu1 %v4511_v17 }
 0x290   :  { %3218 = vmatpush1.bf16.msra.mxu0 %v4506_v18  ;;  %3304 = vmatpush1.bf16.msra.mxu1 %v4509_v19 }
 0x291   :  { %3219 = vmatprep.subr.bf16.mxu0 %v4514_v20  ;;  %3305 = vmatprep.subr.bf16.mxu1 %v4517_v21  ;;  %v3385_v21 = vand.u32 127, %v2320_v57 }
 0x294   :  { %3220 = vmatpush1.bf16.msra.mxu0 %v4512_v22  ;;  %3306 = vmatpush1.bf16.msra.mxu1 %v4515_v23  ;;  %v3390_v23 = vadd.s32 4294967288, %v3385_v21 }
 0x295   :  { %3221 = vmatprep.subr.bf16.mxu0 %v4520_v24  ;;  %3307 = vmatprep.subr.bf16.mxu1 %v4523_v26  ;;  %v3388_v26 = vsub.s32 %v3385_v21, %v4830_v58 }
 0x298   :  { %3222 = vmatpush1.bf16.msra.mxu0 %v4518_v27  ;;  %3308 = vmatpush1.bf16.msra.mxu1 %v4521_v28  ;;  %v3393_v28 = vsub.s32 %v3390_v23, %v4830_v58 }
 0x299   :  { %3223 = vmatprep.subr.bf16.mxu0 %v4526_v29  ;;  %3309 = vmatprep.subr.bf16.mxu1 %v4529_v30 }
 0x29c   :  { %3224 = vmatpush1.bf16.msra.mxu0 %v4524_v31  ;;  %3310 = vmatpush1.bf16.msra.mxu1 %v4527_v32 }
 0x29f   :  { %3226 = vmatmul.mubr.bf16.vlgmr.msra.gmra.mrb[4].mxu0 %v4851_v25  ;;  %3312 = vmatmul.mubr.bf16.vlgmr.msra.gmra.mrb[4].mxu1 %v4851_v25 }
 0x2e5   :  { %v3374_v61 = vpop.permute.xlu1 %3373 }
 0x2e6   :  { %v3379_v22 = vrot.slane %v3374_v61, %v4833_v45 }
 0x372   :  { %v3227_v40 = vpop.f32.mrb[4].mxu0  ;;  %v3313_v25 = vpop.f32.mrb[4].mxu1 }
 0x373   :  { %v3842_v41 = vadd.f32 %v3227_v40, %v2493_v35  ;;  %v3846_v43 = vadd.f32 %v3313_v25, %v2501_v36  ;;  %v3229_v44 = vpop.f32.mrb[5].mxu0  ;;  %v3315_v46 = vpop.f32.mrb[5].mxu1 }
 0x374   :  { %v3843_v48 = vadd.f32 %v3229_v44, %v2497_v38  ;;  %v3847_v50 = vadd.f32 %v3315_v46, %v2505_v39  ;;  %v3231_v51 = vpop.f32.mrb[6].mxu0  ;;  %v3317_v54 = vpop.f32.mrb[6].mxu1 }
 0x375   :  { %v3322_v55 = vmax.f32 %v3842_v41, 0.0  ;;  %v3844_v59 = vadd.f32 %v3231_v51, %v2493_v35  ;;  %v3848_v62 = vadd.f32 %v3317_v54, %v2501_v36  ;;  %v3233_v52 = vpop.f32.mrb[7].mxu0  ;;  %v3319_v53 = vpop.f32.mrb[7].mxu1  ;;  %v3324_v63 = vmax.f32 %v3846_v43, 0.0 }
 0x376   :  { %v3323_v0 = vmax.f32 %v3843_v48, 0.0  ;;  %v3845_v1 = vadd.f32 %v3233_v52, %v2497_v38  ;;  %v3849_v2 = vadd.f32 %v3319_v53, %v2505_v39  ;;  %v3325_v60 = vmax.f32 %v3847_v50, 0.0 }
 0x377   :  { %v3352_v3 = vmul.f32 %v3335_v42, %v3322_v55  ;;  %v3326_v4 = vmax.f32 %v3844_v59, 0.0  ;;  %v3328_v7 = vmax.f32 %v3848_v62, 0.0  ;;  %v3354_v10 = vmul.f32 %v3343_v56, %v3324_v63 }
 0x378   :  { %v3353_v6 = vmul.f32 %v3339_v49, %v3323_v0  ;;  %v3327_v8 = vmax.f32 %v3845_v1, 0.0  ;;  %v3329_v47 = vmax.f32 %v3849_v2, 0.0  ;;  %v3355_v15 = vmul.f32 %v3347_v5, %v3325_v60 }
 0x379   :  { %v3356_v9 = vmul.f32 %v3335_v42, %v3326_v4  ;;  %v3358_v13 = vmul.f32 %v3343_v56, %v3328_v7 }
 0x37a   :  { %v3357_v11 = vmul.f32 %v3339_v49, %v3327_v8  ;;  %v3360_v12 = vadd.f32 %v3353_v6, %v3352_v3  ;;  %v3359_v17 = vmul.f32 %v3347_v5, %v3329_v47 }
 0x37c   :  { %v3365_v14 = vadd.f32 %v3357_v11, %v3356_v9  ;;  %v3361_v16 = vadd.f32 %v3360_v12, %v3354_v10 }
 0x37e   :  { %v3362_v18 = vadd.f32 %v3361_v16, %v3355_v15  ;;  %v3366_v19 = vadd.f32 %v3365_v14, %v3358_v13 }
 0x380   :  { %3363 = vadd.xlane.f32.xlu0 %v3362_v18  ;;  %v3367_v20 = vadd.f32 %v3366_v19, %v3359_v17 }
 0x384   :  { %3368 = vadd.xlane.f32.xlu0 %v3367_v20 }
 0x40d   :  { %v3364_v24 = vpop.xlane.xlu0 %3363 }
 0x40e   :  { %v3380_v27 = vadd.f32 %v3379_v22, %v3364_v24 }
 0x410   :  { %v3389_v31 = vrot.slane %v3380_v27, %v3388_v26 }
 0x411   :  { %v3369_v29 = vpop.xlane.xlu0 %3368 }
 0x412   :  { %v3381_v30 = vadd.f32 %v3379_v22, %v3369_v29 }
 0x414   :  { %v3394_v32 = vrot.slane %v3381_v30, %v3393_v28 }
 0x416   :  { %v3396_v33 = vsel %vm3395_vm0, %v3394_v32, %v3389_v31 }
 0x417   :  { %3399 = vst.msk [vmem:[#allocation12] sm:$0x1] %vm3398_vm1, %v3396_v33 }
 0x418   :  { %4651 = shalt.err (!%p4648_p2)
}
 0x419   :  { %s4652_s1 = scalar_lea.hbm %s4894_s9, 16 }
 0x41a   :  { %p4653_p3 = scmp.ne.s32.totalorder %s4894_s9, %s4652_s1  ;;  %p4656_p4 = scmp.lt.u32.totalorder %s4652_s1, %s4894_s9 }
 0x41c   :  { %p4658_p5 = pnand %p4656_p4, %p4653_p3 }
 0x41e   :  { %4661 = shalt.err (!%p4658_p5)
}
 0x41f   :  { %3409 = dma.vmem_to_hbm [thread:$0]  %s3407_s7, 16, %s4894_s9, [#allocation5]  }
 0x420   :  { %4668 = dma.done.wait [#allocation5], 16  }
 0x421   :  { %4669 = vsyncadd [#allocation5], 4294967280 }
 0x422   :  { %3413 = vsyncpa [#allocation4], 1 }
 0x423   :  { %3414 = vsyncpa [#allocation7], 1 }
 0x424   :  { %3415 = vsyncpa [#allocation10], 1 }
 0x425   :  { %3416 = vsyncpa [#allocation5], 1 }

</bundles_post_ra>
